<compile_context>
chip_gen: v7x
topology: tpu7x:2x2x1
jax: 0.10.0
libtpu: 0.0.40
codegen_flags: <defaults>
</compile_context>

<pallas_src>
import functools

import jax
import jax.numpy as jnp
import numpy as np
from jax import lax
from jax.experimental import pallas as pl
from jax.experimental.pallas import tpu as pltpu


# ----------------------------------------------------------------------------
# Pallas kernel: one full transformer block (attention sub-block + MLP sub-block)
# ----------------------------------------------------------------------------
def _block_kernel(x_ref,
                  ln1_g_ref, ln1_b_ref,
                  wqkv_ref,               # (C, 3C) bf16, softmax scale folded into q cols
                  wproj_ref, bproj_ref,   # (C, C) bf16, (1, C) f32
                  ln2_g_ref, ln2_b_ref,
                  w1_ref, b1_ref,         # (C, mlp) bf16, (1, mlp) f32
                  w2_ref, b2_ref,         # (mlp, C) bf16, (1, C) f32
                  o_ref,
                  *, heads, eps):
    bt, n, c = x_ref.shape
    hd = c // heads
    rows = bt * n

    # Fold batch rows into the sublane/M dim (pure retile when n % 8 == 0).
    x = x_ref[...].reshape(rows, c)                           # (R, C) fp32

    # ---- PreNormDrop: LayerNorm (fp32); dropout = identity (eval) -----------
    mu = jnp.mean(x, axis=-1, keepdims=True)
    var = jnp.mean((x - mu) * (x - mu), axis=-1, keepdims=True)
    y = (x - mu) * lax.rsqrt(var + eps)
    y = y * ln1_g_ref[...] + ln1_b_ref[...]                   # (R, C)

    # ---- SelfAttention -------------------------------------------------------
    # Single lane-dense QKV projection (full-depth C contraction, 3C-wide out).
    qkv = jnp.dot(y.astype(jnp.bfloat16), wqkv_ref[...],
                  preferred_element_type=jnp.float32)         # (R, 3C) fp32

    # Head-major relayout: Mosaic batched dot_general wants the batch dim
    # leading, so build (bt*heads, n, hd) with small static slices + stack
    # (no (heads, N, C) activation broadcast, no matmuls in this loop).
    def gather_heads(col0):
        parts = []
        for b in range(bt):
            for h in range(heads):
                parts.append(qkv[b * n:(b + 1) * n,
                                 col0 + h * hd: col0 + (h + 1) * hd])
        return jnp.stack(parts, axis=0).astype(jnp.bfloat16)  # (bt*heads, n, hd)

    q = gather_heads(0)          # scale already folded into the q weight cols
    k = gather_heads(c)
    v = gather_heads(2 * c)

    # Scores: NT batched matmul, no materialized transpose of k.
    s = jnp.einsum('hqd,hkd->hqk', q, k,
                   preferred_element_type=jnp.float32)        # (bt*heads, n, n) fp32
    s = s - jnp.max(s, axis=-1, keepdims=True)
    p = jnp.exp(s)
    p = p * pl.reciprocal(jnp.sum(p, axis=-1, keepdims=True), approx=True)
    # TODO(synk): KV-tiled online softmax for large N (keeps live VMEM constant).

    o_h = jnp.einsum('hqk,hkd->hqd', p.astype(jnp.bfloat16), v,
                     preferred_element_type=jnp.float32)      # (bt*heads, n, hd) fp32

    # Merge heads back into the lane dim, then ONE full-depth output projection.
    o_rows = [jnp.concatenate([o_h[b * heads + h] for h in range(heads)], axis=-1)
              for b in range(bt)]                              # bt x (n, C)
    o2d = o_rows[0] if bt == 1 else jnp.concatenate(o_rows, axis=0)   # (R, C)

    attn = jnp.dot(o2d.astype(jnp.bfloat16), wproj_ref[...],
                   preferred_element_type=jnp.float32) + bproj_ref[...]

    # ---- Residual 1 ----------------------------------------------------------
    x1 = x + attn

    # ---- PreNorm: LayerNorm (fp32) -------------------------------------------
    mu2 = jnp.mean(x1, axis=-1, keepdims=True)
    var2 = jnp.mean((x1 - mu2) * (x1 - mu2), axis=-1, keepdims=True)
    y2 = (x1 - mu2) * lax.rsqrt(var2 + eps)
    y2 = y2 * ln2_g_ref[...] + ln2_b_ref[...]

    # ---- FeedForward: Linear -> GELU (exact erf, fp32) -> Linear -------------
    hdn = jnp.dot(y2.astype(jnp.bfloat16), w1_ref[...],
                  preferred_element_type=jnp.float32) + b1_ref[...]
    hdn = 0.5 * hdn * (1.0 + lax.erf(hdn * (1.0 / np.sqrt(2.0))))
    ff = jnp.dot(hdn.astype(jnp.bfloat16), w2_ref[...],
                 preferred_element_type=jnp.float32) + b2_ref[...]

    # ---- Residual 2 ----------------------------------------------------------
    o_ref[...] = (x1 + ff).reshape(bt, n, c)


# ----------------------------------------------------------------------------
# Host-side weight preparation (layout + dtype, done once per block)
# ----------------------------------------------------------------------------
def _prep_block_params(p, heads):
    C = p["wqkv"].shape[0]
    hd = C // heads
    scale = float(hd) ** -0.5

    wqkv = p["wqkv"].astype(jnp.float32)
    wqkv = wqkv.at[:, :C].multiply(scale)     # fold softmax scale into q columns
    return [
        p["ln1_g"], p["ln1_b"],
        wqkv.astype(jnp.bfloat16),            # (C, 3C)
        p["wproj"].astype(jnp.bfloat16), p["bproj"],
        p["ln2_g"], p["ln2_b"],
        p["w1"].astype(jnp.bfloat16), p["b1"],
        p["w2"].astype(jnp.bfloat16), p["b2"],
    ]


def _vmem_limit_bytes():
    # Generation-aware: ~3/4 of physical VMEM, capped at 96 MiB.
    # (v7x: 64 MiB physical -> 48 MiB; v5e/v6e: 128 MiB -> 96 MiB.)
    try:
        cap = int(pltpu.get_tpu_info().vmem_capacity_bytes)
    except Exception:
        cap = 128 * 1024 * 1024
    return min(96 * 1024 * 1024, (cap * 3) // 4)


def _choose_batch_block(b, n):
    # Fill the sublane/M dim when N is small, but keep >= 2 grid steps when
    # possible so the v7x TensorCore pair gets balanced shards.
    target_rows = 256
    bt = max(1, min(b, target_rows // max(n, 1)))
    while bt > 1 and (b % bt != 0 or b // bt < 2):
        bt -= 1
    return bt


def transformer_block(x, params, *, heads, batch_block=None):
    """Apply one transformer block with a single pallas_call. x: (B, N, C) fp32."""
    B, N, C = x.shape
    assert C % heads == 0
    weights = _prep_block_params(params, heads)

    bt = batch_block if batch_block is not None else _choose_batch_block(B, N)
    assert B % bt == 0
    grid = (B // bt,)

    x_spec = pl.BlockSpec((bt, N, C), lambda b: (b, 0, 0))
    out_spec = pl.BlockSpec((bt, N, C), lambda b: (b, 0, 0))
    kernel = functools.partial(_block_kernel, heads=heads, eps=1e-5)
    vmem_limit = _vmem_limit_bytes()

    def call(single_buffer):
        w_specs = []
        for w in weights:
            kwargs = {}
            if single_buffer:
                # Constant-index weight blocks never re-DMA; single-buffering
                # them halves their VMEM footprint (material on v7x's 64 MiB).
                kwargs["pipeline_mode"] = pl.Buffered(1)
            w_specs.append(
                pl.BlockSpec(w.shape, lambda b, nd=w.ndim: (0,) * nd, **kwargs))
        return pl.pallas_call(
            kernel,
            out_shape=jax.ShapeDtypeStruct((B, N, C), jnp.float32),
            grid=grid,
            in_specs=[x_spec] + w_specs,
            out_specs=out_spec,
            compiler_params=pltpu.CompilerParams(
                dimension_semantics=("parallel",),
                vmem_limit_bytes=vmem_limit,
            ),
        )(x, *weights)

    try:
        return call(single_buffer=True)
    except Exception:
        # Fallback if this JAX build rejects pipeline_mode=Buffered(1).
        return call(single_buffer=False)


def transformer_model(x, all_params, *, heads):
    """depth blocks, each = Residual(PreNormDrop(Attn)) + Residual(PreNorm(FFN))."""
    # TODO(synk): fuse 2+ blocks per pallas_call / prefetch next-layer weights
    #             to cut per-block HBM round trips of the residual stream.
    for params in all_params:
        x = transformer_block(x, params, heads=heads)
    return x


# ----------------------------------------------------------------------------
# Pure-JAX fp32 reference (same math, no Pallas) for a correctness check.
# ----------------------------------------------------------------------------
def _reference_block(x, p, heads):
    B, N, C = x.shape
    hd = C // heads
    scale = hd ** (-0.5)
    eps = 1e-5

    def ln(z, g, b):
        mu = jnp.mean(z, -1, keepdims=True)
        var = jnp.mean((z - mu) ** 2, -1, keepdims=True)
        return (z - mu) / jnp.sqrt(var + eps) * g + b

    y = ln(x, p["ln1_g"], p["ln1_b"])
    qkv = y @ p["wqkv"]                                    # (B, N, 3C)
    qkv = qkv.reshape(B, N, 3, heads, hd).transpose(2, 0, 3, 1, 4)
    q, k, v = qkv[0], qkv[1], qkv[2]                       # (B, h, N, hd)
    attn = jax.nn.softmax((q @ jnp.swapaxes(k, -2, -1)) * scale, axis=-1)
    o = (attn @ v).transpose(0, 2, 1, 3).reshape(B, N, C)
    o = o @ p["wproj"] + p["bproj"]
    x1 = x + o

    y2 = ln(x1, p["ln2_g"], p["ln2_b"])
    h = y2 @ p["w1"] + p["b1"]
    h = 0.5 * h * (1.0 + lax.erf(h / np.sqrt(2.0)))
    ff = h @ p["w2"] + p["b2"]
    return x1 + ff


def _reference_model(x, all_params, heads):
    for p in all_params:
        x = _reference_block(x, p, heads)
    return x


# ----------------------------------------------------------------------------
# Deterministic parameter init (synthetic — shapes follow the module __init__)
# ----------------------------------------------------------------------------
def init_params(key, depth, dim, heads, mlp_dim):
    all_params = []
    for d in range(depth):
        keys = jax.random.split(jax.random.fold_in(key, d), 4)
        p = {
            "ln1_g": jnp.ones((1, dim), jnp.float32),
            "ln1_b": jnp.zeros((1, dim), jnp.float32),
            # qkv: nn.Linear(dim, 3*dim, bias=False) -> stored (in, out)
            "wqkv": 0.05 * jax.random.normal(keys[0], (dim, 3 * dim), jnp.float32),
            # proj: nn.Linear(dim, dim)
            "wproj": 0.05 * jax.random.normal(keys[1], (dim, dim), jnp.float32),
            "bproj": jnp.zeros((1, dim), jnp.float32),
            "ln2_g": jnp.ones((1, dim), jnp.float32),
            "ln2_b": jnp.zeros((1, dim), jnp.float32),
            # FeedForward: Linear(dim, mlp_dim), Linear(mlp_dim, dim)
            "w1": 0.05 * jax.random.normal(keys[2], (dim, mlp_dim), jnp.float32),
            "b1": jnp.zeros((1, mlp_dim), jnp.float32),
            "w2": 0.05 * jax.random.normal(keys[3], (mlp_dim, dim), jnp.float32),
            "b2": jnp.zeros((1, dim), jnp.float32),
        }
        all_params.append(p)
    return all_params


if __name__ == "__main__":
    # Small shapes consistent with the module (B, N, dim); dim and mlp_dim are
    # 128-lane aligned (head_dim = 32).
    B, N = 2, 16
    dim, depth, heads, mlp_dim = 128, 2, 4, 256

    key = jax.random.PRNGKey(0)
    kx, kp = jax.random.split(key)
    x = jax.random.normal(kx, (B, N, dim), jnp.float32)
    params = init_params(kp, depth, dim, heads, mlp_dim)

    out = transformer_model(x, params, heads=heads)
    out = jax.block_until_ready(out)

    ref = _reference_model(x, params, heads)
    # bf16 matmul inputs (fp32 accumulation) -> bf16-aware tolerance vs fp32 ref.
    np.testing.assert_allclose(np.asarray(out), np.asarray(ref),
                               rtol=2e-2, atol=2e-2)

    print("KERNEL_OK")
</pallas_src>

<mosaic_0001>
module attributes {stable_mosaic.version = 11 : i64} {
  func.func @_block_kernel(%arg0: i32, %arg1: memref<1x16x128xf32, #tpu.memory_space<vmem>>, %arg2: memref<1x128xf32, #tpu.memory_space<vmem>>, %arg3: memref<1x128xf32, #tpu.memory_space<vmem>>, %arg4: memref<128x384xbf16, #tpu.memory_space<vmem>>, %arg5: memref<128x128xbf16, #tpu.memory_space<vmem>>, %arg6: memref<1x128xf32, #tpu.memory_space<vmem>>, %arg7: memref<1x128xf32, #tpu.memory_space<vmem>>, %arg8: memref<1x128xf32, #tpu.memory_space<vmem>>, %arg9: memref<128x256xbf16, #tpu.memory_space<vmem>>, %arg10: memref<1x256xf32, #tpu.memory_space<vmem>>, %arg11: memref<256x128xbf16, #tpu.memory_space<vmem>>, %arg12: memref<1x128xf32, #tpu.memory_space<vmem>>, %arg13: memref<1x16x128xf32, #tpu.memory_space<vmem>>) attributes {dimension_semantics = [#tpu.dimension_semantics<parallel>], iteration_bounds = array<i64: 2>, scalar_prefetch = 0 : i64, scratch_operands = 0 : i64, tpu.core_type = #tpu.core_type<tc>, window_params = [{transform_indices = @transform_0, window_bounds = array<i64: 1, 16, 128>}, {pipeline_mode = #tpu.pipeline_mode<synchronous>, transform_indices = @transform_1, window_bounds = array<i64: 1, 128>}, {pipeline_mode = #tpu.pipeline_mode<synchronous>, transform_indices = @transform_2, window_bounds = array<i64: 1, 128>}, {pipeline_mode = #tpu.pipeline_mode<synchronous>, transform_indices = @transform_3, window_bounds = array<i64: 128, 384>}, {pipeline_mode = #tpu.pipeline_mode<synchronous>, transform_indices = @transform_4, window_bounds = array<i64: 128, 128>}, {pipeline_mode = #tpu.pipeline_mode<synchronous>, transform_indices = @transform_5, window_bounds = array<i64: 1, 128>}, {pipeline_mode = #tpu.pipeline_mode<synchronous>, transform_indices = @transform_6, window_bounds = array<i64: 1, 128>}, {pipeline_mode = #tpu.pipeline_mode<synchronous>, transform_indices = @transform_7, window_bounds = array<i64: 1, 128>}, {pipeline_mode = #tpu.pipeline_mode<synchronous>, transform_indices = @transform_8, window_bounds = array<i64: 128, 256>}, {pipeline_mode = #tpu.pipeline_mode<synchronous>, transform_indices = @transform_9, window_bounds = array<i64: 1, 256>}, {pipeline_mode = #tpu.pipeline_mode<synchronous>, transform_indices = @transform_10, window_bounds = array<i64: 256, 128>}, {pipeline_mode = #tpu.pipeline_mode<synchronous>, transform_indices = @transform_11, window_bounds = array<i64: 1, 128>}, {transform_indices = @transform_12, window_bounds = array<i64: 1, 16, 128>}]} {
    %c0 = arith.constant 0 : index
    %c0_0 = arith.constant 0 : index
    %c0_1 = arith.constant 0 : index
    %0 = vector.load %arg1[%c0, %c0_0, %c0_1] : memref<1x16x128xf32, #tpu.memory_space<vmem>>, vector<1x16x128xf32>
    %1 = vector.shape_cast %0 : vector<1x16x128xf32> to vector<16x128xf32>
    %cst = arith.constant dense<0.000000e+00> : vector<16xf32>
    %2 = vector.multi_reduction <add>, %1, %cst [1] : vector<16x128xf32> to vector<16xf32>
    %3 = vector.shape_cast %2 : vector<16xf32> to vector<16x1xf32>
    %cst_2 = arith.constant 1.280000e+02 : f32
    %4 = vector.broadcast %cst_2 : f32 to vector<16x1xf32>
    %5 = arith.divf %3, %4 : vector<16x1xf32>
    %6 = vector.broadcast %5 : vector<16x1xf32> to vector<16x128xf32>
    %7 = arith.subf %1, %6 : vector<16x128xf32>
    %8 = vector.broadcast %5 : vector<16x1xf32> to vector<16x128xf32>
    %9 = arith.subf %1, %8 : vector<16x128xf32>
    %10 = arith.mulf %7, %9 : vector<16x128xf32>
    %cst_3 = arith.constant dense<0.000000e+00> : vector<16xf32>
    %11 = vector.multi_reduction <add>, %10, %cst_3 [1] : vector<16x128xf32> to vector<16xf32>
    %12 = vector.shape_cast %11 : vector<16xf32> to vector<16x1xf32>
    %cst_4 = arith.constant 1.280000e+02 : f32
    %13 = vector.broadcast %cst_4 : f32 to vector<16x1xf32>
    %14 = arith.divf %12, %13 : vector<16x1xf32>
    %15 = vector.broadcast %5 : vector<16x1xf32> to vector<16x128xf32>
    %16 = arith.subf %1, %15 : vector<16x128xf32>
    %cst_5 = arith.constant 9.99999974E-6 : f32
    %17 = vector.broadcast %cst_5 : f32 to vector<16x1xf32>
    %18 = arith.addf %14, %17 : vector<16x1xf32>
    %19 = math.rsqrt %18 : vector<16x1xf32>
    %20 = vector.broadcast %19 : vector<16x1xf32> to vector<16x128xf32>
    %21 = arith.mulf %16, %20 : vector<16x128xf32>
    %c0_6 = arith.constant 0 : index
    %c0_7 = arith.constant 0 : index
    %22 = vector.load %arg2[%c0_6, %c0_7] : memref<1x128xf32, #tpu.memory_space<vmem>>, vector<1x128xf32>
    %23 = vector.broadcast %22 : vector<1x128xf32> to vector<16x128xf32>
    %24 = arith.mulf %21, %23 : vector<16x128xf32>
    %c0_8 = arith.constant 0 : index
    %c0_9 = arith.constant 0 : index
    %25 = vector.load %arg3[%c0_8, %c0_9] : memref<1x128xf32, #tpu.memory_space<vmem>>, vector<1x128xf32>
    %26 = vector.broadcast %25 : vector<1x128xf32> to vector<16x128xf32>
    %27 = arith.addf %24, %26 : vector<16x128xf32>
    %28 = arith.truncf %27 : vector<16x128xf32> to vector<16x128xbf16>
    %c0_10 = arith.constant 0 : index
    %c0_11 = arith.constant 0 : index
    %29 = vector.load %arg4[%c0_10, %c0_11] : memref<128x384xbf16, #tpu.memory_space<vmem>>, vector<128x384xbf16>
    %cst_12 = arith.constant dense<0.000000e+00> : vector<16x384xf32>
    %30 = tpu.matmul %28, %29, %cst_12 {dimension_numbers = #tpu.dot_dimension_numbers<[1], [0], [0], [1], [0, 0, 1, 1], [], []>} : vector<16x128xbf16>, vector<128x384xbf16>, vector<16x384xf32> -> vector<16x384xf32>
    %31 = vector.extract_strided_slice %30 {offsets = [0, 0], sizes = [16, 32], strides = [1, 1]} : vector<16x384xf32> to vector<16x32xf32>
    %32 = vector.extract_strided_slice %30 {offsets = [0, 32], sizes = [16, 32], strides = [1, 1]} : vector<16x384xf32> to vector<16x32xf32>
    %33 = vector.extract_strided_slice %30 {offsets = [0, 64], sizes = [16, 32], strides = [1, 1]} : vector<16x384xf32> to vector<16x32xf32>
    %34 = vector.extract_strided_slice %30 {offsets = [0, 96], sizes = [16, 32], strides = [1, 1]} : vector<16x384xf32> to vector<16x32xf32>
    %35 = vector.shape_cast %31 : vector<16x32xf32> to vector<1x16x32xf32>
    %36 = vector.shape_cast %32 : vector<16x32xf32> to vector<1x16x32xf32>
    %37 = vector.shape_cast %33 : vector<16x32xf32> to vector<1x16x32xf32>
    %38 = vector.shape_cast %34 : vector<16x32xf32> to vector<1x16x32xf32>
    %39 = tpu.concatenate %35, %36, %37, %38 in 0 : vector<1x16x32xf32>, vector<1x16x32xf32>, vector<1x16x32xf32>, vector<1x16x32xf32> -> vector<4x16x32xf32>
    %40 = arith.truncf %39 : vector<4x16x32xf32> to vector<4x16x32xbf16>
    %41 = vector.extract_strided_slice %30 {offsets = [0, 128], sizes = [16, 32], strides = [1, 1]} : vector<16x384xf32> to vector<16x32xf32>
    %42 = vector.extract_strided_slice %30 {offsets = [0, 160], sizes = [16, 32], strides = [1, 1]} : vector<16x384xf32> to vector<16x32xf32>
    %43 = vector.extract_strided_slice %30 {offsets = [0, 192], sizes = [16, 32], strides = [1, 1]} : vector<16x384xf32> to vector<16x32xf32>
    %44 = vector.extract_strided_slice %30 {offsets = [0, 224], sizes = [16, 32], strides = [1, 1]} : vector<16x384xf32> to vector<16x32xf32>
    %45 = vector.shape_cast %41 : vector<16x32xf32> to vector<1x16x32xf32>
    %46 = vector.shape_cast %42 : vector<16x32xf32> to vector<1x16x32xf32>
    %47 = vector.shape_cast %43 : vector<16x32xf32> to vector<1x16x32xf32>
    %48 = vector.shape_cast %44 : vector<16x32xf32> to vector<1x16x32xf32>
    %49 = tpu.concatenate %45, %46, %47, %48 in 0 : vector<1x16x32xf32>, vector<1x16x32xf32>, vector<1x16x32xf32>, vector<1x16x32xf32> -> vector<4x16x32xf32>
    %50 = arith.truncf %49 : vector<4x16x32xf32> to vector<4x16x32xbf16>
    %51 = vector.extract_strided_slice %30 {offsets = [0, 256], sizes = [16, 32], strides = [1, 1]} : vector<16x384xf32> to vector<16x32xf32>
    %52 = vector.extract_strided_slice %30 {offsets = [0, 288], sizes = [16, 32], strides = [1, 1]} : vector<16x384xf32> to vector<16x32xf32>
    %53 = vector.extract_strided_slice %30 {offsets = [0, 320], sizes = [16, 32], strides = [1, 1]} : vector<16x384xf32> to vector<16x32xf32>
    %54 = vector.extract_strided_slice %30 {offsets = [0, 352], sizes = [16, 32], strides = [1, 1]} : vector<16x384xf32> to vector<16x32xf32>
    %55 = vector.shape_cast %51 : vector<16x32xf32> to vector<1x16x32xf32>
    %56 = vector.shape_cast %52 : vector<16x32xf32> to vector<1x16x32xf32>
    %57 = vector.shape_cast %53 : vector<16x32xf32> to vector<1x16x32xf32>
    %58 = vector.shape_cast %54 : vector<16x32xf32> to vector<1x16x32xf32>
    %59 = tpu.concatenate %55, %56, %57, %58 in 0 : vector<1x16x32xf32>, vector<1x16x32xf32>, vector<1x16x32xf32>, vector<1x16x32xf32> -> vector<4x16x32xf32>
    %60 = arith.truncf %59 : vector<4x16x32xf32> to vector<4x16x32xbf16>
    "tpu.trace_start"() <{level = 10 : i32, message = "hqd,hkd->hqk"}> : () -> ()
    %cst_13 = arith.constant dense<0.000000e+00> : vector<4x16x16xf32>
    %61 = tpu.matmul %40, %50, %cst_13 {dimension_numbers = #tpu.dot_dimension_numbers<[2], [2], [1], [1], [0, 0, 0, 1, 1, 1], [0], [0]>} : vector<4x16x32xbf16>, vector<4x16x32xbf16>, vector<4x16x16xf32> -> vector<4x16x16xf32>
    "tpu.trace_stop"() : () -> ()
    %cst_14 = arith.constant dense<0xFF800000> : vector<4x16xf32>
    %62 = vector.multi_reduction <maximumf>, %61, %cst_14 [2] : vector<4x16x16xf32> to vector<4x16xf32>
    %63 = vector.shape_cast %62 : vector<4x16xf32> to vector<4x16x1xf32>
    %64 = vector.broadcast %63 : vector<4x16x1xf32> to vector<4x16x16xf32>
    %65 = arith.subf %61, %64 : vector<4x16x16xf32>
    %66 = math.exp %65 : vector<4x16x16xf32>
    %cst_15 = arith.constant dense<0.000000e+00> : vector<4x16xf32>
    %67 = vector.multi_reduction <add>, %66, %cst_15 [2] : vector<4x16x16xf32> to vector<4x16xf32>
    %68 = vector.shape_cast %67 : vector<4x16xf32> to vector<4x16x1xf32>
    %69 = tpu.reciprocal %68 {approx = true} : vector<4x16x1xf32> -> vector<4x16x1xf32>
    %70 = vector.broadcast %69 : vector<4x16x1xf32> to vector<4x16x16xf32>
    %71 = arith.mulf %66, %70 : vector<4x16x16xf32>
    %72 = arith.truncf %71 : vector<4x16x16xf32> to vector<4x16x16xbf16>
    "tpu.trace_start"() <{level = 10 : i32, message = "hqk,hkd->hqd"}> : () -> ()
    %cst_16 = arith.constant dense<0.000000e+00> : vector<4x16x32xf32>
    %73 = tpu.matmul %72, %60, %cst_16 {dimension_numbers = #tpu.dot_dimension_numbers<[2], [1], [1], [2], [0, 0, 0, 1, 1, 2], [0], [0]>} : vector<4x16x16xbf16>, vector<4x16x32xbf16>, vector<4x16x32xf32> -> vector<4x16x32xf32>
    "tpu.trace_stop"() : () -> ()
    %74 = vector.extract_strided_slice %73 {offsets = [0, 0, 0], sizes = [1, 16, 32], strides = [1, 1, 1]} : vector<4x16x32xf32> to vector<1x16x32xf32>
    %75 = vector.shape_cast %74 : vector<1x16x32xf32> to vector<16x32xf32>
    %76 = vector.extract_strided_slice %73 {offsets = [1, 0, 0], sizes = [1, 16, 32], strides = [1, 1, 1]} : vector<4x16x32xf32> to vector<1x16x32xf32>
    %77 = vector.shape_cast %76 : vector<1x16x32xf32> to vector<16x32xf32>
    %78 = vector.extract_strided_slice %73 {offsets = [2, 0, 0], sizes = [1, 16, 32], strides = [1, 1, 1]} : vector<4x16x32xf32> to vector<1x16x32xf32>
    %79 = vector.shape_cast %78 : vector<1x16x32xf32> to vector<16x32xf32>
    %80 = vector.extract_strided_slice %73 {offsets = [3, 0, 0], sizes = [1, 16, 32], strides = [1, 1, 1]} : vector<4x16x32xf32> to vector<1x16x32xf32>
    %81 = vector.shape_cast %80 : vector<1x16x32xf32> to vector<16x32xf32>
    %82 = tpu.concatenate %75, %77, %79, %81 in 1 : vector<16x32xf32>, vector<16x32xf32>, vector<16x32xf32>, vector<16x32xf32> -> vector<16x128xf32>
    %83 = arith.truncf %82 : vector<16x128xf32> to vector<16x128xbf16>
    %c0_17 = arith.constant 0 : index
    %c0_18 = arith.constant 0 : index
    %84 = vector.load %arg5[%c0_17, %c0_18] : memref<128x128xbf16, #tpu.memory_space<vmem>>, vector<128x128xbf16>
    %cst_19 = arith.constant dense<0.000000e+00> : vector<16x128xf32>
    %85 = tpu.matmul %83, %84, %cst_19 {dimension_numbers = #tpu.dot_dimension_numbers<[1], [0], [0], [1], [0, 0, 1, 1], [], []>} : vector<16x128xbf16>, vector<128x128xbf16>, vector<16x128xf32> -> vector<16x128xf32>
    %c0_20 = arith.constant 0 : index
    %c0_21 = arith.constant 0 : index
    %86 = vector.load %arg6[%c0_20, %c0_21] : memref<1x128xf32, #tpu.memory_space<vmem>>, vector<1x128xf32>
    %87 = vector.broadcast %86 : vector<1x128xf32> to vector<16x128xf32>
    %88 = arith.addf %85, %87 : vector<16x128xf32>
    %89 = arith.addf %1, %88 : vector<16x128xf32>
    %cst_22 = arith.constant dense<0.000000e+00> : vector<16xf32>
    %90 = vector.multi_reduction <add>, %89, %cst_22 [1] : vector<16x128xf32> to vector<16xf32>
    %91 = vector.shape_cast %90 : vector<16xf32> to vector<16x1xf32>
    %cst_23 = arith.constant 1.280000e+02 : f32
    %92 = vector.broadcast %cst_23 : f32 to vector<16x1xf32>
    %93 = arith.divf %91, %92 : vector<16x1xf32>
    %94 = vector.broadcast %93 : vector<16x1xf32> to vector<16x128xf32>
    %95 = arith.subf %89, %94 : vector<16x128xf32>
    %96 = vector.broadcast %93 : vector<16x1xf32> to vector<16x128xf32>
    %97 = arith.subf %89, %96 : vector<16x128xf32>
    %98 = arith.mulf %95, %97 : vector<16x128xf32>
    %cst_24 = arith.constant dense<0.000000e+00> : vector<16xf32>
    %99 = vector.multi_reduction <add>, %98, %cst_24 [1] : vector<16x128xf32> to vector<16xf32>
    %100 = vector.shape_cast %99 : vector<16xf32> to vector<16x1xf32>
    %cst_25 = arith.constant 1.280000e+02 : f32
    %101 = vector.broadcast %cst_25 : f32 to vector<16x1xf32>
    %102 = arith.divf %100, %101 : vector<16x1xf32>
    %103 = vector.broadcast %93 : vector<16x1xf32> to vector<16x128xf32>
    %104 = arith.subf %89, %103 : vector<16x128xf32>
    %cst_26 = arith.constant 9.99999974E-6 : f32
    %105 = vector.broadcast %cst_26 : f32 to vector<16x1xf32>
    %106 = arith.addf %102, %105 : vector<16x1xf32>
    %107 = math.rsqrt %106 : vector<16x1xf32>
    %108 = vector.broadcast %107 : vector<16x1xf32> to vector<16x128xf32>
    %109 = arith.mulf %104, %108 : vector<16x128xf32>
    %c0_27 = arith.constant 0 : index
    %c0_28 = arith.constant 0 : index
    %110 = vector.load %arg7[%c0_27, %c0_28] : memref<1x128xf32, #tpu.memory_space<vmem>>, vector<1x128xf32>
    %111 = vector.broadcast %110 : vector<1x128xf32> to vector<16x128xf32>
    %112 = arith.mulf %109, %111 : vector<16x128xf32>
    %c0_29 = arith.constant 0 : index
    %c0_30 = arith.constant 0 : index
    %113 = vector.load %arg8[%c0_29, %c0_30] : memref<1x128xf32, #tpu.memory_space<vmem>>, vector<1x128xf32>
    %114 = vector.broadcast %113 : vector<1x128xf32> to vector<16x128xf32>
    %115 = arith.addf %112, %114 : vector<16x128xf32>
    %116 = arith.truncf %115 : vector<16x128xf32> to vector<16x128xbf16>
    %c0_31 = arith.constant 0 : index
    %c0_32 = arith.constant 0 : index
    %117 = vector.load %arg9[%c0_31, %c0_32] : memref<128x256xbf16, #tpu.memory_space<vmem>>, vector<128x256xbf16>
    %cst_33 = arith.constant dense<0.000000e+00> : vector<16x256xf32>
    %118 = tpu.matmul %116, %117, %cst_33 {dimension_numbers = #tpu.dot_dimension_numbers<[1], [0], [0], [1], [0, 0, 1, 1], [], []>} : vector<16x128xbf16>, vector<128x256xbf16>, vector<16x256xf32> -> vector<16x256xf32>
    %c0_34 = arith.constant 0 : index
    %c0_35 = arith.constant 0 : index
    %119 = vector.load %arg10[%c0_34, %c0_35] : memref<1x256xf32, #tpu.memory_space<vmem>>, vector<1x256xf32>
    %120 = vector.broadcast %119 : vector<1x256xf32> to vector<16x256xf32>
    %121 = arith.addf %118, %120 : vector<16x256xf32>
    %cst_36 = arith.constant 5.000000e-01 : f32
    %122 = vector.broadcast %cst_36 : f32 to vector<16x256xf32>
    %123 = arith.mulf %122, %121 : vector<16x256xf32>
    %cst_37 = arith.constant 0.707106769 : f32
    %124 = vector.broadcast %cst_37 : f32 to vector<16x256xf32>
    %125 = arith.mulf %121, %124 : vector<16x256xf32>
    %126 = math.erf %125 : vector<16x256xf32>
    %cst_38 = arith.constant 1.000000e+00 : f32
    %127 = vector.broadcast %cst_38 : f32 to vector<16x256xf32>
    %128 = arith.addf %127, %126 : vector<16x256xf32>
    %129 = arith.mulf %123, %128 : vector<16x256xf32>
    %130 = arith.truncf %129 : vector<16x256xf32> to vector<16x256xbf16>
    %c0_39 = arith.constant 0 : index
    %c0_40 = arith.constant 0 : index
    %131 = vector.load %arg11[%c0_39, %c0_40] : memref<256x128xbf16, #tpu.memory_space<vmem>>, vector<256x128xbf16>
    %cst_41 = arith.constant dense<0.000000e+00> : vector<16x128xf32>
    %132 = tpu.matmul %130, %131, %cst_41 {dimension_numbers = #tpu.dot_dimension_numbers<[1], [0], [0], [1], [0, 0, 1, 1], [], []>} : vector<16x256xbf16>, vector<256x128xbf16>, vector<16x128xf32> -> vector<16x128xf32>
    %c0_42 = arith.constant 0 : index
    %c0_43 = arith.constant 0 : index
    %133 = vector.load %arg12[%c0_42, %c0_43] : memref<1x128xf32, #tpu.memory_space<vmem>>, vector<1x128xf32>
    %134 = vector.broadcast %133 : vector<1x128xf32> to vector<16x128xf32>
    %135 = arith.addf %132, %134 : vector<16x128xf32>
    %136 = arith.addf %89, %135 : vector<16x128xf32>
    %137 = vector.shape_cast %136 : vector<16x128xf32> to vector<1x16x128xf32>
    %c0_44 = arith.constant 0 : index
    %c0_45 = arith.constant 0 : index
    %c0_46 = arith.constant 0 : index
    %138 = vector.load %arg13[%c0_44, %c0_45, %c0_46] : memref<1x16x128xf32, #tpu.memory_space<vmem>>, vector<1x16x128xf32>
    tpu.vector_store %arg13[%c0_44, %c0_45, %c0_46], %137 {strides = array<i32>} : memref<1x16x128xf32, #tpu.memory_space<vmem>>, vector<1x16x128xf32>,
    return
  }
  func.func @transform_0(%arg0: i32) -> (i32, i32, i32) {
    %c0_i32 = arith.constant 0 : i32
    %c0_i32_0 = arith.constant 0 : i32
    %c0_i32_1 = arith.constant 0 : i32
    return %arg0, %c0_i32, %c0_i32_0 : i32, i32, i32
  }
  func.func @transform_1(%arg0: i32) -> (i32, i32) {
    %c0_i32 = arith.constant 0 : i32
    %c0_i32_0 = arith.constant 0 : i32
    %c0_i32_1 = arith.constant 0 : i32
    return %c0_i32, %c0_i32_0 : i32, i32
  }
  func.func @transform_2(%arg0: i32) -> (i32, i32) {
    %c0_i32 = arith.constant 0 : i32
    %c0_i32_0 = arith.constant 0 : i32
    %c0_i32_1 = arith.constant 0 : i32
    return %c0_i32, %c0_i32_0 : i32, i32
  }
  func.func @transform_3(%arg0: i32) -> (i32, i32) {
    %c0_i32 = arith.constant 0 : i32
    %c0_i32_0 = arith.constant 0 : i32
    %c0_i32_1 = arith.constant 0 : i32
    return %c0_i32, %c0_i32_0 : i32, i32
  }
  func.func @transform_4(%arg0: i32) -> (i32, i32) {
    %c0_i32 = arith.constant 0 : i32
    %c0_i32_0 = arith.constant 0 : i32
    %c0_i32_1 = arith.constant 0 : i32
    return %c0_i32, %c0_i32_0 : i32, i32
  }
  func.func @transform_5(%arg0: i32) -> (i32, i32) {
    %c0_i32 = arith.constant 0 : i32
    %c0_i32_0 = arith.constant 0 : i32
    %c0_i32_1 = arith.constant 0 : i32
    return %c0_i32, %c0_i32_0 : i32, i32
  }
  func.func @transform_6(%arg0: i32) -> (i32, i32) {
    %c0_i32 = arith.constant 0 : i32
    %c0_i32_0 = arith.constant 0 : i32
    %c0_i32_1 = arith.constant 0 : i32
    return %c0_i32, %c0_i32_0 : i32, i32
  }
  func.func @transform_7(%arg0: i32) -> (i32, i32) {
    %c0_i32 = arith.constant 0 : i32
    %c0_i32_0 = arith.constant 0 : i32
    %c0_i32_1 = arith.constant 0 : i32
    return %c0_i32, %c0_i32_0 : i32, i32
  }
  func.func @transform_8(%arg0: i32) -> (i32, i32) {
    %c0_i32 = arith.constant 0 : i32
    %c0_i32_0 = arith.constant 0 : i32
    %c0_i32_1 = arith.constant 0 : i32
    return %c0_i32, %c0_i32_0 : i32, i32
  }
  func.func @transform_9(%arg0: i32) -> (i32, i32) {
    %c0_i32 = arith.constant 0 : i32
    %c0_i32_0 = arith.constant 0 : i32
    %c0_i32_1 = arith.constant 0 : i32
    return %c0_i32, %c0_i32_0 : i32, i32
  }
  func.func @transform_10(%arg0: i32) -> (i32, i32) {
    %c0_i32 = arith.constant 0 : i32
    %c0_i32_0 = arith.constant 0 : i32
    %c0_i32_1 = arith.constant 0 : i32
    return %c0_i32, %c0_i32_0 : i32, i32
  }
  func.func @transform_11(%arg0: i32) -> (i32, i32) {
    %c0_i32 = arith.constant 0 : i32
    %c0_i32_0 = arith.constant 0 : i32
    %c0_i32_1 = arith.constant 0 : i32
    return %c0_i32, %c0_i32_0 : i32, i32
  }
  func.func @transform_12(%arg0: i32) -> (i32, i32, i32) {
    %c0_i32 = arith.constant 0 : i32
    %c0_i32_0 = arith.constant 0 : i32
    %c0_i32_1 = arith.constant 0 : i32
    return %arg0, %c0_i32, %c0_i32_0 : i32, i32, i32
  }
}

module attributes {stable_mosaic.version = 11 : i64} {
  func.func @_block_kernel(%arg0: i32, %arg1: memref<1x16x128xf32, #tpu.memory_space<vmem>>, %arg2: memref<1x128xf32, #tpu.memory_space<vmem>>, %arg3: memref<1x128xf32, #tpu.memory_space<vmem>>, %arg4: memref<128x384xbf16, #tpu.memory_space<vmem>>, %arg5: memref<128x128xbf16, #tpu.memory_space<vmem>>, %arg6: memref<1x128xf32, #tpu.memory_space<vmem>>, %arg7: memref<1x128xf32, #tpu.memory_space<vmem>>, %arg8: memref<1x128xf32, #tpu.memory_space<vmem>>, %arg9: memref<128x256xbf16, #tpu.memory_space<vmem>>, %arg10: memref<1x256xf32, #tpu.memory_space<vmem>>, %arg11: memref<256x128xbf16, #tpu.memory_space<vmem>>, %arg12: memref<1x128xf32, #tpu.memory_space<vmem>>, %arg13: memref<1x16x128xf32, #tpu.memory_space<vmem>>) attributes {dimension_semantics = [#tpu.dimension_semantics<parallel>], iteration_bounds = array<i64: 2>, scalar_prefetch = 0 : i64, scratch_operands = 0 : i64, tpu.core_type = #tpu.core_type<tc>, window_params = [{transform_indices = @transform_0, window_bounds = array<i64: 1, 16, 128>}, {pipeline_mode = #tpu.pipeline_mode<synchronous>, transform_indices = @transform_1, window_bounds = array<i64: 1, 128>}, {pipeline_mode = #tpu.pipeline_mode<synchronous>, transform_indices = @transform_2, window_bounds = array<i64: 1, 128>}, {pipeline_mode = #tpu.pipeline_mode<synchronous>, transform_indices = @transform_3, window_bounds = array<i64: 128, 384>}, {pipeline_mode = #tpu.pipeline_mode<synchronous>, transform_indices = @transform_4, window_bounds = array<i64: 128, 128>}, {pipeline_mode = #tpu.pipeline_mode<synchronous>, transform_indices = @transform_5, window_bounds = array<i64: 1, 128>}, {pipeline_mode = #tpu.pipeline_mode<synchronous>, transform_indices = @transform_6, window_bounds = array<i64: 1, 128>}, {pipeline_mode = #tpu.pipeline_mode<synchronous>, transform_indices = @transform_7, window_bounds = array<i64: 1, 128>}, {pipeline_mode = #tpu.pipeline_mode<synchronous>, transform_indices = @transform_8, window_bounds = array<i64: 128, 256>}, {pipeline_mode = #tpu.pipeline_mode<synchronous>, transform_indices = @transform_9, window_bounds = array<i64: 1, 256>}, {pipeline_mode = #tpu.pipeline_mode<synchronous>, transform_indices = @transform_10, window_bounds = array<i64: 256, 128>}, {pipeline_mode = #tpu.pipeline_mode<synchronous>, transform_indices = @transform_11, window_bounds = array<i64: 1, 128>}, {transform_indices = @transform_12, window_bounds = array<i64: 1, 16, 128>}]} {
    %c0 = arith.constant 0 : index
    %c0_0 = arith.constant 0 : index
    %c0_1 = arith.constant 0 : index
    %0 = vector.load %arg1[%c0, %c0_0, %c0_1] : memref<1x16x128xf32, #tpu.memory_space<vmem>>, vector<1x16x128xf32>
    %1 = vector.shape_cast %0 : vector<1x16x128xf32> to vector<16x128xf32>
    %cst = arith.constant dense<0.000000e+00> : vector<16xf32>
    %2 = vector.multi_reduction <add>, %1, %cst [1] : vector<16x128xf32> to vector<16xf32>
    %3 = vector.shape_cast %2 : vector<16xf32> to vector<16x1xf32>
    %cst_2 = arith.constant 1.280000e+02 : f32
    %4 = vector.broadcast %cst_2 : f32 to vector<16x1xf32>
    %5 = arith.divf %3, %4 : vector<16x1xf32>
    %6 = vector.broadcast %5 : vector<16x1xf32> to vector<16x128xf32>
    %7 = arith.subf %1, %6 : vector<16x128xf32>
    %8 = vector.broadcast %5 : vector<16x1xf32> to vector<16x128xf32>
    %9 = arith.subf %1, %8 : vector<16x128xf32>
    %10 = arith.mulf %7, %9 : vector<16x128xf32>
    %cst_3 = arith.constant dense<0.000000e+00> : vector<16xf32>
    %11 = vector.multi_reduction <add>, %10, %cst_3 [1] : vector<16x128xf32> to vector<16xf32>
    %12 = vector.shape_cast %11 : vector<16xf32> to vector<16x1xf32>
    %cst_4 = arith.constant 1.280000e+02 : f32
    %13 = vector.broadcast %cst_4 : f32 to vector<16x1xf32>
    %14 = arith.divf %12, %13 : vector<16x1xf32>
    %15 = vector.broadcast %5 : vector<16x1xf32> to vector<16x128xf32>
    %16 = arith.subf %1, %15 : vector<16x128xf32>
    %cst_5 = arith.constant 9.99999974E-6 : f32
    %17 = vector.broadcast %cst_5 : f32 to vector<16x1xf32>
    %18 = arith.addf %14, %17 : vector<16x1xf32>
    %19 = math.rsqrt %18 : vector<16x1xf32>
    %20 = vector.broadcast %19 : vector<16x1xf32> to vector<16x128xf32>
    %21 = arith.mulf %16, %20 : vector<16x128xf32>
    %c0_6 = arith.constant 0 : index
    %c0_7 = arith.constant 0 : index
    %22 = vector.load %arg2[%c0_6, %c0_7] : memref<1x128xf32, #tpu.memory_space<vmem>>, vector<1x128xf32>
    %23 = vector.broadcast %22 : vector<1x128xf32> to vector<16x128xf32>
    %24 = arith.mulf %21, %23 : vector<16x128xf32>
    %c0_8 = arith.constant 0 : index
    %c0_9 = arith.constant 0 : index
    %25 = vector.load %arg3[%c0_8, %c0_9] : memref<1x128xf32, #tpu.memory_space<vmem>>, vector<1x128xf32>
    %26 = vector.broadcast %25 : vector<1x128xf32> to vector<16x128xf32>
    %27 = arith.addf %24, %26 : vector<16x128xf32>
    %28 = arith.truncf %27 : vector<16x128xf32> to vector<16x128xbf16>
    %c0_10 = arith.constant 0 : index
    %c0_11 = arith.constant 0 : index
    %29 = vector.load %arg4[%c0_10, %c0_11] : memref<128x384xbf16, #tpu.memory_space<vmem>>, vector<128x384xbf16>
    %cst_12 = arith.constant dense<0.000000e+00> : vector<16x384xf32>
    %30 = tpu.matmul %28, %29, %cst_12 {dimension_numbers = #tpu.dot_dimension_numbers<[1], [0], [0], [1], [0, 0, 1, 1], [], []>} : vector<16x128xbf16>, vector<128x384xbf16>, vector<16x384xf32> -> vector<16x384xf32>
    %31 = vector.extract_strided_slice %30 {offsets = [0, 0], sizes = [16, 32], strides = [1, 1]} : vector<16x384xf32> to vector<16x32xf32>
    %32 = vector.extract_strided_slice %30 {offsets = [0, 32], sizes = [16, 32], strides = [1, 1]} : vector<16x384xf32> to vector<16x32xf32>
    %33 = vector.extract_strided_slice %30 {offsets = [0, 64], sizes = [16, 32], strides = [1, 1]} : vector<16x384xf32> to vector<16x32xf32>
    %34 = vector.extract_strided_slice %30 {offsets = [0, 96], sizes = [16, 32], strides = [1, 1]} : vector<16x384xf32> to vector<16x32xf32>
    %35 = vector.shape_cast %31 : vector<16x32xf32> to vector<1x16x32xf32>
    %36 = vector.shape_cast %32 : vector<16x32xf32> to vector<1x16x32xf32>
    %37 = vector.shape_cast %33 : vector<16x32xf32> to vector<1x16x32xf32>
    %38 = vector.shape_cast %34 : vector<16x32xf32> to vector<1x16x32xf32>
    %39 = tpu.concatenate %35, %36, %37, %38 in 0 : vector<1x16x32xf32>, vector<1x16x32xf32>, vector<1x16x32xf32>, vector<1x16x32xf32> -> vector<4x16x32xf32>
    %40 = arith.truncf %39 : vector<4x16x32xf32> to vector<4x16x32xbf16>
    %41 = vector.extract_strided_slice %30 {offsets = [0, 128], sizes = [16, 32], strides = [1, 1]} : vector<16x384xf32> to vector<16x32xf32>
    %42 = vector.extract_strided_slice %30 {offsets = [0, 160], sizes = [16, 32], strides = [1, 1]} : vector<16x384xf32> to vector<16x32xf32>
    %43 = vector.extract_strided_slice %30 {offsets = [0, 192], sizes = [16, 32], strides = [1, 1]} : vector<16x384xf32> to vector<16x32xf32>
    %44 = vector.extract_strided_slice %30 {offsets = [0, 224], sizes = [16, 32], strides = [1, 1]} : vector<16x384xf32> to vector<16x32xf32>
    %45 = vector.shape_cast %41 : vector<16x32xf32> to vector<1x16x32xf32>
    %46 = vector.shape_cast %42 : vector<16x32xf32> to vector<1x16x32xf32>
    %47 = vector.shape_cast %43 : vector<16x32xf32> to vector<1x16x32xf32>
    %48 = vector.shape_cast %44 : vector<16x32xf32> to vector<1x16x32xf32>
    %49 = tpu.concatenate %45, %46, %47, %48 in 0 : vector<1x16x32xf32>, vector<1x16x32xf32>, vector<1x16x32xf32>, vector<1x16x32xf32> -> vector<4x16x32xf32>
    %50 = arith.truncf %49 : vector<4x16x32xf32> to vector<4x16x32xbf16>
    %51 = vector.extract_strided_slice %30 {offsets = [0, 256], sizes = [16, 32], strides = [1, 1]} : vector<16x384xf32> to vector<16x32xf32>
    %52 = vector.extract_strided_slice %30 {offsets = [0, 288], sizes = [16, 32], strides = [1, 1]} : vector<16x384xf32> to vector<16x32xf32>
    %53 = vector.extract_strided_slice %30 {offsets = [0, 320], sizes = [16, 32], strides = [1, 1]} : vector<16x384xf32> to vector<16x32xf32>
    %54 = vector.extract_strided_slice %30 {offsets = [0, 352], sizes = [16, 32], strides = [1, 1]} : vector<16x384xf32> to vector<16x32xf32>
    %55 = vector.shape_cast %51 : vector<16x32xf32> to vector<1x16x32xf32>
    %56 = vector.shape_cast %52 : vector<16x32xf32> to vector<1x16x32xf32>
    %57 = vector.shape_cast %53 : vector<16x32xf32> to vector<1x16x32xf32>
    %58 = vector.shape_cast %54 : vector<16x32xf32> to vector<1x16x32xf32>
    %59 = tpu.concatenate %55, %56, %57, %58 in 0 : vector<1x16x32xf32>, vector<1x16x32xf32>, vector<1x16x32xf32>, vector<1x16x32xf32> -> vector<4x16x32xf32>
    %60 = arith.truncf %59 : vector<4x16x32xf32> to vector<4x16x32xbf16>
    "tpu.trace_start"() <{level = 10 : i32, message = "hqd,hkd->hqk"}> : () -> ()
    %cst_13 = arith.constant dense<0.000000e+00> : vector<4x16x16xf32>
    %61 = tpu.matmul %40, %50, %cst_13 {dimension_numbers = #tpu.dot_dimension_numbers<[2], [2], [1], [1], [0, 0, 0, 1, 1, 1], [0], [0]>} : vector<4x16x32xbf16>, vector<4x16x32xbf16>, vector<4x16x16xf32> -> vector<4x16x16xf32>
    "tpu.trace_stop"() : () -> ()
    %cst_14 = arith.constant dense<0xFF800000> : vector<4x16xf32>
    %62 = vector.multi_reduction <maximumf>, %61, %cst_14 [2] : vector<4x16x16xf32> to vector<4x16xf32>
    %63 = vector.shape_cast %62 : vector<4x16xf32> to vector<4x16x1xf32>
    %64 = vector.broadcast %63 : vector<4x16x1xf32> to vector<4x16x16xf32>
    %65 = arith.subf %61, %64 : vector<4x16x16xf32>
    %66 = math.exp %65 : vector<4x16x16xf32>
    %cst_15 = arith.constant dense<0.000000e+00> : vector<4x16xf32>
    %67 = vector.multi_reduction <add>, %66, %cst_15 [2] : vector<4x16x16xf32> to vector<4x16xf32>
    %68 = vector.shape_cast %67 : vector<4x16xf32> to vector<4x16x1xf32>
    %69 = tpu.reciprocal %68 {approx = true} : vector<4x16x1xf32> -> vector<4x16x1xf32>
    %70 = vector.broadcast %69 : vector<4x16x1xf32> to vector<4x16x16xf32>
    %71 = arith.mulf %66, %70 : vector<4x16x16xf32>
    %72 = arith.truncf %71 : vector<4x16x16xf32> to vector<4x16x16xbf16>
    "tpu.trace_start"() <{level = 10 : i32, message = "hqk,hkd->hqd"}> : () -> ()
    %cst_16 = arith.constant dense<0.000000e+00> : vector<4x16x32xf32>
    %73 = tpu.matmul %72, %60, %cst_16 {dimension_numbers = #tpu.dot_dimension_numbers<[2], [1], [1], [2], [0, 0, 0, 1, 1, 2], [0], [0]>} : vector<4x16x16xbf16>, vector<4x16x32xbf16>, vector<4x16x32xf32> -> vector<4x16x32xf32>
    "tpu.trace_stop"() : () -> ()
    %74 = vector.extract_strided_slice %73 {offsets = [0, 0, 0], sizes = [1, 16, 32], strides = [1, 1, 1]} : vector<4x16x32xf32> to vector<1x16x32xf32>
    %75 = vector.shape_cast %74 : vector<1x16x32xf32> to vector<16x32xf32>
    %76 = vector.extract_strided_slice %73 {offsets = [1, 0, 0], sizes = [1, 16, 32], strides = [1, 1, 1]} : vector<4x16x32xf32> to vector<1x16x32xf32>
    %77 = vector.shape_cast %76 : vector<1x16x32xf32> to vector<16x32xf32>
    %78 = vector.extract_strided_slice %73 {offsets = [2, 0, 0], sizes = [1, 16, 32], strides = [1, 1, 1]} : vector<4x16x32xf32> to vector<1x16x32xf32>
    %79 = vector.shape_cast %78 : vector<1x16x32xf32> to vector<16x32xf32>
    %80 = vector.extract_strided_slice %73 {offsets = [3, 0, 0], sizes = [1, 16, 32], strides = [1, 1, 1]} : vector<4x16x32xf32> to vector<1x16x32xf32>
    %81 = vector.shape_cast %80 : vector<1x16x32xf32> to vector<16x32xf32>
    %82 = tpu.concatenate %75, %77, %79, %81 in 1 : vector<16x32xf32>, vector<16x32xf32>, vector<16x32xf32>, vector<16x32xf32> -> vector<16x128xf32>
    %83 = arith.truncf %82 : vector<16x128xf32> to vector<16x128xbf16>
    %c0_17 = arith.constant 0 : index
    %c0_18 = arith.constant 0 : index
    %84 = vector.load %arg5[%c0_17, %c0_18] : memref<128x128xbf16, #tpu.memory_space<vmem>>, vector<128x128xbf16>
    %cst_19 = arith.constant dense<0.000000e+00> : vector<16x128xf32>
    %85 = tpu.matmul %83, %84, %cst_19 {dimension_numbers = #tpu.dot_dimension_numbers<[1], [0], [0], [1], [0, 0, 1, 1], [], []>} : vector<16x128xbf16>, vector<128x128xbf16>, vector<16x128xf32> -> vector<16x128xf32>
    %c0_20 = arith.constant 0 : index
    %c0_21 = arith.constant 0 : index
    %86 = vector.load %arg6[%c0_20, %c0_21] : memref<1x128xf32, #tpu.memory_space<vmem>>, vector<1x128xf32>
    %87 = vector.broadcast %86 : vector<1x128xf32> to vector<16x128xf32>
    %88 = arith.addf %85, %87 : vector<16x128xf32>
    %89 = arith.addf %1, %88 : vector<16x128xf32>
    %cst_22 = arith.constant dense<0.000000e+00> : vector<16xf32>
    %90 = vector.multi_reduction <add>, %89, %cst_22 [1] : vector<16x128xf32> to vector<16xf32>
    %91 = vector.shape_cast %90 : vector<16xf32> to vector<16x1xf32>
    %cst_23 = arith.constant 1.280000e+02 : f32
    %92 = vector.broadcast %cst_23 : f32 to vector<16x1xf32>
    %93 = arith.divf %91, %92 : vector<16x1xf32>
    %94 = vector.broadcast %93 : vector<16x1xf32> to vector<16x128xf32>
    %95 = arith.subf %89, %94 : vector<16x128xf32>
    %96 = vector.broadcast %93 : vector<16x1xf32> to vector<16x128xf32>
    %97 = arith.subf %89, %96 : vector<16x128xf32>
    %98 = arith.mulf %95, %97 : vector<16x128xf32>
    %cst_24 = arith.constant dense<0.000000e+00> : vector<16xf32>
    %99 = vector.multi_reduction <add>, %98, %cst_24 [1] : vector<16x128xf32> to vector<16xf32>
    %100 = vector.shape_cast %99 : vector<16xf32> to vector<16x1xf32>
    %cst_25 = arith.constant 1.280000e+02 : f32
    %101 = vector.broadcast %cst_25 : f32 to vector<16x1xf32>
    %102 = arith.divf %100, %101 : vector<16x1xf32>
    %103 = vector.broadcast %93 : vector<16x1xf32> to vector<16x128xf32>
    %104 = arith.subf %89, %103 : vector<16x128xf32>
    %cst_26 = arith.constant 9.99999974E-6 : f32
    %105 = vector.broadcast %cst_26 : f32 to vector<16x1xf32>
    %106 = arith.addf %102, %105 : vector<16x1xf32>
    %107 = math.rsqrt %106 : vector<16x1xf32>
    %108 = vector.broadcast %107 : vector<16x1xf32> to vector<16x128xf32>
    %109 = arith.mulf %104, %108 : vector<16x128xf32>
    %c0_27 = arith.constant 0 : index
    %c0_28 = arith.constant 0 : index
    %110 = vector.load %arg7[%c0_27, %c0_28] : memref<1x128xf32, #tpu.memory_space<vmem>>, vector<1x128xf32>
    %111 = vector.broadcast %110 : vector<1x128xf32> to vector<16x128xf32>
    %112 = arith.mulf %109, %111 : vector<16x128xf32>
    %c0_29 = arith.constant 0 : index
    %c0_30 = arith.constant 0 : index
    %113 = vector.load %arg8[%c0_29, %c0_30] : memref<1x128xf32, #tpu.memory_space<vmem>>, vector<1x128xf32>
    %114 = vector.broadcast %113 : vector<1x128xf32> to vector<16x128xf32>
    %115 = arith.addf %112, %114 : vector<16x128xf32>
    %116 = arith.truncf %115 : vector<16x128xf32> to vector<16x128xbf16>
    %c0_31 = arith.constant 0 : index
    %c0_32 = arith.constant 0 : index
    %117 = vector.load %arg9[%c0_31, %c0_32] : memref<128x256xbf16, #tpu.memory_space<vmem>>, vector<128x256xbf16>
    %cst_33 = arith.constant dense<0.000000e+00> : vector<16x256xf32>
    %118 = tpu.matmul %116, %117, %cst_33 {dimension_numbers = #tpu.dot_dimension_numbers<[1], [0], [0], [1], [0, 0, 1, 1], [], []>} : vector<16x128xbf16>, vector<128x256xbf16>, vector<16x256xf32> -> vector<16x256xf32>
    %c0_34 = arith.constant 0 : index
    %c0_35 = arith.constant 0 : index
    %119 = vector.load %arg10[%c0_34, %c0_35] : memref<1x256xf32, #tpu.memory_space<vmem>>, vector<1x256xf32>
    %120 = vector.broadcast %119 : vector<1x256xf32> to vector<16x256xf32>
    %121 = arith.addf %118, %120 : vector<16x256xf32>
    %cst_36 = arith.constant 5.000000e-01 : f32
    %122 = vector.broadcast %cst_36 : f32 to vector<16x256xf32>
    %123 = arith.mulf %122, %121 : vector<16x256xf32>
    %cst_37 = arith.constant 0.707106769 : f32
    %124 = vector.broadcast %cst_37 : f32 to vector<16x256xf32>
    %125 = arith.mulf %121, %124 : vector<16x256xf32>
    %126 = math.erf %125 : vector<16x256xf32>
    %cst_38 = arith.constant 1.000000e+00 : f32
    %127 = vector.broadcast %cst_38 : f32 to vector<16x256xf32>
    %128 = arith.addf %127, %126 : vector<16x256xf32>
    %129 = arith.mulf %123, %128 : vector<16x256xf32>
    %130 = arith.truncf %129 : vector<16x256xf32> to vector<16x256xbf16>
    %c0_39 = arith.constant 0 : index
    %c0_40 = arith.constant 0 : index
    %131 = vector.load %arg11[%c0_39, %c0_40] : memref<256x128xbf16, #tpu.memory_space<vmem>>, vector<256x128xbf16>
    %cst_41 = arith.constant dense<0.000000e+00> : vector<16x128xf32>
    %132 = tpu.matmul %130, %131, %cst_41 {dimension_numbers = #tpu.dot_dimension_numbers<[1], [0], [0], [1], [0, 0, 1, 1], [], []>} : vector<16x256xbf16>, vector<256x128xbf16>, vector<16x128xf32> -> vector<16x128xf32>
    %c0_42 = arith.constant 0 : index
    %c0_43 = arith.constant 0 : index
    %133 = vector.load %arg12[%c0_42, %c0_43] : memref<1x128xf32, #tpu.memory_space<vmem>>, vector<1x128xf32>
    %134 = vector.broadcast %133 : vector<1x128xf32> to vector<16x128xf32>
    %135 = arith.addf %132, %134 : vector<16x128xf32>
    %136 = arith.addf %89, %135 : vector<16x128xf32>
    %137 = vector.shape_cast %136 : vector<16x128xf32> to vector<1x16x128xf32>
    %c0_44 = arith.constant 0 : index
    %c0_45 = arith.constant 0 : index
    %c0_46 = arith.constant 0 : index
    %138 = vector.load %arg13[%c0_44, %c0_45, %c0_46] : memref<1x16x128xf32, #tpu.memory_space<vmem>>, vector<1x16x128xf32>
    tpu.vector_store %arg13[%c0_44, %c0_45, %c0_46], %137 {strides = array<i32>} : memref<1x16x128xf32, #tpu.memory_space<vmem>>, vector<1x16x128xf32>,
    return
  }
  func.func @transform_0(%arg0: i32) -> (i32, i32, i32) {
    %c0_i32 = arith.constant 0 : i32
    %c0_i32_0 = arith.constant 0 : i32
    %c0_i32_1 = arith.constant 0 : i32
    return %arg0, %c0_i32, %c0_i32_0 : i32, i32, i32
  }
  func.func @transform_1(%arg0: i32) -> (i32, i32) {
    %c0_i32 = arith.constant 0 : i32
    %c0_i32_0 = arith.constant 0 : i32
    %c0_i32_1 = arith.constant 0 : i32
    return %c0_i32, %c0_i32_0 : i32, i32
  }
  func.func @transform_2(%arg0: i32) -> (i32, i32) {
    %c0_i32 = arith.constant 0 : i32
    %c0_i32_0 = arith.constant 0 : i32
    %c0_i32_1 = arith.constant 0 : i32
    return %c0_i32, %c0_i32_0 : i32, i32
  }
  func.func @transform_3(%arg0: i32) -> (i32, i32) {
    %c0_i32 = arith.constant 0 : i32
    %c0_i32_0 = arith.constant 0 : i32
    %c0_i32_1 = arith.constant 0 : i32
    return %c0_i32, %c0_i32_0 : i32, i32
  }
  func.func @transform_4(%arg0: i32) -> (i32, i32) {
    %c0_i32 = arith.constant 0 : i32
    %c0_i32_0 = arith.constant 0 : i32
    %c0_i32_1 = arith.constant 0 : i32
    return %c0_i32, %c0_i32_0 : i32, i32
  }
  func.func @transform_5(%arg0: i32) -> (i32, i32) {
    %c0_i32 = arith.constant 0 : i32
    %c0_i32_0 = arith.constant 0 : i32
    %c0_i32_1 = arith.constant 0 : i32
    return %c0_i32, %c0_i32_0 : i32, i32
  }
  func.func @transform_6(%arg0: i32) -> (i32, i32) {
    %c0_i32 = arith.constant 0 : i32
    %c0_i32_0 = arith.constant 0 : i32
    %c0_i32_1 = arith.constant 0 : i32
    return %c0_i32, %c0_i32_0 : i32, i32
  }
  func.func @transform_7(%arg0: i32) -> (i32, i32) {
    %c0_i32 = arith.constant 0 : i32
    %c0_i32_0 = arith.constant 0 : i32
    %c0_i32_1 = arith.constant 0 : i32
    return %c0_i32, %c0_i32_0 : i32, i32
  }
  func.func @transform_8(%arg0: i32) -> (i32, i32) {
    %c0_i32 = arith.constant 0 : i32
    %c0_i32_0 = arith.constant 0 : i32
    %c0_i32_1 = arith.constant 0 : i32
    return %c0_i32, %c0_i32_0 : i32, i32
  }
  func.func @transform_9(%arg0: i32) -> (i32, i32) {
    %c0_i32 = arith.constant 0 : i32
    %c0_i32_0 = arith.constant 0 : i32
    %c0_i32_1 = arith.constant 0 : i32
    return %c0_i32, %c0_i32_0 : i32, i32
  }
  func.func @transform_10(%arg0: i32) -> (i32, i32) {
    %c0_i32 = arith.constant 0 : i32
    %c0_i32_0 = arith.constant 0 : i32
    %c0_i32_1 = arith.constant 0 : i32
    return %c0_i32, %c0_i32_0 : i32, i32
  }
  func.func @transform_11(%arg0: i32) -> (i32, i32) {
    %c0_i32 = arith.constant 0 : i32
    %c0_i32_0 = arith.constant 0 : i32
    %c0_i32_1 = arith.constant 0 : i32
    return %c0_i32, %c0_i32_0 : i32, i32
  }
  func.func @transform_12(%arg0: i32) -> (i32, i32, i32) {
    %c0_i32 = arith.constant 0 : i32
    %c0_i32_0 = arith.constant 0 : i32
    %c0_i32_1 = arith.constant 0 : i32
    return %arg0, %c0_i32, %c0_i32_0 : i32, i32, i32
  }
}

</mosaic_0001>

<bundles_post_ra>
// kernel: tpu_custom_call.1
= control target key start
LH: loop header
LB: loop body
LE: loop exit
PB: predicated region body
PF: predicated region fallthrough
CT: control target
= control target key end

     0   :  { %s3845_s0 = inlined_call_operand.hbm [shape: f32[2,16,128], index: 0, kind: input, shape index: {}]   ;;  %s3846_s1 = inlined_call_operand.hbm [shape: f32[1,128], index: 1, kind: input, shape index: {}]   ;;  %s3847_s2 = inlined_call_operand.hbm [shape: f32[1,128], index: 2, kind: input, shape index: {}]   ;;  %s3848_s3 = inlined_call_operand.hbm [shape: bf16[128,384], index: 3, kind: input, shape index: {}]   ;;  %s3849_s4 = inlined_call_operand.hbm [shape: bf16[128,128], index: 4, kind: input, shape index: {}]   ;;  %s3850_s5 = inlined_call_operand.hbm [shape: f32[1,128], index: 5, kind: input, shape index: {}]   ;;  %s3851_s6 = inlined_call_operand.hbm [shape: f32[1,128], index: 6, kind: input, shape index: {}]   ;;  %s3852_s7 = inlined_call_operand.hbm [shape: f32[1,128], index: 7, kind: input, shape index: {}]   ;;  %s3853_s8 = inlined_call_operand.hbm [shape: bf16[128,256], index: 8, kind: input, shape index: {}]   ;;  %s3854_s9 = inlined_call_operand.hbm [shape: f32[1,256], index: 9, kind: input, shape index: {}]   ;;  %s3855_s10 = inlined_call_operand.hbm [shape: bf16[256,128], index: 10, kind: input, shape index: {}]   ;;  %s3856_s11 = inlined_call_operand.hbm [shape: f32[1,128], index: 11, kind: input, shape index: {}]   ;;  %s3857_s12 = inlined_call_operand.hbm [shape: f32[2,16,128], index: 12, kind: output, shape index: {}]  }
   0x1   :  { %3865 = sst [smem:[#allocation32_spill]] %s3846_s1 }
   0x2   :  { %3866 = sst [smem:[#allocation33_spill]] %s3847_s2 }
   0x3   :  { %3867 = sst [smem:[#allocation34_spill]] %s3848_s3 }
   0x4   :  { %3868 = sst [smem:[#allocation35_spill]] %s3850_s5 }
   0x5   :  { %3869 = sst [smem:[#allocation36_spill]] %s3857_s12 }
   0x6   :  { %17 = vsyncpa [#allocation3], 0 }
   0x7   :  { %19 = vsyncpa [#allocation3 + $0x1], 0 }
   0x8   :  { %20 = vsyncpa [#allocation6], 0 }
   0x9   :  { %21 = vsyncpa [#allocation9], 0 }
   0xa   :  { %22 = vsyncpa [#allocation12], 0 }
   0xb   :  { %23 = vsyncpa [#allocation15], 0 }
   0xc   :  { %24 = vsyncpa [#allocation18], 0 }
   0xd   :  { %25 = vsyncpa [#allocation21], 0 }
   0xe   :  { %26 = vsyncpa [#allocation4], 0 }
   0xf   :  { %28 = vsyncpa [#allocation4 + $0x1], 0  ;;  %s3271_s21 = smov 0   ;;  %s3273_s22 = smov 0  }
  0x10   :  { %s3275_s23 = smov 0   ;;  %s3277_s24 = smov 0  }
  0x11 LB: > { %s3179_s25 = smov [#allocation5]   ;;  %s3292_s27 = sadd.s32 4294967295, %s3177_s24   ;;  %s3177_s24 = sphi %s3277_s24, %s3906_s24   ;;  %s3173_s23 = sphi %s3275_s23, %s3905_s23   ;;  %s3169_s22 = sphi %s3273_s22, %s3904_s22   ;;  %s3165_s21 = sphi %s3271_s21, %s3903_s21  }
  0x12   : > { %s335_s26 = sshll.u32 %s3179_s25, 4  ;;  %p2131_p0 = scmp.ge.s32.totalorder %s3177_s24, 1  ;;  %s3297_s26 = int_to_ptr.vmem [resolvable:$true] %s335_s26 }
  0x13   : > { %p3860_p1 = scmp.eq.s32.totalorder %s3292_s27, 0  ;;  %p322_p2 = scmp.lt.s32.totalorder %s3177_s24, 3 }
  0x14   : > { %s3180_s29 = smov [#allocation8]   ;;  %s3181_s14 = smov [#allocation11]  }
  0x15   : > { %p3299_p3 = pnand %p2131_p0, %p322_p2  ;;  %s356_s30 = sshll.u32 %s3180_s29, 4  ;;  %s3306_s30 = int_to_ptr.vmem [resolvable:$true] %s356_s30 }
  0x16   : > { %s383_s15 = sshll.u32 %s3181_s14, 4  ;;  %s3873_s1 = sld [smem:[#allocation32_spill]]  ;;  %s3314_s15 = int_to_ptr.vmem [resolvable:$true] %s383_s15 }
  0x17   : > { %s3870_s28 = scalar_select %p3299_p3, 1, 0 }
  0x18   : > { %p2438_p5 = pneg %p3299_p3 }
  0x19   : > { %3871 = sst [smem:[#allocation31_spill]] %s3870_s28 }
  0x1a   : > { %p3310_p6 = pnand %p2438_p5, %p3860_p1 }
  0x1c   : > { %s2749_s18 = scalar_lea.hbm %s3873_s1, 16  ;;  %p3324_p8 = pneg %p3310_p6 }
  0x1d   : > { %p2750_p7 = scmp.ne.s32.totalorder %s3873_s1, %s2749_s18  ;;  %p2756_p11 = scmp.lt.u32.totalorder %s2749_s18, %s3873_s1 }
  0x1f   : > { %p2752_p9 = pnand %p3324_p8, %p2750_p7 }
  0x21   : > { %p2753_p10 = pneg %p2752_p9 }
  0x23   : > { %p2758_p12 = pnand %p2756_p11, %p2753_p10 }
  0x25   : > { %2761 = shalt.err (!%p2758_p12)
}
  0x26   : > { %s2762_s16 = scalar_lea.vmem %s3297_s26, 16  ;;  %s2769_s17 = scalar_lea.vmem %s3297_s26, 32 }
  0x27   : > { %p2763_p13 = scmp.ne.s32.totalorder %s3297_s26, %s2762_s16  ;;  %p2770_p5 = scmp.lt.s32.totalorder %s3297_s26, %s3297_s26 }
  0x28   : > { %p2771_p7 = scmp.lt.s32.totalorder %s2769_s17, %s2762_s16 }
  0x29   : > { %p2765_p0 = pnand %p2763_p13, %p3324_p8 }
  0x2a   : > { %p2772_p9 = por %p2771_p7, %p2770_p5 }
  0x2b   : > { %p2766_p2 = pneg %p2765_p0 }
  0x2d   : > { %p2773_p4 = pnand %p2772_p9, %p2766_p2 }
  0x2f   : > { %2776 = shalt.err (!%p2773_p4)
}
  0x30   : > { %2441 = dma.hbm_to_vmem [thread:$0]  (!%p3310_p6), %s3873_s1, 16, %s3297_s26, [#allocation6]  }
  0x31   : > { %s3875_s3 = sld [smem:[#allocation34_spill]] }
  0x37   : > { %s2777_s14 = scalar_lea.hbm %s3875_s3, 3072 }
  0x38   : > { %p2778_p10 = scmp.ne.s32.totalorder %s3875_s3, %s2777_s14  ;;  %p2784_p4 = scmp.lt.u32.totalorder %s2777_s14, %s3875_s3 }
  0x3a   : > { %p2780_p11 = pnand %p2778_p10, %p3324_p8 }
  0x3c   : > { %p2781_p12 = pneg %p2780_p11 }
  0x3e   : > { %p2786_p13 = pnand %p2784_p4, %p2781_p12 }
  0x40   : > { %2789 = shalt.err (!%p2786_p13)
}
  0x41   : > { %s2790_s26 = scalar_lea.vmem %s3306_s30, 3072  ;;  %p2798_p7 = scmp.lt.s32.totalorder %s3306_s30, %s3306_s30 }
  0x42   : > { %p2791_p0 = scmp.ne.s32.totalorder %s3306_s30, %s2790_s26  ;;  %p2799_p9 = scmp.lt.s32.totalorder %s2790_s26, %s2790_s26 }
  0x44   : > { %p2793_p2 = pnand %p2791_p0, %p3324_p8  ;;  %p2800_p10 = por %p2799_p9, %p2798_p7 }
  0x46   : > { %p2794_p5 = pneg %p2793_p2 }
  0x48   : > { %p2801_p11 = pnand %p2800_p10, %p2794_p5 }
  0x4a   : > { %2804 = shalt.err (!%p2801_p11)
}
  0x4b   : > { %s3182_s12 = smov 192   ;;  %s3183_s28 = smov 12  }
  0x4c   : > { %2447 = dma.hbm_to_vmem [thread:$0]  (!%p3310_p6), %s3875_s3, 3072, %s3306_s30, [#allocation9], %s3182_s12, %s3182_s12, %s3183_s28  }
  0x4d   : > { %s3876_s5 = sld [smem:[#allocation35_spill]] }
  0x53   : > { %s2805_s14 = scalar_lea.hbm %s3876_s5, 16 }
  0x54   : > { %p2806_p12 = scmp.ne.s32.totalorder %s3876_s5, %s2805_s14  ;;  %p2812_p0 = scmp.lt.u32.totalorder %s2805_s14, %s3876_s5 }
  0x56   : > { %p2808_p4 = pnand %p2806_p12, %p3324_p8 }
  0x58   : > { %p2809_p13 = pneg %p2808_p4 }
  0x5a   : > { %p2814_p2 = pnand %p2812_p0, %p2809_p13 }
  0x5c   : > { %2817 = shalt.err (!%p2814_p2)
}
  0x5d   : > { %s2818_s30 = scalar_lea.vmem %s3314_s15, 16  ;;  %s2825_s12 = scalar_lea.vmem %s3314_s15, 32 }
  0x5e   : > { %p2819_p5 = scmp.ne.s32.totalorder %s3314_s15, %s2818_s30  ;;  %p2826_p10 = scmp.lt.s32.totalorder %s3314_s15, %s3314_s15 }
  0x5f   : > { %p2827_p11 = scmp.lt.s32.totalorder %s2825_s12, %s2818_s30 }
  0x60   : > { %p2821_p7 = pnand %p2819_p5, %p3324_p8 }
  0x61   : > { %p2828_p12 = por %p2827_p11, %p2826_p10 }
  0x62   : > { %p2822_p9 = pneg %p2821_p7 }
  0x64   : > { %p2829_p4 = pnand %p2828_p12, %p2822_p9 }
  0x66   : > { %2832 = shalt.err (!%p2829_p4)
}
  0x67   : > { %2453 = dma.hbm_to_vmem [thread:$0]  (!%p3310_p6), %s3876_s5, 16, %s3314_s15, [#allocation12]  }
  0x68   : > { %s3184_s18 = smov [#allocation14]   ;;  %s3185_s20 = smov [#allocation17]  }
  0x69   : > { %s405_s19 = sshll.u32 %s3184_s18, 4  ;;  %s429_s29 = sshll.u32 %s3185_s20, 4  ;;  %s406_s19 = int_to_ptr.vmem [resolvable:$true] %s405_s19  ;;  %s430_s29 = int_to_ptr.vmem [resolvable:$true] %s429_s29 }
  0x6a   : > { %s2833_s17 = scalar_lea.hbm %s3852_s7, 16 }
  0x6b   : > { %p2834_p13 = scmp.ne.s32.totalorder %s3852_s7, %s2833_s17  ;;  %p2840_p5 = scmp.lt.u32.totalorder %s2833_s17, %s3852_s7 }
  0x6d   : > { %p2836_p0 = pnand %p2834_p13, %p3324_p8 }
  0x6f   : > { %p2837_p2 = pneg %p2836_p0 }
  0x71   : > { %p2842_p7 = pnand %p2840_p5, %p2837_p2 }
  0x73   : > { %2845 = shalt.err (!%p2842_p7)
}
  0x74   : > { %s2846_s15 = scalar_lea.vmem %s406_s19, 16  ;;  %s2853_s28 = scalar_lea.vmem %s406_s19, 32 }
  0x75   : > { %p2847_p9 = scmp.ne.s32.totalorder %s406_s19, %s2846_s15  ;;  %p2854_p12 = scmp.lt.s32.totalorder %s406_s19, %s406_s19 }
  0x76   : > { %p2855_p4 = scmp.lt.s32.totalorder %s2853_s28, %s2846_s15 }
  0x77   : > { %p2849_p10 = pnand %p2847_p9, %p3324_p8 }
  0x78   : > { %p2856_p1 = por %p2855_p4, %p2854_p12 }
  0x79   : > { %p2850_p11 = pneg %p2849_p10 }
  0x7b   : > { %p2857_p3 = pnand %p2856_p1, %p2850_p11 }
  0x7d   : > { %2860 = shalt.err (!%p2857_p3)
}
  0x7e   : > { %2459 = dma.hbm_to_vmem [thread:$0]  (!%p3310_p6), %s3852_s7, 16, %s406_s19, [#allocation15]  }
  0x7f   : > { %s2861_s17 = scalar_lea.hbm %s3854_s9, 32 }
  0x80   : > { %p2862_p13 = scmp.ne.s32.totalorder %s3854_s9, %s2861_s17  ;;  %p2868_p3 = scmp.lt.u32.totalorder %s2861_s17, %s3854_s9 }
  0x82   : > { %p2864_p0 = pnand %p2862_p13, %p3324_p8 }
  0x84   : > { %p2865_p1 = pneg %p2864_p0 }
  0x86   : > { %p2870_p2 = pnand %p2868_p3, %p2865_p1 }
  0x88   : > { %2873 = shalt.err (!%p2870_p2)
}
  0x89   : > { %s2874_s15 = scalar_lea.vmem %s430_s29, 32  ;;  %p2882_p10 = scmp.lt.s32.totalorder %s430_s29, %s430_s29 }
  0x8a   : > { %p2875_p5 = scmp.ne.s32.totalorder %s430_s29, %s2874_s15  ;;  %p2883_p11 = scmp.lt.s32.totalorder %s2874_s15, %s2874_s15 }
  0x8c   : > { %p2877_p7 = pnand %p2875_p5, %p3324_p8  ;;  %p2884_p12 = por %p2883_p11, %p2882_p10 }
  0x8e   : > { %p2878_p9 = pneg %p2877_p7 }
  0x90   : > { %p2885_p4 = pnand %p2884_p12, %p2878_p9 }
  0x92   : > { %2888 = shalt.err (!%p2885_p4)
}
  0x93   : > { %2465 = dma.hbm_to_vmem [thread:$0]  (!%p3310_p6), %s3854_s9, 32, %s430_s29, [#allocation18]  }
  0x94   : > { %s3186_s18 = smov [#allocation7]   ;;  %s3187_s14 = smov [#allocation10]  }
  0x95   : > { %s346_s20 = sshll.u32 %s3186_s18, 4  ;;  %s369_s16 = sshll.u32 %s3187_s14, 4  ;;  %s347_s20 = int_to_ptr.vmem [resolvable:$true] %s346_s20  ;;  %s370_s16 = int_to_ptr.vmem [resolvable:$true] %s369_s16 }
  0x96   : > { %s3877_s2 = sld [smem:[#allocation33_spill]] }
  0x9c   : > { %s2889_s30 = scalar_lea.hbm %s3877_s2, 16 }
  0x9d   : > { %p2890_p13 = scmp.ne.s32.totalorder %s3877_s2, %s2889_s30  ;;  %p2896_p3 = scmp.lt.u32.totalorder %s2889_s30, %s3877_s2 }
  0x9f   : > { %p2892_p0 = pnand %p2890_p13, %p3324_p8 }
  0xa1   : > { %p2893_p1 = pneg %p2892_p0 }
  0xa3   : > { %p2898_p2 = pnand %p2896_p3, %p2893_p1 }
  0xa5   : > { %2901 = shalt.err (!%p2898_p2)
}
  0xa6   : > { %s2902_s29 = scalar_lea.vmem %s347_s20, 16  ;;  %s2909_s28 = scalar_lea.vmem %s347_s20, 32 }
  0xa7   : > { %p2903_p5 = scmp.ne.s32.totalorder %s347_s20, %s2902_s29  ;;  %p2910_p10 = scmp.lt.s32.totalorder %s347_s20, %s347_s20 }
  0xa8   : > { %p2911_p11 = scmp.lt.s32.totalorder %s2909_s28, %s2902_s29 }
  0xa9   : > { %p2905_p7 = pnand %p2903_p5, %p3324_p8 }
  0xaa   : > { %p2912_p12 = por %p2911_p11, %p2910_p10 }
  0xab   : > { %p2906_p9 = pneg %p2905_p7 }
  0xad   : > { %p2913_p4 = pnand %p2912_p12, %p2906_p9 }
  0xaf   : > { %2916 = shalt.err (!%p2913_p4)
}
  0xb0   : > { %2444 = dma.hbm_to_vmem [thread:$0]  (!%p3310_p6), %s3877_s2, 16, %s347_s20, [#allocation6]  }
  0xb1   : > { %s2917_s30 = scalar_lea.hbm %s3849_s4, 1024 }
  0xb2   : > { %p2918_p13 = scmp.ne.s32.totalorder %s3849_s4, %s2917_s30  ;;  %p2924_p3 = scmp.lt.u32.totalorder %s2917_s30, %s3849_s4 }
  0xb4   : > { %p2920_p0 = pnand %p2918_p13, %p3324_p8 }
  0xb6   : > { %p2921_p1 = pneg %p2920_p0 }
  0xb8   : > { %p2926_p2 = pnand %p2924_p3, %p2921_p1 }
  0xba   : > { %2929 = shalt.err (!%p2926_p2)
}
  0xbb   : > { %s2930_s29 = scalar_lea.vmem %s370_s16, 1024  ;;  %p2938_p10 = scmp.lt.s32.totalorder %s370_s16, %s370_s16 }
  0xbc   : > { %p2931_p5 = scmp.ne.s32.totalorder %s370_s16, %s2930_s29  ;;  %p2939_p11 = scmp.lt.s32.totalorder %s2930_s29, %s2930_s29 }
  0xbe   : > { %p2933_p7 = pnand %p2931_p5, %p3324_p8  ;;  %p2940_p12 = por %p2939_p11, %p2938_p10 }
  0xc0   : > { %p2934_p9 = pneg %p2933_p7 }
  0xc2   : > { %p2941_p4 = pnand %p2940_p12, %p2934_p9 }
  0xc4   : > { %2944 = shalt.err (!%p2941_p4)
}
  0xc5   : > { %s3862_s20 = smov 64   ;;  %s3863_s28 = smov 4  }
  0xc6   : > { %2450 = dma.hbm_to_vmem [thread:$0]  (!%p3310_p6), %s3849_s4, 1024, %s370_s16, [#allocation9], %s3862_s20, %s3862_s20, %s3863_s28  }
  0xc7   : > { %s3190_s17 = smov [#allocation13]   ;;  %s3191_s30 = smov [#allocation16]  }
  0xc8   : > { %s394_s26 = sshll.u32 %s3190_s17, 4  ;;  %s415_s12 = sshll.u32 %s3191_s30, 4  ;;  %s395_s26 = int_to_ptr.vmem [resolvable:$true] %s394_s26  ;;  %s416_s12 = int_to_ptr.vmem [resolvable:$true] %s415_s12 }
  0xc9   : > { %s2945_s19 = scalar_lea.hbm %s3851_s6, 16 }
  0xca   : > { %p2946_p13 = scmp.ne.s32.totalorder %s3851_s6, %s2945_s19  ;;  %p2952_p3 = scmp.lt.u32.totalorder %s2945_s19, %s3851_s6 }
  0xcc   : > { %p2948_p0 = pnand %p2946_p13, %p3324_p8 }
  0xce   : > { %p2949_p1 = pneg %p2948_p0 }
  0xd0   : > { %p2954_p2 = pnand %p2952_p3, %p2949_p1 }
  0xd2   : > { %2957 = shalt.err (!%p2954_p2)
}
  0xd3   : > { %s2958_s16 = scalar_lea.vmem %s395_s26, 16  ;;  %s2965_s18 = scalar_lea.vmem %s395_s26, 32 }
  0xd4   : > { %p2959_p5 = scmp.ne.s32.totalorder %s395_s26, %s2958_s16  ;;  %p2966_p10 = scmp.lt.s32.totalorder %s395_s26, %s395_s26 }
  0xd5   : > { %p2967_p11 = scmp.lt.s32.totalorder %s2965_s18, %s2958_s16 }
  0xd6   : > { %p2961_p7 = pnand %p2959_p5, %p3324_p8 }
  0xd7   : > { %p2968_p12 = por %p2967_p11, %p2966_p10 }
  0xd8   : > { %p2962_p9 = pneg %p2961_p7 }
  0xda   : > { %p2969_p4 = pnand %p2968_p12, %p2962_p9 }
  0xdc   : > { %2972 = shalt.err (!%p2969_p4)
}
  0xdd   : > { %2456 = dma.hbm_to_vmem [thread:$0]  (!%p3310_p6), %s3851_s6, 16, %s395_s26, [#allocation12]  }
  0xde   : > { %s2973_s17 = scalar_lea.hbm %s3853_s8, 2048 }
  0xdf   : > { %p2974_p13 = scmp.ne.s32.totalorder %s3853_s8, %s2973_s17  ;;  %p2980_p3 = scmp.lt.u32.totalorder %s2973_s17, %s3853_s8 }
  0xe1   : > { %p2976_p0 = pnand %p2974_p13, %p3324_p8 }
  0xe3   : > { %p2977_p1 = pneg %p2976_p0 }
  0xe5   : > { %p2982_p2 = pnand %p2980_p3, %p2977_p1 }
  0xe7   : > { %2985 = shalt.err (!%p2982_p2)
}
  0xe8   : > { %s2986_s29 = scalar_lea.vmem %s416_s12, 2048  ;;  %p2994_p10 = scmp.lt.s32.totalorder %s416_s12, %s416_s12 }
  0xe9   : > { %p2987_p5 = scmp.ne.s32.totalorder %s416_s12, %s2986_s29  ;;  %p2995_p11 = scmp.lt.s32.totalorder %s2986_s29, %s2986_s29 }
  0xeb   : > { %p2989_p7 = pnand %p2987_p5, %p3324_p8  ;;  %p2996_p12 = por %p2995_p11, %p2994_p10 }
  0xed   : > { %p2990_p9 = pneg %p2989_p7 }
  0xef   : > { %p2997_p4 = pnand %p2996_p12, %p2990_p9 }
  0xf1   : > { %3000 = shalt.err (!%p2997_p4)
}
  0xf2   : > { %s3192_s26 = smov 128   ;;  %s3193_s16 = smov 8  }
  0xf3   : > { %2462 = dma.hbm_to_vmem [thread:$0]  (!%p3310_p6), %s3853_s8, 2048, %s416_s12, [#allocation15], %s3192_s26, %s3192_s26, %s3193_s16  }
  0xf4   : > { %s3194_s14 = smov [#allocation19]   ;;  %s3195_s5 = smov [#allocation20]  }
  0xf5   : > { %s439_s3 = sshll.u32 %s3194_s14, 4  ;;  %s453_s17 = sshll.u32 %s3195_s5, 4  ;;  %s440_s3 = int_to_ptr.vmem [resolvable:$true] %s439_s3  ;;  %s454_s17 = int_to_ptr.vmem [resolvable:$true] %s453_s17 }
  0xf6   : > { %s3001_s15 = scalar_lea.hbm %s3855_s10, 2048 }
  0xf7   : > { %p3002_p13 = scmp.ne.s32.totalorder %s3855_s10, %s3001_s15  ;;  %p3008_p3 = scmp.lt.u32.totalorder %s3001_s15, %s3855_s10 }
  0xf9   : > { %p3004_p0 = pnand %p3002_p13, %p3324_p8 }
  0xfb   : > { %p3005_p1 = pneg %p3004_p0 }
  0xfd   : > { %p3010_p2 = pnand %p3008_p3, %p3005_p1 }
  0xff   : > { %3013 = shalt.err (!%p3010_p2)
}
 0x100   : > { %s3014_s12 = scalar_lea.vmem %s440_s3, 2048  ;;  %p3022_p10 = scmp.lt.s32.totalorder %s440_s3, %s440_s3 }
 0x101   : > { %p3015_p5 = scmp.ne.s32.totalorder %s440_s3, %s3014_s12  ;;  %p3023_p11 = scmp.lt.s32.totalorder %s3014_s12, %s3014_s12 }
 0x103   : > { %p3017_p7 = pnand %p3015_p5, %p3324_p8  ;;  %p3024_p12 = por %p3023_p11, %p3022_p10 }
 0x105   : > { %p3018_p9 = pneg %p3017_p7 }
 0x107   : > { %p3025_p4 = pnand %p3024_p12, %p3018_p9 }
 0x109   : > { %3028 = shalt.err (!%p3025_p4)
}
 0x10a   : > { %s3878_s18 = smov 4   ;;  %s3879_s2 = smov 64  }
 0x10b   : > { %2468 = dma.hbm_to_vmem [thread:$0]  (!%p3310_p6), %s3855_s10, 2048, %s440_s3, [#allocation18], %s3879_s2, %s3879_s2, %s3878_s18  }
 0x10c   : > { %s3029_s30 = scalar_lea.hbm %s3856_s11, 16 }
 0x10d   : > { %p3030_p13 = scmp.ne.s32.totalorder %s3856_s11, %s3029_s30  ;;  %p3036_p3 = scmp.lt.u32.totalorder %s3029_s30, %s3856_s11 }
 0x10f   : > { %p3032_p0 = pnand %p3030_p13, %p3324_p8 }
 0x111   : > { %p3033_p1 = pneg %p3032_p0 }
 0x113   : > { %p3038_p2 = pnand %p3036_p3, %p3033_p1 }
 0x115   : > { %3041 = shalt.err (!%p3038_p2)
}
 0x116   : > { %s3042_s12 = scalar_lea.vmem %s454_s17, 16  ;;  %s3049_s3 = scalar_lea.vmem %s454_s17, 32 }
 0x117   : > { %p3043_p5 = scmp.ne.s32.totalorder %s454_s17, %s3042_s12  ;;  %p3050_p10 = scmp.lt.s32.totalorder %s454_s17, %s454_s17 }
 0x118   : > { %p3051_p11 = scmp.lt.s32.totalorder %s3049_s3, %s3042_s12 }
 0x119   : > { %p3045_p7 = pnand %p3043_p5, %p3324_p8 }
 0x11a   : > { %p3052_p12 = por %p3051_p11, %p3050_p10 }
 0x11b   : > { %p3046_p9 = pneg %p3045_p7 }
 0x11d   : > { %p3053_p4 = pnand %p3052_p12, %p3046_p9 }
 0x11f   : > { %3056 = shalt.err (!%p3053_p4)
}
 0x120   : > { %2471 = dma.hbm_to_vmem [thread:$0]  (!%p3310_p6), %s3856_s11, 16, %s454_s17, [#allocation21]  }
 0x121   : > { %s2130_s25 = sadd.s32 4294967294, %s3177_s24   ;;  %s3548_s13 = sadd.s32 1, %s3177_s24  }
 0x122   : > { %s41_s20 = sadd.s32 1, %s3173_s23  ;;  %s38_s28 = ssub.s32 %s3177_s24, %s3548_s13 }
 0x123   : > { %p48_p8 = scmp.ne.s32.totalorder %s3173_s23, %s3169_s22  ;;  %p39_p13 = scmp.eq.s32.totalorder %s38_s28, 0 }
 0x124   : > { %p49_p0 = scmp.eq.s32.totalorder %s3177_s24, 0  ;;  %p54_p1 = scmp.ne.s32.totalorder %s3169_s22, %s3165_s21 }
 0x125   : > { %p309_p3 = scmp.eq.s32.totalorder %s3292_s27, 1  ;;  %p3880_p5 = scmp.eq.s32.totalorder %s3292_s27, 0 }
 0x126   : > { %s3560_s14 = scalar_select %p39_p13, %s3173_s23, %s41_s20  }
 0x127   : > { %p50_p2 = por %p49_p0, %p48_p8  ;;  %p3564_p7 = por %p3880_p5, %p54_p1 }
 0x128   : > { %p3568_p6 = por %p309_p3, %p48_p8  ;;  %p315_p9 = scmp.eq.s32.totalorder %s2130_s25, 1 }
 0x129   : > { %p2491_p10 = scmp.lt.s32.totalorder %s3177_s24, 2  ;;  %s464_s30 = sand.u32 1, %s3173_s23  }
 0x12a   : > { %s3882_s17 = scalar_select %p3568_p6, 1, 0 }
 0x12b   : > { %p3574_p11 = por %p315_p9, %p54_p1  ;;  %s2144_s15 = sshll.u32 %s464_s30, 4 }
 0x12c   : > { %s2244_s19 = sshll.u32 %s3177_s24, 8  ;;  %s468_s18 = scalar_lea.vmem [#allocation2], %s2144_s15 }
 0x12d   : > { %s3883_s1 = scalar_select %p3574_p11, 1, 0 }
 0x12e   : > { %s3582_s3 = scalar_lea.hbm %s3845_s0, %s2244_s19  ;;  %s475_s2 = sshll.u32 %s468_s18, 4  ;;  %s3588_s2 = int_to_ptr.vmem [resolvable:$true] %s475_s2 }
 0x12f   : > { %p3584_p12 = pnand %p2491_p10, %p50_p2  ;;  %s3590_s20 = scalar_lea.sflag [#allocation3], %s464_s30 }
 0x130   : > { %s3057_s28 = scalar_lea.hbm %s3582_s3, 256  ;;  %s3062_s29 = scalar_lea.hbm %s3845_s0, 512 }
 0x131   : > { %p3058_p4 = scmp.ne.s32.totalorder %s3582_s3, %s3057_s28  ;;  %p3059_p8 = pneg %p3584_p12 }
 0x132   : > { %p3063_p1 = scmp.lt.u32.totalorder %s3582_s3, %s3845_s0  ;;  %p3064_p3 = scmp.lt.u32.totalorder %s3062_s29, %s3057_s28 }
 0x133   : > { %p3060_p13 = pnand %p3059_p8, %p3058_p4  ;;  %p3066_p5 = scmp.lt.u32.totalorder %s3057_s28, %s3582_s3 }
 0x134   : > { %p3065_p2 = por %p3064_p3, %p3063_p1 }
 0x135   : > { %p3061_p0 = pneg %p3060_p13 }
 0x136   : > { %p3067_p9 = por %p3066_p5, %p3065_p2 }
 0x138   : > { %p3068_p10 = pnand %p3067_p9, %p3061_p0 }
 0x13a   : > { %3071 = shalt.err (!%p3068_p10)
}
 0x13b   : > { %s3072_s30 = scalar_lea.vmem %s3588_s2, 256  ;;  %s3196_s15 = smov [#allocation2]  }
 0x13c   : > { %p3073_p4 = scmp.ne.s32.totalorder %s3588_s2, %s3072_s30  ;;  %s3077_s19 = sshll.u32 %s3196_s15, 4  ;;  %s3078_s19 = int_to_ptr.vmem [resolvable:$false] %s3077_s19 }
 0x13d   : > { %s3079_s12 = scalar_lea.vmem %s3078_s19, 512  ;;  %p3080_p6 = scmp.lt.s32.totalorder %s3588_s2, %s3078_s19 }
 0x13e   : > { %p3075_p13 = pnand %p3073_p4, %p3059_p8  ;;  %p3081_p1 = scmp.lt.s32.totalorder %s3079_s12, %s3072_s30 }
 0x140   : > { %p3076_p11 = pneg %p3075_p13  ;;  %p3082_p3 = por %p3081_p1, %p3080_p6 }
 0x142   : > { %p3083_p2 = pnand %p3082_p3, %p3076_p11 }
 0x144   : > { %3086 = shalt.err (!%p3083_p2)
}
 0x145   : > { %2475 = dma.hbm_to_vmem [thread:$0]  (!%p3584_p12), %s3582_s3, 256, %s3588_s2, %s3590_s20, %s3192_s26, %s3192_s26, %s3193_s16  }
 0x146   : > { %s3885_s28 = sld [smem:[#allocation31_spill]] }
 0x14c   : > { %p3886_p8 = scmp.ne.s32.totalorder %s3885_s28, 0 }
 0x14d   : > { %s3624_s29 = sand.u32 (!%p3886_p8), 1, %s3169_s22  }
 0x14e   : > { %487 = sbr.rel (%p3886_p8) target bundleno = 2956 (0xb8c), region = 68  ;;  %s2148_s18 = sshll.u32 (!%p3886_p8), %s3624_s29, 4 }
 0x14f   : > { %s490_s30 = scalar_lea.sflag (!%p3886_p8), [#allocation3], %s3624_s29  ;;  %s493_s25 = scalar_lea.vmem (!%p3886_p8), [#allocation2], %s2148_s18 }
 0x155   : > { %3132 = dma.done.wait (%p3564_p7), %s490_s30, 256  }
 0x156   : > { %3134 = vsyncadd (%p3564_p7), %s490_s30, 4294967040  ;;  %p3887_p6 = scmp.eq.s32.totalorder %s3292_s27, 0 }
 0x158   : > { %3136 = dma.done.wait (%p3887_p6), [#allocation6], 32   ;;  %p3888_p11 = pmov %p3887_p6 }
 0x159   : > { %p3889_p12 = pmov %p3887_p6 }
 0x15a   : > { %3138 = vsyncadd (%p3888_p11), [#allocation6], 4294967264 }
 0x15b   : > { %3140 = dma.done.wait (%p3889_p12), [#allocation9], 4096   ;;  %p3890_p0 = pmov %p3887_p6 }
 0x15d   : > { %3142 = vsyncadd (%p3890_p0), [#allocation9], 4294963200  ;;  %p3891_p5 = pmov %p3890_p0 }
 0x15e   : > { %p3892_p9 = pmov %p3890_p0 }
 0x15f   : > { %3144 = dma.done.wait (%p3891_p5), [#allocation12], 32  }
 0x160   : > { %3146 = vsyncadd (%p3892_p9), [#allocation12], 4294967264  ;;  %p3893_p7 = pmov %p3890_p0 }
 0x161   : > { %p3894_p10 = pmov %p3890_p0 }
 0x162   : > { %3148 = dma.done.wait (%p3893_p7), [#allocation15], 2064  }
 0x163   : > { %3150 = vsyncadd (%p3894_p10), [#allocation15], 4294965232  ;;  %p3895_p4 = pmov %p3890_p0 }
 0x164   : > { %p3896_p13 = pmov %p3890_p0 }
 0x165   : > { %3152 = dma.done.wait (%p3895_p4), [#allocation18], 2080  }
 0x166   : > { %3154 = vsyncadd (%p3896_p13), [#allocation18], 4294965216  ;;  %p3897_p1 = pmov %p3890_p0 }
 0x167   : > { %p3898_p3 = pmov %p3890_p0 }
 0x168   : > { %3156 = dma.done.wait (%p3897_p1), [#allocation21], 16  }
 0x169   : > { %3158 = vsyncadd (%p3898_p3), [#allocation21], 4294967280  ;;  %v3658_v0 = vld [vmem:[%s493_s25] sm:$0xff]  ;;  %v3660_v1 = vld [vmem:[%s493_s25 + $0x8] sm:$0xff]  ;;  %v3197_v4 = vmov 0.0   ;;  %v3198_v30 = vmov 0  }
 0x16a   : > { %581 = vadd.xlane.f32.xlu0 %v3658_v0  ;;  %v2621_v2 = vld [vmem:[#allocation8 + $0x4] ss:$12 sps:$4 sm:$0xff]   ;;  %v2623_v3 = vld [vmem:[#allocation8] ss:$12 sps:$4 sm:$0xff]   ;;  %2302 = vmatprep.subr.bf16.mxu1 %v3197_v4  ;;  %v2624_v5 = vld [vmem:[#allocation8 + $0x8] ss:$12 sps:$4 sm:$0xff]  }
 0x16b   : > { %v2625_v6 = vld [vmem:[#allocation8 + $0x1c] ss:$12 sps:$4 sm:$0xff]   ;;  %783 = vmatprep.subr.bf16.mxu0 %v2621_v2  ;;  %2303 = vmatpush3.bf16.msra.mxu1 %v2624_v5  ;;  %v2627_v15 = vld [vmem:[#allocation8 + $0x18] ss:$12 sps:$4 sm:$0xff]   ;;  %v2628_v16 = vld [vmem:[#allocation8 + $0x20] ss:$12 sps:$4 sm:$0xff]  }
 0x16c   : > { %784 = vmatpush1.bf16.msra.mxu0 %v2623_v3  ;;  %2304 = vmatprep.subr.bf16.mxu1 %v3197_v4  ;;  %v2629_v17 = vld [vmem:[#allocation8 + $0x34] ss:$12 sps:$4 sm:$0xff]   ;;  %v2631_v18 = vld [vmem:[#allocation8 + $0x30] ss:$12 sps:$4 sm:$0xff]   ;;  %v2632_v19 = vld [vmem:[#allocation8 + $0x38] ss:$12 sps:$4 sm:$0xff]  }
 0x16d   : > { %785 = vmatprep.subr.bf16.mxu0 %v2625_v6  ;;  %v2633_v20 = vld [vmem:[#allocation8 + $0x4c] ss:$12 sps:$4 sm:$0xff]   ;;  %v2635_v21 = vld [vmem:[#allocation8 + $0x48] ss:$12 sps:$4 sm:$0xff]   ;;  %v2636_v22 = vld [vmem:[#allocation8 + $0x50] ss:$12 sps:$4 sm:$0xff]   ;;  %815 = vmatprep.mubr.bf16.mxu0 %v3198_v30 }
 0x16e   : > { %583 = vadd.xlane.f32.xlu0 %v3660_v1  ;;  %v2637_v23 = vld [vmem:[#allocation8 + $0x64] ss:$12 sps:$4 sm:$0xff]   ;;  %v2639_v24 = vld [vmem:[#allocation8 + $0x60] ss:$12 sps:$4 sm:$0xff]   ;;  %v2640_v25 = vld [vmem:[#allocation8 + $0x68] ss:$12 sps:$4 sm:$0xff]  }
 0x16f   : > { %2305 = vmatpush3.bf16.msra.mxu1 %v2628_v16  ;;  %v2641_v26 = vld [vmem:[#allocation8 + $0x7c] ss:$12 sps:$4 sm:$0xff]   ;;  %v2643_v27 = vld [vmem:[#allocation8 + $0x78] ss:$12 sps:$4 sm:$0xff]   ;;  %v2644_v28 = vld [vmem:[#allocation8 + $0x80] ss:$12 sps:$4 sm:$0xff]  }
 0x170   : > { %786 = vmatpush1.bf16.msra.mxu0 %v2627_v15  ;;  %2306 = vmatprep.subr.bf16.mxu1 %v3197_v4  ;;  %v2645_v29 = vld [vmem:[#allocation8 + $0x94] ss:$12 sps:$4 sm:$0xff]   ;;  %vm3199_vm0 = vmmov 0   ;;  %v2647_v31 = vld [vmem:[#allocation8 + $0x90] ss:$12 sps:$4 sm:$0xff]   ;;  %vm939_vm1 = vcmask 261120  }
 0x171   : > { %787 = vmatprep.subr.bf16.mxu0 %v2629_v17  ;;  %2318 = vmatprep.mubr.msk.bf16.mxu1 %vm3199_vm0, %v3197_v4  ;;  %v2648_v32 = vld [vmem:[#allocation8 + $0x98] ss:$12 sps:$4 sm:$0xff]   ;;  %v2651_v34 = vld [vmem:[#allocation8 + $0xa8] ss:$12 sps:$4 sm:$0xff]   ;;  %v2652_v35 = vld [vmem:[#allocation8 + $0xb0] ss:$12 sps:$4 sm:$0xff]  }
 0x172   : > { %v2649_v33 = vld [vmem:[#allocation8 + $0xac] ss:$12 sps:$4 sm:$0xff]   ;;  %v2161_v44 = vld [vmem:[#allocation5] ss:$0 sm:$0xff]  ;;  %v2162_v48 = vld [vmem:[#allocation7] ss:$0 sm:$0xff] }
 0x173   : > { %2307 = vmatpush3.bf16.msra.mxu1 %v2632_v19  ;;  %s3200_s26 = smov 96   ;;  %s3201_s16 = smov 64   ;;  %vm1128_vm2 = vcmask 130048   ;;  %vm1423_vm3 = vcmask 523264   ;;  %vm1426_vm4 = vcmask 785408  }
 0x174   : > { %788 = vmatpush1.bf16.msra.mxu0 %v2631_v18  ;;  %2308 = vmatprep.subr.bf16.mxu1 %v3197_v4  ;;  %s3202_s5 = smov 32   ;;  %s577_s3 = scalar_lea.vmem [#allocation22], %s2148_s18 }
 0x175   : > { %789 = vmatprep.subr.bf16.mxu0 %v2633_v20  ;;  %s1952_s2 = sshll.u32 %s577_s3, 4  ;;  %s2245_s20 = sshll.u32 %s3292_s27, 8  ;;  %s3795_s2 = int_to_ptr.vmem [resolvable:$true] %s1952_s2 }
 0x176   : > { %s3899_s12 = sld [smem:[#allocation36_spill]]  ;;  %s1939_s18 = scalar_lea.sflag [#allocation4], %s3624_s29 }
 0x177   : > { %2309 = vmatpush3.bf16.msra.mxu1 %v2636_v22  ;;  %s3087_s30 = scalar_lea.vmem %s3795_s2, 256  ;;  %p3900_p8 = scmp.ne.s32.totalorder %s3882_s17, 0 }
 0x178   : > { %790 = vmatpush1.bf16.msra.mxu0 %v2635_v21  ;;  %2310 = vmatprep.subr.bf16.mxu1 %v3197_v4  ;;  %p3088_p2 = scmp.ne.s32.totalorder %s3795_s2, %s3087_s30  ;;  %s3203_s27 = smov [#allocation22]  }
 0x179   : > { %791 = vmatprep.subr.bf16.mxu0 %v2637_v23  ;;  %s3091_s25 = sshll.u32 %s3203_s27, 4  ;;  %s3092_s25 = int_to_ptr.vmem [resolvable:$false] %s3091_s25 }
 0x17a   : > { %p3089_p6 = pnand %p3088_p2, %p3900_p8  ;;  %p3094_p12 = scmp.lt.s32.totalorder %s3795_s2, %s3092_s25 }
 0x17b   : > { %2311 = vmatpush3.bf16.msra.mxu1 %v2640_v25 }
 0x17c   : > { %792 = vmatpush1.bf16.msra.mxu0 %v2639_v24  ;;  %2312 = vmatprep.subr.bf16.mxu1 %v3197_v4  ;;  %s3800_s28 = scalar_lea.hbm %s3899_s12, %s2245_s20  ;;  %p3090_p11 = pneg %p3089_p6 }
 0x17d   : > { %793 = vmatprep.subr.bf16.mxu0 %v2641_v26 }
 0x17f   : > { %2313 = vmatpush3.bf16.msra.mxu1 %v2644_v28 }
 0x180   : > { %794 = vmatpush1.bf16.msra.mxu0 %v2643_v27  ;;  %2314 = vmatprep.subr.bf16.mxu1 %v3197_v4 }
 0x181   : > { %795 = vmatprep.subr.bf16.mxu0 %v2645_v29 }
 0x183   : > { %2315 = vmatpush3.bf16.msra.mxu1 %v2648_v32 }
 0x184   : > { %796 = vmatpush1.bf16.msra.mxu0 %v2647_v31  ;;  %2316 = vmatprep.subr.bf16.mxu1 %v3197_v4 }
 0x185   : > { %797 = vmatprep.subr.bf16.mxu0 %v2649_v33 }
 0x187   : > { %2317 = vmatpush3.bf16.msra.mxu1 %v2652_v35 }
 0x188   : > { %798 = vmatpush1.bf16.msra.mxu0 %v2651_v34  ;;  %2322 = vmatprep.subr.bf16.mxu1 %v3197_v4 }
 0x189   : > { %2346 = vmatprep.subr.bf16.mxu0 %v3197_v4 }
 0x1f7   : > { %v582_v7 = vpop.xlane.xlu0 %581 }
 0x1f8   : > { %v586_v8 = vmul.f32 0.0078125, %v582_v7 }
 0x1fa   : > { %v3667_v9 = vsub.f32 %v3658_v0, %v586_v8 }
 0x1fb   : > { %v584_v10 = vpop.xlane.xlu0 %583 }
 0x1fc   : > { %v587_v11 = vmul.f32 0.0078125, %v584_v10  ;;  %v590_v12 = vmul.f32 %v3667_v9, %v3667_v9 }
 0x1fe   : > { %v3672_v13 = vsub.f32 %v3660_v1, %v587_v11  ;;  %592 = vadd.xlane.f32.xlu1 %v590_v12 }
 0x200   : > { %v591_v14 = vmul.f32 %v3672_v13, %v3672_v13 }
 0x202   : > { %594 = vadd.xlane.f32.xlu1 %v591_v14 }
 0x28b   : > { %v593_v36 = vpop.xlane.xlu1 %592 }
 0x28c   : > { %v596_v37 = vmul.f32 0.0078125, %v593_v36 }
 0x28e   : > { %v598_v38 = vadd.f32 1e-05, %v596_v37 }
 0x28f   : > { %v595_v39 = vpop.xlane.xlu1 %594 }
 0x290   : > { %2701 = vrsqrt.f32 %v598_v38  ;;  %v597_v40 = vmul.f32 0.0078125, %v595_v39 }
 0x292   : > { %v599_v41 = vadd.f32 1e-05, %v597_v40 }
 0x294   : > { %2703 = vrsqrt.f32 %v599_v41 }
 0x29a   : > { %v2702_v42 = vpop.eup %2701 }
 0x29b   : > { %v602_v43 = vmul.f32 %v2702_v42, %v3667_v9 }
 0x29d   : > { %v611_v47 = vmul.f32 %v2161_v44, %v602_v43 }
 0x29e   : > { %v2704_v45 = vpop.eup %2703 }
 0x29f   : > { %v603_v46 = vmul.f32 %v2704_v45, %v3672_v13  ;;  %v620_v50 = vadd.f32 %v2162_v48, %v611_v47 }
 0x2a1   : > { %v612_v49 = vmul.f32 %v2161_v44, %v603_v46 }
 0x2a3   : > { %v621_v51 = vadd.f32 %v2162_v48, %v612_v49 }
 0x2a5   : > { %v622_v52 = vpack.c.bf16 %v621_v51, %v620_v50 }
 0x2a7   : > { %816 = vmatmul.mubr.bf16.vlgmr.msra.gmra.mrb[0].mxu0 %v622_v52  ;;  %2319 = vmatmul.mubr.bf16.vlgmr.msra.gmra.mrb[0].mxu1 %v622_v52 }
 0x2a8   : > { %2324 = vmatprep.mubr.msk.bf16.mxu1 %vm3199_vm0, %v3197_v4  ;;  %2348 = vmatprep.mubr.msk.bf16.mxu0 %vm3199_vm0, %v3197_v4 }
 0x37a   : > { %v817_v53 = vpop.f32.mrb[0].mxu0  ;;  %v860_v54 = vpop.f32.mrb[0].mxu1 }
 0x37b   : > { %v819_v55 = vpop.f32.mrb[1].mxu0  ;;  %v2320_v56 = vpop.f32.mrb[1].mxu1 }
 0x37c   : > { %v821_v57 = vpop.f32.mrb[2].mxu0  ;;  %v863_v58 = vpop.f32.mrb[2].mxu1 }
 0x37d   : > { %v887_v59 = vpack.c.bf16 %v821_v57, %v817_v53  ;;  %v935_v60 = vpack.c.bf16 %v863_v58, %v860_v54  ;;  %v823_v61 = vpop.f32.mrb[3].mxu0  ;;  %v2321_v62 = vpop.f32.mrb[3].mxu1  ;;  %v2566_v63 = vpack.i.bf16 %v821_v57, %v817_v53  ;;  %v3694_v5 = vpack.i.bf16 %v863_v58, %v860_v54 }
 0x37e   : > { %v2561_v2 = vpack.i.bf16 %v823_v61, %v819_v55  ;;  %v911_v3 = vpack.c.bf16 %v823_v61, %v819_v55 }
 0x37f   : > { %2347 = vmatpush3.bf16.msra.mxu0 %v935_v60  ;;  %2567 = vrot.lane.b32.xlu1 %v2566_v63, %s3200_s26 }
 0x380   : > { %2562 = vrot.lane.b32.xlu0 %v2561_v2, %s3200_s26  ;;  %v944_v6 = vsel %vm939_vm1, %v911_v3, 0  ;;  %2358 = vmatprep.subr.bf16.mxu0 %v3197_v4 }
 0x381   : > { %2323 = vmatpush3.bf16.xpose.msra.mxu1 %v944_v6 }
 0x382   : > { %2328 = vmatprep.subr.bf16.mxu1 %v3197_v4 }
 0x383   : > { %2572 = vrot.lane.b32.xlu1 %v2561_v2, %s3201_s16 }
 0x384   : > { %2582 = vrot.lane.b32.xlu0 %v2561_v2, %s3202_s5 }
 0x387   : > { %2577 = vrot.lane.b32.xlu1 %v2566_v63, %s3201_s16 }
 0x388   : > { %2325 = vmatmul.mubr.msk.bf16.vlgmr.msra.gmra.mrb[4].mxu1 %vm939_vm1, %v887_v59 }
 0x389   : > { %2330 = vmatprep.mubr.msk.bf16.mxu1 %vm3199_vm0, %v3197_v4 }
 0x38b   : > { %2587 = vrot.lane.b32.xlu1 %v2566_v63, %s3202_s5 }
 0x3f1   : > { %v2568_v7 = vpop.permute.xlu1 %2567 }
 0x3f2   : > { %v2563_v8 = vpop.permute.xlu0 %2562  ;;  %v2570_v16 = vunpack.i.h.bf16 %v2568_v7  ;;  %v2569_v17 = vunpack.i.l.bf16 %v2568_v7 }
 0x3f3   : > { %v2565_v9 = vunpack.i.h.bf16 %v2563_v8  ;;  %v2564_v10 = vunpack.i.l.bf16 %v2563_v8 }
 0x3f4   : > { %v888_v20 = vpack.c.bf16 %v2570_v16, %v2569_v17 }
 0x3f5   : > { %v912_v11 = vpack.c.bf16 %v2565_v9, %v2564_v10  ;;  %v2573_v12 = vpop.permute.xlu1 %2572 }
 0x3f6   : > { %v2575_v13 = vunpack.i.h.bf16 %v2573_v12  ;;  %v2574_v14 = vunpack.i.l.bf16 %v2573_v12  ;;  %v2583_v19 = vpop.permute.xlu0 %2582 }
 0x3f7   : > { %v991_v15 = vsel %vm939_vm1, %v912_v11, 0  ;;  %v2585_v22 = vunpack.i.h.bf16 %v2583_v19  ;;  %v2584_v23 = vunpack.i.l.bf16 %v2583_v19 }
 0x3f8   : > { %2329 = vmatpush3.bf16.xpose.msra.mxu1 %v991_v15  ;;  %v913_v18 = vpack.c.bf16 %v2575_v13, %v2574_v14 }
 0x3f9   : > { %2334 = vmatprep.subr.bf16.mxu1 %v3197_v4  ;;  %v2578_v21 = vpop.permute.xlu1 %2577  ;;  %v914_v27 = vpack.c.bf16 %v2585_v22, %v2584_v23 }
 0x3fa   : > { %v1038_v24 = vsel %vm939_vm1, %v913_v18, 0  ;;  %v2580_v25 = vunpack.i.h.bf16 %v2578_v21  ;;  %v2579_v26 = vunpack.i.l.bf16 %v2578_v21 }
 0x3fb   : > { %v1085_v31 = vsel %vm939_vm1, %v914_v27, 0 }
 0x3fc   : > { %v889_v28 = vpack.c.bf16 %v2580_v25, %v2579_v26 }
 0x3fd   : > { %v2588_v29 = vpop.permute.xlu1 %2587 }
 0x3fe   : > { %v2590_v32 = vunpack.i.h.bf16 %v2588_v29  ;;  %v2589_v33 = vunpack.i.l.bf16 %v2588_v29 }
 0x3ff   : > { %2331 = vmatmul.mubr.msk.bf16.vlgmr.msra.gmra.mrb[8].mxu1 %vm939_vm1, %v888_v20 }
 0x400   : > { %2335 = vmatpush3.bf16.xpose.msra.mxu1 %v1038_v24  ;;  %2336 = vmatprep.mubr.msk.bf16.mxu1 %vm3199_vm0, %v3197_v4  ;;  %v890_v34 = vpack.c.bf16 %v2590_v32, %v2589_v33 }
 0x401   : > { %2340 = vmatprep.subr.bf16.mxu1 %v3197_v4 }
 0x407   : > { %2337 = vmatmul.mubr.msk.bf16.vlgmr.msra.gmra.mrb[12].mxu1 %vm939_vm1, %v889_v28 }
 0x408   : > { %2341 = vmatpush3.bf16.xpose.msra.mxu1 %v1085_v31  ;;  %2342 = vmatprep.mubr.msk.bf16.mxu1 %vm3199_vm0, %v3197_v4 }
 0x409   : > { %2352 = vmatprep.subr.bf16.mxu1 %v3197_v4 }
 0x40f   : > { %2343 = vmatmul.mubr.msk.bf16.vlgmr.msra.gmra.mrb[16].mxu1 %vm939_vm1, %v890_v34 }
 0x410   : > { %2354 = vmatprep.mubr.msk.bf16.mxu1 %vm3199_vm0, %v3197_v4 }
 0x45b   : > { %v980_v35 = vpop.f32.mrb[4].mxu1 }
 0x45c   : > { %v2326_v36 = vpop.f32.mrb[5].mxu1  ;;  %v1129_v37 = vsel %vm1128_vm2, %v980_v35, -inf }
 0x45d   : > { %1130 = vmax.xlane.f32.xlu0 %v1129_v37  ;;  %v983_v38 = vpop.f32.mrb[6].mxu1 }
 0x45e   : > { %v2327_v39 = vpop.f32.mrb[7].mxu1  ;;  %v1132_v40 = vsel %vm1128_vm2, %v983_v38, -inf }
 0x45f   : > { %1133 = vmax.xlane.f32.xlu1 %v1132_v40 }
 0x4d2   : > { %v1027_v41 = vpop.f32.mrb[8].mxu1 }
 0x4d3   : > { %v2332_v42 = vpop.f32.mrb[9].mxu1  ;;  %v1135_v43 = vsel %vm1128_vm2, %v1027_v41, -inf }
 0x4d4   : > { %1136 = vmax.xlane.f32.xlu0 %v1135_v43  ;;  %v1030_v44 = vpop.f32.mrb[10].mxu1 }
 0x4d5   : > { %v2333_v45 = vpop.f32.mrb[11].mxu1  ;;  %v1138_v46 = vsel %vm1128_vm2, %v1030_v44, -inf }
 0x4d8   : > { %1139 = vmax.xlane.f32.xlu0 %v1138_v46 }
 0x4da   : > { %v1074_v47 = vpop.f32.mrb[12].mxu1 }
 0x4db   : > { %v2338_v48 = vpop.f32.mrb[13].mxu1  ;;  %v1141_v49 = vsel %vm1128_vm2, %v1074_v47, -inf }
 0x4dc   : > { %1142 = vmax.xlane.f32.xlu0 %v1141_v49  ;;  %v1077_v50 = vpop.f32.mrb[14].mxu1 }
 0x4dd   : > { %v2339_v51 = vpop.f32.mrb[15].mxu1  ;;  %v1144_v52 = vsel %vm1128_vm2, %v1077_v50, -inf }
 0x4de   : > { %1145 = vmax.xlane.f32.xlu1 %v1144_v52 }
 0x4e2   : > { %v1121_v53 = vpop.f32.mrb[16].mxu1 }
 0x4e3   : > { %v2344_v54 = vpop.f32.mrb[17].mxu1  ;;  %v1147_v55 = vsel %vm1128_vm2, %v1121_v53, -inf }
 0x4e4   : > { %1148 = vmax.xlane.f32.xlu0 %v1147_v55  ;;  %v3729_v56 = vpop.f32.mrb[18].mxu1 }
 0x4e5   : > { %v2345_v57 = vpop.f32.mrb[19].mxu1  ;;  %v1150_v58 = vsel %vm1128_vm2, %v3729_v56, -inf }
 0x4e6   : > { %1151 = vmax.xlane.f32.xlu1 %v1150_v58 }
 0x4ea   : > { %v1131_v59 = vpop.xlane.xlu0 %1130 }
 0x4eb   : > { %v1153_v60 = vsub.f32 %v980_v35, %v1131_v59 }
 0x4ec   : > { %v1134_v61 = vpop.xlane.xlu1 %1133 }
 0x4ed   : > { %v1161_v62 = vmul.f32 1.442695, %v1153_v60  ;;  %v1154_v63 = vsub.f32 %v983_v38, %v1134_v61 }
 0x4ef   : > { %2705 = vpow2.f32 %v1161_v62  ;;  %v1163_v2 = vmul.f32 1.442695, %v1154_v63 }
 0x4f1   : > { %2707 = vpow2.f32 %v1163_v2 }
 0x4f9   : > { %v2706_v3 = vpop.eup %2705 }
 0x4fa   : > { %v1177_v6 = vsel %vm1128_vm2, %v2706_v3, 0.0 }
 0x4fb   : > { %v2708_v7 = vpop.eup %2707  ;;  %1178 = vadd.xlane.f32.xlu0 %v1177_v6 }
 0x4fc   : > { %v1180_v8 = vsel %vm1128_vm2, %v2708_v7, 0.0 }
 0x4fd   : > { %1181 = vadd.xlane.f32.xlu1 %v1180_v8 }
 0x561   : > { %v1137_v9 = vpop.xlane.xlu0 %1136 }
 0x562   : > { %v1155_v10 = vsub.f32 %v1027_v41, %v1137_v9 }
 0x564   : > { %v1165_v11 = vmul.f32 1.442695, %v1155_v10 }
 0x565   : > { %v1140_v12 = vpop.xlane.xlu0 %1139 }
 0x566   : > { %2709 = vpow2.f32 %v1165_v11  ;;  %v1156_v13 = vsub.f32 %v1030_v44, %v1140_v12 }
 0x568   : > { %v1167_v14 = vmul.f32 1.442695, %v1156_v13 }
 0x569   : > { %v1143_v15 = vpop.xlane.xlu0 %1142 }
 0x56a   : > { %2711 = vpow2.f32 %v1167_v14  ;;  %v1157_v16 = vsub.f32 %v1074_v47, %v1143_v15 }
 0x56b   : > { %v1146_v17 = vpop.xlane.xlu1 %1145 }
 0x56c   : > { %v1169_v18 = vmul.f32 1.442695, %v1157_v16  ;;  %v1158_v19 = vsub.f32 %v1077_v50, %v1146_v17 }
 0x56e   : > { %2713 = vpow2.f32 %v1169_v18  ;;  %v1171_v20 = vmul.f32 1.442695, %v1158_v19 }
 0x570   : > { %v3735_v21 = vpop.eup %2709  ;;  %2715 = vpow2.f32 %v1171_v20 }
 0x571   : > { %v1149_v22 = vpop.xlane.xlu0 %1148  ;;  %v1183_v23 = vsel %vm1128_vm2, %v3735_v21, 0.0 }
 0x572   : > { %v1159_v24 = vsub.f32 %v1121_v53, %v1149_v22  ;;  %1184 = vadd.xlane.f32.xlu0 %v1183_v23  ;;  %v2653_v23 = vld [vmem:[#allocation10] sm:$0xff]  }
 0x573   : > { %v1152_v35 = vpop.xlane.xlu1 %1151 }
 0x574   : > { %v2712_v25 = vpop.eup %2711  ;;  %v1173_v26 = vmul.f32 1.442695, %v1159_v24  ;;  %v1160_v43 = vsub.f32 %v3729_v56, %v1152_v35  ;;  %v2654_v24 = vld [vmem:[#allocation10 + $0x8] sm:$0xff]  }
 0x575   : > { %v1186_v27 = vsel %vm1128_vm2, %v2712_v25, 0.0 }
 0x576   : > { %2717 = vpow2.f32 %v1173_v26  ;;  %1187 = vadd.xlane.f32.xlu1 %v1186_v27  ;;  %v1175_v44 = vmul.f32 1.442695, %v1160_v43 }
 0x578   : > { %v2714_v28 = vpop.eup %2713 }
 0x579   : > { %v1189_v29 = vsel %vm1128_vm2, %v2714_v28, 0.0 }
 0x57a   : > { %v2716_v31 = vpop.eup %2715  ;;  %1190 = vadd.xlane.f32.xlu0 %v1189_v29  ;;  %v2655_v29 = vld [vmem:[#allocation10 + $0x10] sm:$0xff]  }
 0x57b   : > { %v1192_v32 = vsel %vm1128_vm2, %v2716_v31, 0.0 }
 0x57c   : > { %1193 = vadd.xlane.f32.xlu1 %v1192_v32 }
 0x580   : > { %v3742_v33 = vpop.eup %2717 }
 0x581   : > { %v1195_v34 = vsel %vm1128_vm2, %v3742_v33, 0.0 }
 0x582   : > { %1196 = vadd.xlane.f32.xlu0 %v1195_v34 }
 0x588   : > { %v1179_v36 = vpop.xlane.xlu0 %1178 }
 0x589   : > { %2719 = vrcp.f32 %v1179_v36  ;;  %v2656_v36 = vld [vmem:[#allocation10 + $0x18] sm:$0xff]  }
 0x58a   : > { %v1182_v37 = vpop.xlane.xlu1 %1181 }
 0x58b   : > { %2721 = vrcp.f32 %v1182_v37  ;;  %v2657_v37 = vld [vmem:[#allocation10 + $0x20] sm:$0xff]  }
 0x58c   : > { %2723 = vpow2.f32 %v1175_v44 }
 0x58d   : > { %2597 = vrot.lane.b32.xlu1 %v3694_v5, %s3201_s16 }
 0x593   : > { %v2720_v38 = vpop.eup %2719 }
 0x594   : > { %v1209_v40 = vmul.f32 %v2720_v38, %v2706_v3  ;;  %v2658_v38 = vld [vmem:[#allocation10 + $0x28] sm:$0xff]  }
 0x595   : > { %v2722_v39 = vpop.eup %2721 }
 0x596   : > { %v1210_v41 = vmul.f32 %v2722_v39, %v2708_v7  ;;  %v2724_v45 = vpop.eup %2723  ;;  %v2659_v39 = vld [vmem:[#allocation10 + $0x30] sm:$0xff]  }
 0x597   : > { %v1198_v46 = vsel %vm1128_vm2, %v2724_v45, 0.0 }
 0x598   : > { %2592 = vrot.lane.b32.xlu0 %v3694_v5, %s3200_s26  ;;  %v1217_v42 = vpack.c.bf16 %v1210_v41, %v1209_v40  ;;  %v2660_v40 = vld [vmem:[#allocation10 + $0x38] sm:$0xff]  }
 0x59a   : > { %2349 = vmatmul.mubr.msk.bf16.vlgmr.msra.gmra.mrb[4].mxu0 %vm1128_vm2, %v1217_v42 }
 0x59b   : > { %2360 = vmatprep.mubr.msk.bf16.mxu0 %vm3199_vm0, %v3197_v4 }
 0x5b1   : > { %1199 = vadd.xlane.f32.xlu1 %v1198_v46 }
 0x5c2   : > { %2602 = vrot.lane.b32.xlu1 %v3694_v5, %s3202_s5 }
 0x5ff   : > { %v1185_v47 = vpop.xlane.xlu0 %1184 }
 0x603   : > { %v1188_v48 = vpop.xlane.xlu1 %1187 }
 0x604   : > { %2725 = vrcp.f32 %v1188_v48 }
 0x607   : > { %v1191_v49 = vpop.xlane.xlu0 %1190 }
 0x608   : > { %2727 = vrcp.f32 %v1191_v49 }
 0x609   : > { %2729 = vrcp.f32 %v1185_v47  ;;  %v1194_v50 = vpop.xlane.xlu1 %1193 }
 0x60a   : > { %2731 = vrcp.f32 %v1194_v50 }
 0x60d   : > { %v2598_v51 = vpop.permute.xlu1 %2597 }
 0x60e   : > { %v2600_v52 = vunpack.i.h.bf16 %v2598_v51  ;;  %v2599_v53 = vunpack.i.l.bf16 %v2598_v51  ;;  %v2726_v56 = vpop.eup %2725 }
 0x60f   : > { %v1197_v54 = vpop.xlane.xlu0 %1196  ;;  %v1212_v62 = vmul.f32 %v2726_v56, %v2712_v25 }
 0x610   : > { %v937_v55 = vpack.c.bf16 %v2600_v52, %v2599_v53  ;;  %2733 = vrcp.f32 %v1197_v54 }
 0x612   : > { %v2728_v57 = vpop.eup %2727  ;;  %2359 = vmatpush3.bf16.msra.mxu0 %v937_v55 }
 0x613   : > { %v2730_v58 = vpop.eup %2729  ;;  %v2593_v59 = vpop.permute.xlu0 %2592  ;;  %2370 = vmatprep.subr.bf16.mxu0 %v3197_v4  ;;  %v1213_v63 = vmul.f32 %v2728_v57, %v2714_v28 }
 0x614   : > { %v2732_v5 = vpop.eup %2731  ;;  %v2595_v60 = vunpack.i.h.bf16 %v2593_v59  ;;  %v2594_v61 = vunpack.i.l.bf16 %v2593_v59  ;;  %v1211_v6 = vmul.f32 %v2730_v58, %v3735_v21 }
 0x615   : > { %v1214_v2 = vmul.f32 %v2732_v5, %v2716_v31 }
 0x616   : > { %v936_v3 = vpack.c.bf16 %v2595_v60, %v2594_v61  ;;  %v1218_v8 = vpack.c.bf16 %v1212_v62, %v1211_v6  ;;  %v2195_v60 = vld [vmem:[#allocation11] ss:$0 sm:$0xff] }
 0x617   : > { %v1219_v7 = vpack.c.bf16 %v1214_v2, %v1213_v63 }
 0x618   : > { %2353 = vmatpush3.bf16.msra.mxu1 %v936_v3 }
 0x619   : > { %2361 = vmatmul.mubr.msk.bf16.vlgmr.msra.gmra.mrb[8].mxu0 %vm1128_vm2, %v1219_v7  ;;  %2364 = vmatprep.subr.bf16.mxu1 %v3197_v4 }
 0x61a   : > { %2386 = vmatprep.mubr.msk.bf16.mxu0 %vm3199_vm0, %v3197_v4  ;;  %v2734_v14 = vpop.eup %2733  ;;  %2371 = vmatpush3.bf16.msra.mxu0 %v2653_v23  ;;  %v2675_v23 = vld [vmem:[#allocation16 + $0x44] ss:$8 sps:$4 sm:$0xff]  }
 0x61b   : > { %2355 = vmatmul.mubr.msk.bf16.vlgmr.msra.gmra.mrb[20].mxu1 %vm1128_vm2, %v1218_v8  ;;  %v1215_v16 = vmul.f32 %v2734_v14, %v3742_v33  ;;  %2372 = vmatprep.subr.bf16.mxu0 %v3197_v4 }
 0x61c   : > { %2366 = vmatprep.mubr.msk.bf16.mxu1 %vm3199_vm0, %v3197_v4 }
 0x61e   : > { %2373 = vmatpush3.bf16.msra.mxu0 %v2654_v24  ;;  %v2673_v24 = vld [vmem:[#allocation16 + $0x40] ss:$8 sps:$4 sm:$0xff]  }
 0x61f   : > { %2374 = vmatprep.subr.bf16.mxu0 %v3197_v4 }
 0x622   : > { %2375 = vmatpush3.bf16.msra.mxu0 %v2655_v29  ;;  %v2684_v29 = vld [vmem:[#allocation16 + $0x74] ss:$8 sps:$4 sm:$0xff]  }
 0x623   : > { %2376 = vmatprep.subr.bf16.mxu0 %v3197_v4 }
 0x626   : > { %2377 = vmatpush3.bf16.msra.mxu0 %v2656_v36 }
 0x627   : > { %2378 = vmatprep.subr.bf16.mxu0 %v3197_v4 }
 0x62a   : > { %2379 = vmatpush3.bf16.msra.mxu0 %v2657_v37 }
 0x62b   : > { %2380 = vmatprep.subr.bf16.mxu0 %v3197_v4 }
 0x62e   : > { %2381 = vmatpush3.bf16.msra.mxu0 %v2658_v38 }
 0x62f   : > { %2382 = vmatprep.subr.bf16.mxu0 %v3197_v4 }
 0x632   : > { %2383 = vmatpush3.bf16.msra.mxu0 %v2659_v39 }
 0x633   : > { %2384 = vmatprep.subr.bf16.mxu0 %v3197_v4 }
 0x636   : > { %2385 = vmatpush3.bf16.msra.mxu0 %v2660_v40 }
 0x63e   : > { %v1200_v9 = vpop.xlane.xlu1 %1199 }
 0x63f   : > { %2735 = vrcp.f32 %v1200_v9  ;;  %v2661_v9 = vld [vmem:[#allocation16] ss:$8 sps:$4 sm:$0xff]  }
 0x642   : > { %v2603_v10 = vpop.permute.xlu1 %2602 }
 0x643   : > { %v2605_v11 = vunpack.i.h.bf16 %v2603_v10  ;;  %v2604_v12 = vunpack.i.l.bf16 %v2603_v10  ;;  %v2663_v10 = vld [vmem:[#allocation16 + $0x4] ss:$8 sps:$4 sm:$0xff]  }
 0x645   : > { %v938_v13 = vpack.c.bf16 %v2605_v11, %v2604_v12  ;;  %v2666_v11 = vld [vmem:[#allocation16 + $0x14] ss:$8 sps:$4 sm:$0xff]   ;;  %v2664_v12 = vld [vmem:[#allocation16 + $0x10] ss:$8 sps:$4 sm:$0xff]  }
 0x647   : > { %2365 = vmatpush3.bf16.msra.mxu1 %v938_v13 }
 0x648   : > { %1693 = vmatprep.subr.bf16.mxu1 %v2663_v10 }
 0x649   : > { %v2736_v15 = vpop.eup %2735 }
 0x64a   : > { %v1216_v17 = vmul.f32 %v2736_v15, %v2724_v45 }
 0x64c   : > { %v1220_v18 = vpack.c.bf16 %v1216_v17, %v1215_v16 }
 0x64e   : > { %2367 = vmatmul.mubr.msk.bf16.vlgmr.msra.gmra.mrb[24].mxu1 %vm1128_vm2, %v1220_v18 }
 0x64f   : > { %1725 = vmatprep.mubr.bf16.mxu1 %v3198_v30  ;;  %1694 = vmatpush1.bf16.msra.mxu1 %v2661_v9 }
 0x650   : > { %1695 = vmatprep.subr.bf16.mxu1 %v2666_v11 }
 0x653   : > { %1696 = vmatpush1.bf16.msra.mxu1 %v2664_v12 }
 0x66d   : > { %v1258_v19 = vpop.f32.mrb[4].mxu0 }
 0x66e   : > { %v2350_v20 = vpop.f32.mrb[5].mxu0 }
 0x66f   : > { %v1261_v21 = vpop.f32.mrb[6].mxu0  ;;  %v2667_v20 = vld [vmem:[#allocation16 + $0x20] ss:$8 sps:$4 sm:$0xff]  }
 0x670   : > { %v2351_v22 = vpop.f32.mrb[7].mxu0 }
 0x671   : > { %v2670_v22 = vld [vmem:[#allocation16 + $0x30] ss:$8 sps:$4 sm:$0xff]  }
 0x6ec   : > { %v1346_v25 = vpop.f32.mrb[8].mxu0 }
 0x6ed   : > { %v2362_v26 = vpop.f32.mrb[9].mxu0 }
 0x6ee   : > { %v1302_v27 = vpop.f32.mrb[20].mxu1  ;;  %v1349_v28 = vpop.f32.mrb[10].mxu0  ;;  %v2676_v26 = vld [vmem:[#allocation16 + $0x50] ss:$8 sps:$4 sm:$0xff]  }
 0x6ef   : > { %v2611_v31 = vpack.i.bf16 %v1349_v28, %v1346_v25  ;;  %v2356_v32 = vpop.f32.mrb[21].mxu1  ;;  %v2363_v33 = vpop.f32.mrb[11].mxu0  ;;  %v2678_v25 = vld [vmem:[#allocation16 + $0x54] ss:$8 sps:$4 sm:$0xff]   ;;  %v2681_v28 = vld [vmem:[#allocation16 + $0x64] ss:$8 sps:$4 sm:$0xff]  }
 0x6f0   : > { %v1305_v30 = vpop.f32.mrb[22].mxu1  ;;  %v2685_v32 = vld [vmem:[#allocation19 + $0x40] sm:$0xff]  }
 0x6f1   : > { %v2606_v34 = vpack.i.bf16 %v1305_v30, %v1302_v27  ;;  %2612 = vrot.lane.b32.xlu0 %v2611_v31, %s3201_s16  ;;  %v2357_v35 = vpop.f32.mrb[23].mxu1  ;;  %v2679_v27 = vld [vmem:[#allocation16 + $0x60] ss:$8 sps:$4 sm:$0xff]   ;;  %v2682_v31 = vld [vmem:[#allocation16 + $0x70] ss:$8 sps:$4 sm:$0xff]   ;;  %2280 = vmatprep.subr.bf16.mxu0 %v2685_v32 }
 0x6f2   : > { %v2686_v33 = vld [vmem:[#allocation19] sm:$0xff]   ;;  %v2687_v30 = vld [vmem:[#allocation19 + $0x48] sm:$0xff]  }
 0x6f3   : > { %2607 = vrot.lane.b32.xlu1 %v2606_v34, %s3202_s5  ;;  %v2688_v34 = vld [vmem:[#allocation19 + $0x8] sm:$0xff]  }
 0x721   : > { %v1390_v41 = vpop.f32.mrb[24].mxu1 }
 0x722   : > { %v2368_v42 = vpop.f32.mrb[25].mxu1 }
 0x723   : > { %v1393_v43 = vpop.f32.mrb[26].mxu1 }
 0x724   : > { %v2616_v44 = vpack.i.bf16 %v1393_v43, %v1390_v41  ;;  %v2369_v45 = vpop.f32.mrb[27].mxu1  ;;  %v2204_v43 = vld [vmem:[#allocation13] ss:$0 sm:$0xff] }
 0x726   : > { %2617 = vrot.lane.b32.xlu1 %v2616_v44, %s3200_s26  ;;  %s3093_s26 = scalar_lea.vmem %s3092_s25, 512 }
 0x727   : > { %p3095_p0 = scmp.lt.s32.totalorder %s3093_s26, %s3087_s30 }
 0x729   : > { %p3096_p5 = por %p3095_p0, %p3094_p12 }
 0x72b   : > { %p3097_p9 = pnand %p3096_p5, %p3090_p11 }
 0x763   : > { %v2613_v49 = vpop.permute.xlu0 %2612 }
 0x764   : > { %v2615_v52 = vunpack.i.h.bf16 %v2613_v49  ;;  %v2614_v4 = vunpack.i.l.bf16 %v2613_v49 }
 0x765   : > { %v2608_v46 = vpop.permute.xlu1 %2607 }
 0x766   : > { %v2610_v47 = vunpack.i.h.bf16 %v2608_v46  ;;  %v2609_v48 = vunpack.i.l.bf16 %v2608_v46 }
 0x768   : > { %v1422_v50 = vsel %vm939_vm1, %v1261_v21, %v2610_v47  ;;  %v1421_v51 = vsel %vm939_vm1, %v1258_v19, %v2609_v48  ;;  %v2669_v19 = vld [vmem:[#allocation16 + $0x24] ss:$8 sps:$4 sm:$0xff]   ;;  %v2672_v21 = vld [vmem:[#allocation16 + $0x34] ss:$8 sps:$4 sm:$0xff]  }
 0x769   : > { %v1424_v56 = vsel %vm1423_vm3, %v1421_v51, %v2614_v4  ;;  %v1425_v57 = vsel %vm1423_vm3, %v1422_v50, %v2615_v52  ;;  %1697 = vmatprep.subr.bf16.mxu1 %v2669_v19  ;;  %v2205_v47 = vld [vmem:[#allocation14] ss:$0 sm:$0xff]  ;;  %v2689_v52 = vld [vmem:[#allocation19 + $0x50] sm:$0xff]  }
 0x76a   : > { %1698 = vmatpush1.bf16.msra.mxu1 %v2667_v20  ;;  %v2690_v4 = vld [vmem:[#allocation19 + $0x10] sm:$0xff]  }
 0x76b   : > { %1699 = vmatprep.subr.bf16.mxu1 %v2672_v21 }
 0x76e   : > { %1700 = vmatpush1.bf16.msra.mxu1 %v2670_v22 }
 0x76f   : > { %1701 = vmatprep.subr.bf16.mxu1 %v2675_v23 }
 0x772   : > { %1702 = vmatpush1.bf16.msra.mxu1 %v2673_v24 }
 0x773   : > { %1703 = vmatprep.subr.bf16.mxu1 %v2678_v25 }
 0x776   : > { %1704 = vmatpush1.bf16.msra.mxu1 %v2676_v26 }
 0x777   : > { %1705 = vmatprep.subr.bf16.mxu1 %v2681_v28 }
 0x77a   : > { %1706 = vmatpush1.bf16.msra.mxu1 %v2679_v27 }
 0x77b   : > { %1707 = vmatprep.subr.bf16.mxu1 %v2684_v29 }
 0x77e   : > { %1708 = vmatpush1.bf16.msra.mxu1 %v2682_v31 }
 0x798   : > { %v2618_v53 = vpop.permute.xlu1 %2617 }
 0x799   : > { %v2620_v54 = vunpack.i.h.bf16 %v2618_v53  ;;  %v2619_v55 = vunpack.i.l.bf16 %v2618_v53  ;;  %v2691_v53 = vld [vmem:[#allocation19 + $0x58] sm:$0xff]  }
 0x79b   : > { %v1428_v58 = vsel %vm1426_vm4, %v1425_v57, %v2620_v54  ;;  %v1427_v59 = vsel %vm1426_vm4, %v1424_v56, %v2619_v55  ;;  %v2692_v54 = vld [vmem:[#allocation19 + $0x18] sm:$0xff]   ;;  %v2693_v55 = vld [vmem:[#allocation19 + $0x60] sm:$0xff]   ;;  %v2695_v57 = vld [vmem:[#allocation19 + $0x68] sm:$0xff]  }
 0x79c   : > { %v1429_v5 = vpack.c.bf16 %v1428_v58, %v1427_v59  ;;  %v2694_v56 = vld [vmem:[#allocation19 + $0x20] sm:$0xff]   ;;  %v2696_v58 = vld [vmem:[#allocation19 + $0x28] sm:$0xff]   ;;  %v2697_v59 = vld [vmem:[#allocation19 + $0x70] sm:$0xff]  }
 0x79e   : > { %2387 = vmatmul.mubr.bf16.vlgmr.msra.gmra.mrb[12].mxu0 %v1429_v5  ;;  %v2698_v5 = vld [vmem:[#allocation19 + $0x30] sm:$0xff]  }
 0x79f   : > { %2281 = vmatpush3.bf16.msra.mxu0 %v2686_v33 }
 0x7a0   : > { %2282 = vmatprep.subr.bf16.mxu0 %v2687_v30 }
 0x7a3   : > { %2283 = vmatpush3.bf16.msra.mxu0 %v2688_v34 }
 0x7a4   : > { %2284 = vmatprep.subr.bf16.mxu0 %v2689_v52 }
 0x7a7   : > { %2285 = vmatpush3.bf16.msra.mxu0 %v2690_v4 }
 0x7a8   : > { %2286 = vmatprep.subr.bf16.mxu0 %v2691_v53 }
 0x7ab   : > { %2287 = vmatpush3.bf16.msra.mxu0 %v2692_v54 }
 0x7ac   : > { %2288 = vmatprep.subr.bf16.mxu0 %v2693_v55 }
 0x7af   : > { %2289 = vmatpush3.bf16.msra.mxu0 %v2694_v56 }
 0x7b0   : > { %2290 = vmatprep.subr.bf16.mxu0 %v2695_v57 }
 0x7b3   : > { %2291 = vmatpush3.bf16.msra.mxu0 %v2696_v58 }
 0x7b4   : > { %2292 = vmatprep.subr.bf16.mxu0 %v2697_v59 }
 0x7b7   : > { %2293 = vmatpush3.bf16.msra.mxu0 %v2698_v5 }
 0x871   : > { %v1535_v61 = vpop.f32.mrb[12].mxu0 }
 0x872   : > { %v1536_v62 = vadd.f32 %v2195_v60, %v1535_v61  ;;  %v2388_v63 = vpop.f32.mrb[13].mxu0  ;;  %v2700_v61 = vld [vmem:[#allocation19 + $0x38] sm:$0xff]  }
 0x873   : > { %v1538_v2 = vpop.f32.mrb[14].mxu0 }
 0x874   : > { %v3782_v3 = vadd.f32 %v1536_v62, %v3658_v0  ;;  %v1539_v6 = vadd.f32 %v2195_v60, %v1538_v2  ;;  %v2389_v7 = vpop.f32.mrb[15].mxu0  ;;  %v2699_v60 = vld [vmem:[#allocation19 + $0x78] sm:$0xff]   ;;  %v1603_v62 = vlaneseq }
 0x875   : > { %2294 = vmatprep.subr.bf16.mxu0 %v2699_v60 }
 0x876   : > { %v3785_v8 = vadd.f32 %v1539_v6, %v3660_v1  ;;  %1544 = vadd.xlane.f32.xlu0 %v3782_v3  ;;  %2295 = vmatpush3.bf16.msra.mxu0 %v2700_v61  ;;  %v1604_v63 = vshrl.u32 %v1603_v62, 7  ;;  %v1601_v6 = vld [vmem:[#allocation17] sm:$0x3] }
 0x878   : > { %1546 = vadd.xlane.f32.xlu1 %v3785_v8  ;;  %v1605_v2 = vsub.s32 0, %v1604_v63  ;;  %v1609_v7 = vsub.s32 1, %v1604_v63 }
 0x87a   : > { %v1606_v9 = vrot.slane %v1601_v6, %v1605_v2  ;;  %v1610_v10 = vrot.slane %v1601_v6, %v1609_v7 }
 0x903   : > { %v1545_v13 = vpop.xlane.xlu0 %1544 }
 0x904   : > { %v1548_v0 = vmul.f32 0.0078125, %v1545_v13 }
 0x905   : > { %v1547_v14 = vpop.xlane.xlu1 %1546 }
 0x906   : > { %v1550_v15 = vsub.f32 %v3782_v3, %v1548_v0  ;;  %v1549_v16 = vmul.f32 0.0078125, %v1547_v14 }
 0x908   : > { %v1551_v1 = vsub.f32 %v3785_v8, %v1549_v16  ;;  %v1552_v17 = vmul.f32 %v1550_v15, %v1550_v15 }
 0x90a   : > { %1554 = vadd.xlane.f32.xlu0 %v1552_v17  ;;  %v1553_v18 = vmul.f32 %v1551_v1, %v1551_v1 }
 0x90e   : > { %1556 = vadd.xlane.f32.xlu0 %v1553_v18 }
 0x997   : > { %v1555_v35 = vpop.xlane.xlu0 %1554 }
 0x998   : > { %v1558_v36 = vmul.f32 0.0078125, %v1555_v35 }
 0x99a   : > { %v1560_v37 = vadd.f32 1e-05, %v1558_v36 }
 0x99b   : > { %v1557_v38 = vpop.xlane.xlu0 %1556 }
 0x99c   : > { %2737 = vrsqrt.f32 %v1560_v37  ;;  %v1559_v39 = vmul.f32 0.0078125, %v1557_v38 }
 0x99e   : > { %v1561_v40 = vadd.f32 1e-05, %v1559_v39 }
 0x9a0   : > { %2739 = vrsqrt.f32 %v1561_v40  ;;  %v2222_v40 = vld [vmem:[#allocation20] ss:$0 sm:$0xff] }
 0x9a6   : > { %v2738_v41 = vpop.eup %2737 }
 0x9a7   : > { %v1564_v42 = vmul.f32 %v2738_v41, %v1550_v15 }
 0x9a9   : > { %v1573_v46 = vmul.f32 %v2204_v43, %v1564_v42 }
 0x9aa   : > { %v2740_v44 = vpop.eup %2739 }
 0x9ab   : > { %v1565_v45 = vmul.f32 %v2740_v44, %v1551_v1  ;;  %v1582_v49 = vadd.f32 %v2205_v47, %v1573_v46 }
 0x9ad   : > { %v1574_v48 = vmul.f32 %v2204_v43, %v1565_v45 }
 0x9af   : > { %v1583_v50 = vadd.f32 %v2205_v47, %v1574_v48 }
 0x9b1   : > { %v1584_v51 = vpack.c.bf16 %v1583_v50, %v1582_v49 }
 0x9b3   : > { %1726 = vmatmul.mubr.bf16.vlgmr.msra.gmra.mrb[28].mxu1 %v1584_v51 }
 0xa86   : > { %v1727_v11 = vpop.f32.mrb[28].mxu1 }
 0xa87   : > { %v1728_v12 = vadd.f32 %v1727_v11, %v1606_v9  ;;  %v1729_v13 = vpop.f32.mrb[29].mxu1 }
 0xa88   : > { %v1730_v0 = vadd.f32 %v1729_v13, %v1610_v10  ;;  %v1731_v14 = vpop.f32.mrb[30].mxu1 }
 0xa89   : > { %v1740_v15 = vmul.f32 0.70710677, %v1728_v12  ;;  %v1732_v16 = vadd.f32 %v1731_v14, %v1606_v9  ;;  %v1733_v1 = vpop.f32.mrb[31].mxu1  ;;  %v1736_v27 = vmul.f32 0.5, %v1728_v12 }
 0xa8a   : > { %v1741_v17 = vmul.f32 0.70710677, %v1730_v0  ;;  %v1734_v18 = vadd.f32 %v1733_v1, %v1610_v10  ;;  %v1737_v31 = vmul.f32 0.5, %v1730_v0 }
 0xa8b   : > { %2741 = verf.f32 %v1740_v15  ;;  %v1742_v19 = vmul.f32 0.70710677, %v1732_v16  ;;  %v1738_v28 = vmul.f32 0.5, %v1732_v16 }
 0xa8c   : > { %2743 = verf.f32 %v1741_v17  ;;  %v1743_v20 = vmul.f32 0.70710677, %v1734_v18  ;;  %v1739_v32 = vmul.f32 0.5, %v1734_v18 }
 0xa8d   : > { %2745 = verf.f32 %v1742_v19 }
 0xa8e   : > { %2747 = verf.f32 %v1743_v20 }
 0xa95   : > { %v2742_v21 = vpop.eup %2741 }
 0xa96   : > { %v2744_v22 = vpop.eup %2743  ;;  %v1748_v23 = vadd.f32 1.0, %v2742_v21 }
 0xa97   : > { %v2746_v24 = vpop.eup %2745  ;;  %v1749_v25 = vadd.f32 1.0, %v2744_v22 }
 0xa98   : > { %v2748_v26 = vpop.eup %2747  ;;  %v1750_v29 = vadd.f32 1.0, %v2746_v24  ;;  %v1752_v30 = vmul.f32 %v1748_v23, %v1736_v27 }
 0xa99   : > { %v1751_v33 = vadd.f32 1.0, %v2748_v26  ;;  %v1753_v35 = vmul.f32 %v1749_v25, %v1737_v31 }
 0xa9a   : > { %v1754_v34 = vmul.f32 %v1750_v29, %v1738_v28 }
 0xa9b   : > { %v1755_v36 = vmul.f32 %v1751_v33, %v1739_v32 }
 0xa9c   : > { %v1756_v37 = vpack.c.bf16 %v1754_v34, %v1752_v30 }
 0xa9d   : > { %v1757_v38 = vpack.c.bf16 %v1755_v36, %v1753_v35 }
 0xa9f   : > { %1925 = vmatprep.mubr.bf16.mxu0 %v1757_v38 }
 0xaa0   : > { %1926 = vmatmul.mubr.bf16.vlgmr.msra.gmra.mrb[16].mxu0 %v1756_v37 }
 0xb73   : > { %v2296_v39 = vpop.f32.mrb[16].mxu0 }
 0xb74   : > { %v2297_v41 = vpop.f32.mrb[17].mxu0 }
 0xb75   : > { %v2298_v42 = vadd.f32 %v2297_v41, %v2296_v39  ;;  %v2299_v43 = vpop.f32.mrb[18].mxu0 }
 0xb76   : > { %v2300_v44 = vpop.f32.mrb[19].mxu0 }
 0xb77   : > { %v1928_v45 = vadd.f32 %v2298_v42, %v2222_v40  ;;  %v2301_v46 = vadd.f32 %v2300_v44, %v2299_v43 }
 0xb79   : > { %v1934_v47 = vadd.f32 %v1928_v45, %v3782_v3  ;;  %v1931_v48 = vadd.f32 %v2301_v46, %v2222_v40 }
 0xb7b   : > { %1936 = vst [vmem:[%s577_s3] sm:$0xff] %v1934_v47  ;;  %v1935_v49 = vadd.f32 %v1931_v48, %v3785_v8 }
 0xb7d   : > { %1937 = vst [vmem:[%s577_s3 + $0x8] sm:$0xff] %v1935_v49 }
 0xb7e   : > { %3100 = shalt.err (!%p3097_p9)
}
 0xb7f   : > { %s3101_s16 = scalar_lea.hbm %s3800_s28, 256  ;;  %s3105_s20 = scalar_lea.hbm %s3899_s12, 512 }
 0xb80   : > { %p3102_p7 = scmp.ne.s32.totalorder %s3800_s28, %s3101_s16  ;;  %p3106_p13 = scmp.lt.u32.totalorder %s3800_s28, %s3899_s12 }
 0xb81   : > { %p3107_p1 = scmp.lt.u32.totalorder %s3105_s20, %s3101_s16  ;;  %p3109_p2 = scmp.lt.u32.totalorder %s3101_s16, %s3800_s28 }
 0xb82   : > { %p3103_p10 = pnand %p3102_p7, %p3900_p8 }
 0xb83   : > { %p3108_p3 = por %p3107_p1, %p3106_p13 }
 0xb84   : > { %p3104_p4 = pneg %p3103_p10 }
 0xb85   : > { %p3110_p6 = por %p3109_p2, %p3108_p3 }
 0xb87   : > { %p3111_p11 = pnand %p3110_p6, %p3104_p4 }
 0xb89   : > { %3114 = shalt.err (!%p3111_p11)
}
 0xb8a   : > { %s3204_s30 = smov 128   ;;  %s3205_s27 = smov 8  }
 0xb8b   : > { %2436 = dma.vmem_to_hbm [thread:$0]  (%p3900_p8), %s3795_s2, 256, %s3800_s28, %s1939_s18, %s3204_s30, %s3204_s30, %s3205_s27  }
 0xb8c PF: > { %s1967_s25 = sand.u32 1, %s3165_s21   ;;  %p3901_p12 = scmp.ne.s32.totalorder %s3883_s1, 0 }
 0xb8d   : > { %p3902_p0 = scmp.ge.s32.totalorder %s3177_s24, 2  ;;  %s1968_s26 = scalar_lea.sflag [#allocation4], %s1967_s25 }
 0xb8f   : > { %p2477_p5 = pnand %p3902_p0, %p3901_p12 }
 0xb91   : > { %3160 = dma.done.wait (!%p2477_p5), %s1968_s26, 256  }
 0xb92   : > { %3162 = vsyncadd (!%p2477_p5), %s1968_s26, 4294967040  ;;  %p31_p9 = scmp.ge.s32.totalorder %s3548_s13, 4   ;;  %s3903_s21 = smov %s3169_s22 }
 0xb93   : > { %s3904_s22 = smov %s3173_s23  ;;  %s3905_s23 = smov %s3560_s14 }
 0xb94   : > { %s3906_s24 = smov %s3548_s13  ;;  %33 = sbr.rel (!%p31_p9) target bundleno = 17 (0x11), region = 157 }
 0xb9b   :  { %1973 = vsyncpa [#allocation3], 1 }
 0xb9c   :  { %1975 = vsyncpa [#allocation3 + $0x1], 1 }
 0xb9d   :  { %1976 = vsyncpa [#allocation6], 1 }
 0xb9e   :  { %1977 = vsyncpa [#allocation9], 1 }
 0xb9f   :  { %1978 = vsyncpa [#allocation12], 1 }
 0xba0   :  { %1979 = vsyncpa [#allocation15], 1 }
 0xba1   :  { %1980 = vsyncpa [#allocation18], 1 }
 0xba2   :  { %1981 = vsyncpa [#allocation21], 1 }
 0xba3   :  { %1982 = vsyncpa [#allocation4], 1 }
 0xba4   :  { %1984 = vsyncpa [#allocation4 + $0x1], 1 }

// kernel: tpu_custom_call.1
= control target key start
LH: loop header
LB: loop body
LE: loop exit
PB: predicated region body
PF: predicated region fallthrough
CT: control target
= control target key end

     0   :  { %s3845_s0 = inlined_call_operand.hbm [shape: f32[2,16,128], index: 0, kind: input, shape index: {}]   ;;  %s3846_s1 = inlined_call_operand.hbm [shape: f32[1,128], index: 1, kind: input, shape index: {}]   ;;  %s3847_s2 = inlined_call_operand.hbm [shape: f32[1,128], index: 2, kind: input, shape index: {}]   ;;  %s3848_s3 = inlined_call_operand.hbm [shape: bf16[128,384], index: 3, kind: input, shape index: {}]   ;;  %s3849_s4 = inlined_call_operand.hbm [shape: bf16[128,128], index: 4, kind: input, shape index: {}]   ;;  %s3850_s5 = inlined_call_operand.hbm [shape: f32[1,128], index: 5, kind: input, shape index: {}]   ;;  %s3851_s6 = inlined_call_operand.hbm [shape: f32[1,128], index: 6, kind: input, shape index: {}]   ;;  %s3852_s7 = inlined_call_operand.hbm [shape: f32[1,128], index: 7, kind: input, shape index: {}]   ;;  %s3853_s8 = inlined_call_operand.hbm [shape: bf16[128,256], index: 8, kind: input, shape index: {}]   ;;  %s3854_s9 = inlined_call_operand.hbm [shape: f32[1,256], index: 9, kind: input, shape index: {}]   ;;  %s3855_s10 = inlined_call_operand.hbm [shape: bf16[256,128], index: 10, kind: input, shape index: {}]   ;;  %s3856_s11 = inlined_call_operand.hbm [shape: f32[1,128], index: 11, kind: input, shape index: {}]   ;;  %s3857_s12 = inlined_call_operand.hbm [shape: f32[2,16,128], index: 12, kind: output, shape index: {}]  }
   0x1   :  { %3865 = sst [smem:[#allocation32_spill]] %s3846_s1 }
   0x2   :  { %3866 = sst [smem:[#allocation33_spill]] %s3847_s2 }
   0x3   :  { %3867 = sst [smem:[#allocation34_spill]] %s3848_s3 }
   0x4   :  { %3868 = sst [smem:[#allocation35_spill]] %s3850_s5 }
   0x5   :  { %3869 = sst [smem:[#allocation36_spill]] %s3857_s12 }
   0x6   :  { %17 = vsyncpa [#allocation3], 0 }
   0x7   :  { %19 = vsyncpa [#allocation3 + $0x1], 0 }
   0x8   :  { %20 = vsyncpa [#allocation6], 0 }
   0x9   :  { %21 = vsyncpa [#allocation9], 0 }
   0xa   :  { %22 = vsyncpa [#allocation12], 0 }
   0xb   :  { %23 = vsyncpa [#allocation15], 0 }
   0xc   :  { %24 = vsyncpa [#allocation18], 0 }
   0xd   :  { %25 = vsyncpa [#allocation21], 0 }
   0xe   :  { %26 = vsyncpa [#allocation4], 0 }
   0xf   :  { %28 = vsyncpa [#allocation4 + $0x1], 0  ;;  %s3271_s21 = smov 0   ;;  %s3273_s22 = smov 0  }
  0x10   :  { %s3275_s23 = smov 0   ;;  %s3277_s24 = smov 0  }
  0x11 LB: > { %s3179_s25 = smov [#allocation5]   ;;  %s3292_s27 = sadd.s32 4294967295, %s3177_s24   ;;  %s3177_s24 = sphi %s3277_s24, %s3906_s24   ;;  %s3173_s23 = sphi %s3275_s23, %s3905_s23   ;;  %s3169_s22 = sphi %s3273_s22, %s3904_s22   ;;  %s3165_s21 = sphi %s3271_s21, %s3903_s21  }
  0x12   : > { %s335_s26 = sshll.u32 %s3179_s25, 4  ;;  %p2131_p0 = scmp.ge.s32.totalorder %s3177_s24, 1  ;;  %s3297_s26 = int_to_ptr.vmem [resolvable:$true] %s335_s26 }
  0x13   : > { %p3860_p1 = scmp.eq.s32.totalorder %s3292_s27, 0  ;;  %p322_p2 = scmp.lt.s32.totalorder %s3177_s24, 3 }
  0x14   : > { %s3180_s29 = smov [#allocation8]   ;;  %s3181_s14 = smov [#allocation11]  }
  0x15   : > { %p3299_p3 = pnand %p2131_p0, %p322_p2  ;;  %s356_s30 = sshll.u32 %s3180_s29, 4  ;;  %s3306_s30 = int_to_ptr.vmem [resolvable:$true] %s356_s30 }
  0x16   : > { %s383_s15 = sshll.u32 %s3181_s14, 4  ;;  %s3873_s1 = sld [smem:[#allocation32_spill]]  ;;  %s3314_s15 = int_to_ptr.vmem [resolvable:$true] %s383_s15 }
  0x17   : > { %s3870_s28 = scalar_select %p3299_p3, 1, 0 }
  0x18   : > { %p2438_p5 = pneg %p3299_p3 }
  0x19   : > { %3871 = sst [smem:[#allocation31_spill]] %s3870_s28 }
  0x1a   : > { %p3310_p6 = pnand %p2438_p5, %p3860_p1 }
  0x1c   : > { %s2749_s18 = scalar_lea.hbm %s3873_s1, 16  ;;  %p3324_p8 = pneg %p3310_p6 }
  0x1d   : > { %p2750_p7 = scmp.ne.s32.totalorder %s3873_s1, %s2749_s18  ;;  %p2756_p11 = scmp.lt.u32.totalorder %s2749_s18, %s3873_s1 }
  0x1f   : > { %p2752_p9 = pnand %p3324_p8, %p2750_p7 }
  0x21   : > { %p2753_p10 = pneg %p2752_p9 }
  0x23   : > { %p2758_p12 = pnand %p2756_p11, %p2753_p10 }
  0x25   : > { %2761 = shalt.err (!%p2758_p12)
}
  0x26   : > { %s2762_s16 = scalar_lea.vmem %s3297_s26, 16  ;;  %s2769_s17 = scalar_lea.vmem %s3297_s26, 32 }
  0x27   : > { %p2763_p13 = scmp.ne.s32.totalorder %s3297_s26, %s2762_s16  ;;  %p2770_p5 = scmp.lt.s32.totalorder %s3297_s26, %s3297_s26 }
  0x28   : > { %p2771_p7 = scmp.lt.s32.totalorder %s2769_s17, %s2762_s16 }
  0x29   : > { %p2765_p0 = pnand %p2763_p13, %p3324_p8 }
  0x2a   : > { %p2772_p9 = por %p2771_p7, %p2770_p5 }
  0x2b   : > { %p2766_p2 = pneg %p2765_p0 }
  0x2d   : > { %p2773_p4 = pnand %p2772_p9, %p2766_p2 }
  0x2f   : > { %2776 = shalt.err (!%p2773_p4)
}
  0x30   : > { %2441 = dma.hbm_to_vmem [thread:$0]  (!%p3310_p6), %s3873_s1, 16, %s3297_s26, [#allocation6]  }
  0x31   : > { %s3875_s3 = sld [smem:[#allocation34_spill]] }
  0x37   : > { %s2777_s14 = scalar_lea.hbm %s3875_s3, 3072 }
  0x38   : > { %p2778_p10 = scmp.ne.s32.totalorder %s3875_s3, %s2777_s14  ;;  %p2784_p4 = scmp.lt.u32.totalorder %s2777_s14, %s3875_s3 }
  0x3a   : > { %p2780_p11 = pnand %p2778_p10, %p3324_p8 }
  0x3c   : > { %p2781_p12 = pneg %p2780_p11 }
  0x3e   : > { %p2786_p13 = pnand %p2784_p4, %p2781_p12 }
  0x40   : > { %2789 = shalt.err (!%p2786_p13)
}
  0x41   : > { %s2790_s26 = scalar_lea.vmem %s3306_s30, 3072  ;;  %p2798_p7 = scmp.lt.s32.totalorder %s3306_s30, %s3306_s30 }
  0x42   : > { %p2791_p0 = scmp.ne.s32.totalorder %s3306_s30, %s2790_s26  ;;  %p2799_p9 = scmp.lt.s32.totalorder %s2790_s26, %s2790_s26 }
  0x44   : > { %p2793_p2 = pnand %p2791_p0, %p3324_p8  ;;  %p2800_p10 = por %p2799_p9, %p2798_p7 }
  0x46   : > { %p2794_p5 = pneg %p2793_p2 }
  0x48   : > { %p2801_p11 = pnand %p2800_p10, %p2794_p5 }
  0x4a   : > { %2804 = shalt.err (!%p2801_p11)
}
  0x4b   : > { %s3182_s12 = smov 192   ;;  %s3183_s28 = smov 12  }
  0x4c   : > { %2447 = dma.hbm_to_vmem [thread:$0]  (!%p3310_p6), %s3875_s3, 3072, %s3306_s30, [#allocation9], %s3182_s12, %s3182_s12, %s3183_s28  }
  0x4d   : > { %s3876_s5 = sld [smem:[#allocation35_spill]] }
  0x53   : > { %s2805_s14 = scalar_lea.hbm %s3876_s5, 16 }
  0x54   : > { %p2806_p12 = scmp.ne.s32.totalorder %s3876_s5, %s2805_s14  ;;  %p2812_p0 = scmp.lt.u32.totalorder %s2805_s14, %s3876_s5 }
  0x56   : > { %p2808_p4 = pnand %p2806_p12, %p3324_p8 }
  0x58   : > { %p2809_p13 = pneg %p2808_p4 }
  0x5a   : > { %p2814_p2 = pnand %p2812_p0, %p2809_p13 }
  0x5c   : > { %2817 = shalt.err (!%p2814_p2)
}
  0x5d   : > { %s2818_s30 = scalar_lea.vmem %s3314_s15, 16  ;;  %s2825_s12 = scalar_lea.vmem %s3314_s15, 32 }
  0x5e   : > { %p2819_p5 = scmp.ne.s32.totalorder %s3314_s15, %s2818_s30  ;;  %p2826_p10 = scmp.lt.s32.totalorder %s3314_s15, %s3314_s15 }
  0x5f   : > { %p2827_p11 = scmp.lt.s32.totalorder %s2825_s12, %s2818_s30 }
  0x60   : > { %p2821_p7 = pnand %p2819_p5, %p3324_p8 }
  0x61   : > { %p2828_p12 = por %p2827_p11, %p2826_p10 }
  0x62   : > { %p2822_p9 = pneg %p2821_p7 }
  0x64   : > { %p2829_p4 = pnand %p2828_p12, %p2822_p9 }
  0x66   : > { %2832 = shalt.err (!%p2829_p4)
}
  0x67   : > { %2453 = dma.hbm_to_vmem [thread:$0]  (!%p3310_p6), %s3876_s5, 16, %s3314_s15, [#allocation12]  }
  0x68   : > { %s3184_s18 = smov [#allocation14]   ;;  %s3185_s20 = smov [#allocation17]  }
  0x69   : > { %s405_s19 = sshll.u32 %s3184_s18, 4  ;;  %s429_s29 = sshll.u32 %s3185_s20, 4  ;;  %s406_s19 = int_to_ptr.vmem [resolvable:$true] %s405_s19  ;;  %s430_s29 = int_to_ptr.vmem [resolvable:$true] %s429_s29 }
  0x6a   : > { %s2833_s17 = scalar_lea.hbm %s3852_s7, 16 }
  0x6b   : > { %p2834_p13 = scmp.ne.s32.totalorder %s3852_s7, %s2833_s17  ;;  %p2840_p5 = scmp.lt.u32.totalorder %s2833_s17, %s3852_s7 }
  0x6d   : > { %p2836_p0 = pnand %p2834_p13, %p3324_p8 }
  0x6f   : > { %p2837_p2 = pneg %p2836_p0 }
  0x71   : > { %p2842_p7 = pnand %p2840_p5, %p2837_p2 }
  0x73   : > { %2845 = shalt.err (!%p2842_p7)
}
  0x74   : > { %s2846_s15 = scalar_lea.vmem %s406_s19, 16  ;;  %s2853_s28 = scalar_lea.vmem %s406_s19, 32 }
  0x75   : > { %p2847_p9 = scmp.ne.s32.totalorder %s406_s19, %s2846_s15  ;;  %p2854_p12 = scmp.lt.s32.totalorder %s406_s19, %s406_s19 }
  0x76   : > { %p2855_p4 = scmp.lt.s32.totalorder %s2853_s28, %s2846_s15 }
  0x77   : > { %p2849_p10 = pnand %p2847_p9, %p3324_p8 }
  0x78   : > { %p2856_p1 = por %p2855_p4, %p2854_p12 }
  0x79   : > { %p2850_p11 = pneg %p2849_p10 }
  0x7b   : > { %p2857_p3 = pnand %p2856_p1, %p2850_p11 }
  0x7d   : > { %2860 = shalt.err (!%p2857_p3)
}
  0x7e   : > { %2459 = dma.hbm_to_vmem [thread:$0]  (!%p3310_p6), %s3852_s7, 16, %s406_s19, [#allocation15]  }
  0x7f   : > { %s2861_s17 = scalar_lea.hbm %s3854_s9, 32 }
  0x80   : > { %p2862_p13 = scmp.ne.s32.totalorder %s3854_s9, %s2861_s17  ;;  %p2868_p3 = scmp.lt.u32.totalorder %s2861_s17, %s3854_s9 }
  0x82   : > { %p2864_p0 = pnand %p2862_p13, %p3324_p8 }
  0x84   : > { %p2865_p1 = pneg %p2864_p0 }
  0x86   : > { %p2870_p2 = pnand %p2868_p3, %p2865_p1 }
  0x88   : > { %2873 = shalt.err (!%p2870_p2)
}
  0x89   : > { %s2874_s15 = scalar_lea.vmem %s430_s29, 32  ;;  %p2882_p10 = scmp.lt.s32.totalorder %s430_s29, %s430_s29 }
  0x8a   : > { %p2875_p5 = scmp.ne.s32.totalorder %s430_s29, %s2874_s15  ;;  %p2883_p11 = scmp.lt.s32.totalorder %s2874_s15, %s2874_s15 }
  0x8c   : > { %p2877_p7 = pnand %p2875_p5, %p3324_p8  ;;  %p2884_p12 = por %p2883_p11, %p2882_p10 }
  0x8e   : > { %p2878_p9 = pneg %p2877_p7 }
  0x90   : > { %p2885_p4 = pnand %p2884_p12, %p2878_p9 }
  0x92   : > { %2888 = shalt.err (!%p2885_p4)
}
  0x93   : > { %2465 = dma.hbm_to_vmem [thread:$0]  (!%p3310_p6), %s3854_s9, 32, %s430_s29, [#allocation18]  }
  0x94   : > { %s3186_s18 = smov [#allocation7]   ;;  %s3187_s14 = smov [#allocation10]  }
  0x95   : > { %s346_s20 = sshll.u32 %s3186_s18, 4  ;;  %s369_s16 = sshll.u32 %s3187_s14, 4  ;;  %s347_s20 = int_to_ptr.vmem [resolvable:$true] %s346_s20  ;;  %s370_s16 = int_to_ptr.vmem [resolvable:$true] %s369_s16 }
  0x96   : > { %s3877_s2 = sld [smem:[#allocation33_spill]] }
  0x9c   : > { %s2889_s30 = scalar_lea.hbm %s3877_s2, 16 }
  0x9d   : > { %p2890_p13 = scmp.ne.s32.totalorder %s3877_s2, %s2889_s30  ;;  %p2896_p3 = scmp.lt.u32.totalorder %s2889_s30, %s3877_s2 }
  0x9f   : > { %p2892_p0 = pnand %p2890_p13, %p3324_p8 }
  0xa1   : > { %p2893_p1 = pneg %p2892_p0 }
  0xa3   : > { %p2898_p2 = pnand %p2896_p3, %p2893_p1 }
  0xa5   : > { %2901 = shalt.err (!%p2898_p2)
}
  0xa6   : > { %s2902_s29 = scalar_lea.vmem %s347_s20, 16  ;;  %s2909_s28 = scalar_lea.vmem %s347_s20, 32 }
  0xa7   : > { %p2903_p5 = scmp.ne.s32.totalorder %s347_s20, %s2902_s29  ;;  %p2910_p10 = scmp.lt.s32.totalorder %s347_s20, %s347_s20 }
  0xa8   : > { %p2911_p11 = scmp.lt.s32.totalorder %s2909_s28, %s2902_s29 }
  0xa9   : > { %p2905_p7 = pnand %p2903_p5, %p3324_p8 }
  0xaa   : > { %p2912_p12 = por %p2911_p11, %p2910_p10 }
  0xab   : > { %p2906_p9 = pneg %p2905_p7 }
  0xad   : > { %p2913_p4 = pnand %p2912_p12, %p2906_p9 }
  0xaf   : > { %2916 = shalt.err (!%p2913_p4)
}
  0xb0   : > { %2444 = dma.hbm_to_vmem [thread:$0]  (!%p3310_p6), %s3877_s2, 16, %s347_s20, [#allocation6]  }
  0xb1   : > { %s2917_s30 = scalar_lea.hbm %s3849_s4, 1024 }
  0xb2   : > { %p2918_p13 = scmp.ne.s32.totalorder %s3849_s4, %s2917_s30  ;;  %p2924_p3 = scmp.lt.u32.totalorder %s2917_s30, %s3849_s4 }
  0xb4   : > { %p2920_p0 = pnand %p2918_p13, %p3324_p8 }
  0xb6   : > { %p2921_p1 = pneg %p2920_p0 }
  0xb8   : > { %p2926_p2 = pnand %p2924_p3, %p2921_p1 }
  0xba   : > { %2929 = shalt.err (!%p2926_p2)
}
  0xbb   : > { %s2930_s29 = scalar_lea.vmem %s370_s16, 1024  ;;  %p2938_p10 = scmp.lt.s32.totalorder %s370_s16, %s370_s16 }
  0xbc   : > { %p2931_p5 = scmp.ne.s32.totalorder %s370_s16, %s2930_s29  ;;  %p2939_p11 = scmp.lt.s32.totalorder %s2930_s29, %s2930_s29 }
  0xbe   : > { %p2933_p7 = pnand %p2931_p5, %p3324_p8  ;;  %p2940_p12 = por %p2939_p11, %p2938_p10 }
  0xc0   : > { %p2934_p9 = pneg %p2933_p7 }
  0xc2   : > { %p2941_p4 = pnand %p2940_p12, %p2934_p9 }
  0xc4   : > { %2944 = shalt.err (!%p2941_p4)
}
  0xc5   : > { %s3862_s20 = smov 64   ;;  %s3863_s28 = smov 4  }
  0xc6   : > { %2450 = dma.hbm_to_vmem [thread:$0]  (!%p3310_p6), %s3849_s4, 1024, %s370_s16, [#allocation9], %s3862_s20, %s3862_s20, %s3863_s28  }
  0xc7   : > { %s3190_s17 = smov [#allocation13]   ;;  %s3191_s30 = smov [#allocation16]  }
  0xc8   : > { %s394_s26 = sshll.u32 %s3190_s17, 4  ;;  %s415_s12 = sshll.u32 %s3191_s30, 4  ;;  %s395_s26 = int_to_ptr.vmem [resolvable:$true] %s394_s26  ;;  %s416_s12 = int_to_ptr.vmem [resolvable:$true] %s415_s12 }
  0xc9   : > { %s2945_s19 = scalar_lea.hbm %s3851_s6, 16 }
  0xca   : > { %p2946_p13 = scmp.ne.s32.totalorder %s3851_s6, %s2945_s19  ;;  %p2952_p3 = scmp.lt.u32.totalorder %s2945_s19, %s3851_s6 }
  0xcc   : > { %p2948_p0 = pnand %p2946_p13, %p3324_p8 }
  0xce   : > { %p2949_p1 = pneg %p2948_p0 }
  0xd0   : > { %p2954_p2 = pnand %p2952_p3, %p2949_p1 }
  0xd2   : > { %2957 = shalt.err (!%p2954_p2)
}
  0xd3   : > { %s2958_s16 = scalar_lea.vmem %s395_s26, 16  ;;  %s2965_s18 = scalar_lea.vmem %s395_s26, 32 }
  0xd4   : > { %p2959_p5 = scmp.ne.s32.totalorder %s395_s26, %s2958_s16  ;;  %p2966_p10 = scmp.lt.s32.totalorder %s395_s26, %s395_s26 }
  0xd5   : > { %p2967_p11 = scmp.lt.s32.totalorder %s2965_s18, %s2958_s16 }
  0xd6   : > { %p2961_p7 = pnand %p2959_p5, %p3324_p8 }
  0xd7   : > { %p2968_p12 = por %p2967_p11, %p2966_p10 }
  0xd8   : > { %p2962_p9 = pneg %p2961_p7 }
  0xda   : > { %p2969_p4 = pnand %p2968_p12, %p2962_p9 }
  0xdc   : > { %2972 = shalt.err (!%p2969_p4)
}
  0xdd   : > { %2456 = dma.hbm_to_vmem [thread:$0]  (!%p3310_p6), %s3851_s6, 16, %s395_s26, [#allocation12]  }
  0xde   : > { %s2973_s17 = scalar_lea.hbm %s3853_s8, 2048 }
  0xdf   : > { %p2974_p13 = scmp.ne.s32.totalorder %s3853_s8, %s2973_s17  ;;  %p2980_p3 = scmp.lt.u32.totalorder %s2973_s17, %s3853_s8 }
  0xe1   : > { %p2976_p0 = pnand %p2974_p13, %p3324_p8 }
  0xe3   : > { %p2977_p1 = pneg %p2976_p0 }
  0xe5   : > { %p2982_p2 = pnand %p2980_p3, %p2977_p1 }
  0xe7   : > { %2985 = shalt.err (!%p2982_p2)
}
  0xe8   : > { %s2986_s29 = scalar_lea.vmem %s416_s12, 2048  ;;  %p2994_p10 = scmp.lt.s32.totalorder %s416_s12, %s416_s12 }
  0xe9   : > { %p2987_p5 = scmp.ne.s32.totalorder %s416_s12, %s2986_s29  ;;  %p2995_p11 = scmp.lt.s32.totalorder %s2986_s29, %s2986_s29 }
  0xeb   : > { %p2989_p7 = pnand %p2987_p5, %p3324_p8  ;;  %p2996_p12 = por %p2995_p11, %p2994_p10 }
  0xed   : > { %p2990_p9 = pneg %p2989_p7 }
  0xef   : > { %p2997_p4 = pnand %p2996_p12, %p2990_p9 }
  0xf1   : > { %3000 = shalt.err (!%p2997_p4)
}
  0xf2   : > { %s3192_s26 = smov 128   ;;  %s3193_s16 = smov 8  }
  0xf3   : > { %2462 = dma.hbm_to_vmem [thread:$0]  (!%p3310_p6), %s3853_s8, 2048, %s416_s12, [#allocation15], %s3192_s26, %s3192_s26, %s3193_s16  }
  0xf4   : > { %s3194_s14 = smov [#allocation19]   ;;  %s3195_s5 = smov [#allocation20]  }
  0xf5   : > { %s439_s3 = sshll.u32 %s3194_s14, 4  ;;  %s453_s17 = sshll.u32 %s3195_s5, 4  ;;  %s440_s3 = int_to_ptr.vmem [resolvable:$true] %s439_s3  ;;  %s454_s17 = int_to_ptr.vmem [resolvable:$true] %s453_s17 }
  0xf6   : > { %s3001_s15 = scalar_lea.hbm %s3855_s10, 2048 }
  0xf7   : > { %p3002_p13 = scmp.ne.s32.totalorder %s3855_s10, %s3001_s15  ;;  %p3008_p3 = scmp.lt.u32.totalorder %s3001_s15, %s3855_s10 }
  0xf9   : > { %p3004_p0 = pnand %p3002_p13, %p3324_p8 }
  0xfb   : > { %p3005_p1 = pneg %p3004_p0 }
  0xfd   : > { %p3010_p2 = pnand %p3008_p3, %p3005_p1 }
  0xff   : > { %3013 = shalt.err (!%p3010_p2)
}
 0x100   : > { %s3014_s12 = scalar_lea.vmem %s440_s3, 2048  ;;  %p3022_p10 = scmp.lt.s32.totalorder %s440_s3, %s440_s3 }
 0x101   : > { %p3015_p5 = scmp.ne.s32.totalorder %s440_s3, %s3014_s12  ;;  %p3023_p11 = scmp.lt.s32.totalorder %s3014_s12, %s3014_s12 }
 0x103   : > { %p3017_p7 = pnand %p3015_p5, %p3324_p8  ;;  %p3024_p12 = por %p3023_p11, %p3022_p10 }
 0x105   : > { %p3018_p9 = pneg %p3017_p7 }
 0x107   : > { %p3025_p4 = pnand %p3024_p12, %p3018_p9 }
 0x109   : > { %3028 = shalt.err (!%p3025_p4)
}
 0x10a   : > { %s3878_s18 = smov 4   ;;  %s3879_s2 = smov 64  }
 0x10b   : > { %2468 = dma.hbm_to_vmem [thread:$0]  (!%p3310_p6), %s3855_s10, 2048, %s440_s3, [#allocation18], %s3879_s2, %s3879_s2, %s3878_s18  }
 0x10c   : > { %s3029_s30 = scalar_lea.hbm %s3856_s11, 16 }
 0x10d   : > { %p3030_p13 = scmp.ne.s32.totalorder %s3856_s11, %s3029_s30  ;;  %p3036_p3 = scmp.lt.u32.totalorder %s3029_s30, %s3856_s11 }
 0x10f   : > { %p3032_p0 = pnand %p3030_p13, %p3324_p8 }
 0x111   : > { %p3033_p1 = pneg %p3032_p0 }
 0x113   : > { %p3038_p2 = pnand %p3036_p3, %p3033_p1 }
 0x115   : > { %3041 = shalt.err (!%p3038_p2)
}
 0x116   : > { %s3042_s12 = scalar_lea.vmem %s454_s17, 16  ;;  %s3049_s3 = scalar_lea.vmem %s454_s17, 32 }
 0x117   : > { %p3043_p5 = scmp.ne.s32.totalorder %s454_s17, %s3042_s12  ;;  %p3050_p10 = scmp.lt.s32.totalorder %s454_s17, %s454_s17 }
 0x118   : > { %p3051_p11 = scmp.lt.s32.totalorder %s3049_s3, %s3042_s12 }
 0x119   : > { %p3045_p7 = pnand %p3043_p5, %p3324_p8 }
 0x11a   : > { %p3052_p12 = por %p3051_p11, %p3050_p10 }
 0x11b   : > { %p3046_p9 = pneg %p3045_p7 }
 0x11d   : > { %p3053_p4 = pnand %p3052_p12, %p3046_p9 }
 0x11f   : > { %3056 = shalt.err (!%p3053_p4)
}
 0x120   : > { %2471 = dma.hbm_to_vmem [thread:$0]  (!%p3310_p6), %s3856_s11, 16, %s454_s17, [#allocation21]  }
 0x121   : > { %s2130_s25 = sadd.s32 4294967294, %s3177_s24   ;;  %s3548_s13 = sadd.s32 1, %s3177_s24  }
 0x122   : > { %s41_s20 = sadd.s32 1, %s3173_s23  ;;  %s38_s28 = ssub.s32 %s3177_s24, %s3548_s13 }
 0x123   : > { %p48_p8 = scmp.ne.s32.totalorder %s3173_s23, %s3169_s22  ;;  %p39_p13 = scmp.eq.s32.totalorder %s38_s28, 0 }
 0x124   : > { %p49_p0 = scmp.eq.s32.totalorder %s3177_s24, 0  ;;  %p54_p1 = scmp.ne.s32.totalorder %s3169_s22, %s3165_s21 }
 0x125   : > { %p309_p3 = scmp.eq.s32.totalorder %s3292_s27, 1  ;;  %p3880_p5 = scmp.eq.s32.totalorder %s3292_s27, 0 }
 0x126   : > { %s3560_s14 = scalar_select %p39_p13, %s3173_s23, %s41_s20  }
 0x127   : > { %p50_p2 = por %p49_p0, %p48_p8  ;;  %p3564_p7 = por %p3880_p5, %p54_p1 }
 0x128   : > { %p3568_p6 = por %p309_p3, %p48_p8  ;;  %p315_p9 = scmp.eq.s32.totalorder %s2130_s25, 1 }
 0x129   : > { %p2491_p10 = scmp.lt.s32.totalorder %s3177_s24, 2  ;;  %s464_s30 = sand.u32 1, %s3173_s23  }
 0x12a   : > { %s3882_s17 = scalar_select %p3568_p6, 1, 0 }
 0x12b   : > { %p3574_p11 = por %p315_p9, %p54_p1  ;;  %s2144_s15 = sshll.u32 %s464_s30, 4 }
 0x12c   : > { %s2244_s19 = sshll.u32 %s3177_s24, 8  ;;  %s468_s18 = scalar_lea.vmem [#allocation2], %s2144_s15 }
 0x12d   : > { %s3883_s1 = scalar_select %p3574_p11, 1, 0 }
 0x12e   : > { %s3582_s3 = scalar_lea.hbm %s3845_s0, %s2244_s19  ;;  %s475_s2 = sshll.u32 %s468_s18, 4  ;;  %s3588_s2 = int_to_ptr.vmem [resolvable:$true] %s475_s2 }
 0x12f   : > { %p3584_p12 = pnand %p2491_p10, %p50_p2  ;;  %s3590_s20 = scalar_lea.sflag [#allocation3], %s464_s30 }
 0x130   : > { %s3057_s28 = scalar_lea.hbm %s3582_s3, 256  ;;  %s3062_s29 = scalar_lea.hbm %s3845_s0, 512 }
 0x131   : > { %p3058_p4 = scmp.ne.s32.totalorder %s3582_s3, %s3057_s28  ;;  %p3059_p8 = pneg %p3584_p12 }
 0x132   : > { %p3063_p1 = scmp.lt.u32.totalorder %s3582_s3, %s3845_s0  ;;  %p3064_p3 = scmp.lt.u32.totalorder %s3062_s29, %s3057_s28 }
 0x133   : > { %p3060_p13 = pnand %p3059_p8, %p3058_p4  ;;  %p3066_p5 = scmp.lt.u32.totalorder %s3057_s28, %s3582_s3 }
 0x134   : > { %p3065_p2 = por %p3064_p3, %p3063_p1 }
 0x135   : > { %p3061_p0 = pneg %p3060_p13 }
 0x136   : > { %p3067_p9 = por %p3066_p5, %p3065_p2 }
 0x138   : > { %p3068_p10 = pnand %p3067_p9, %p3061_p0 }
 0x13a   : > { %3071 = shalt.err (!%p3068_p10)
}
 0x13b   : > { %s3072_s30 = scalar_lea.vmem %s3588_s2, 256  ;;  %s3196_s15 = smov [#allocation2]  }
 0x13c   : > { %p3073_p4 = scmp.ne.s32.totalorder %s3588_s2, %s3072_s30  ;;  %s3077_s19 = sshll.u32 %s3196_s15, 4  ;;  %s3078_s19 = int_to_ptr.vmem [resolvable:$false] %s3077_s19 }
 0x13d   : > { %s3079_s12 = scalar_lea.vmem %s3078_s19, 512  ;;  %p3080_p6 = scmp.lt.s32.totalorder %s3588_s2, %s3078_s19 }
 0x13e   : > { %p3075_p13 = pnand %p3073_p4, %p3059_p8  ;;  %p3081_p1 = scmp.lt.s32.totalorder %s3079_s12, %s3072_s30 }
 0x140   : > { %p3076_p11 = pneg %p3075_p13  ;;  %p3082_p3 = por %p3081_p1, %p3080_p6 }
 0x142   : > { %p3083_p2 = pnand %p3082_p3, %p3076_p11 }
 0x144   : > { %3086 = shalt.err (!%p3083_p2)
}
 0x145   : > { %2475 = dma.hbm_to_vmem [thread:$0]  (!%p3584_p12), %s3582_s3, 256, %s3588_s2, %s3590_s20, %s3192_s26, %s3192_s26, %s3193_s16  }
 0x146   : > { %s3885_s28 = sld [smem:[#allocation31_spill]] }
 0x14c   : > { %p3886_p8 = scmp.ne.s32.totalorder %s3885_s28, 0 }
 0x14d   : > { %s3624_s29 = sand.u32 (!%p3886_p8), 1, %s3169_s22  }
 0x14e   : > { %487 = sbr.rel (%p3886_p8) target bundleno = 2956 (0xb8c), region = 68  ;;  %s2148_s18 = sshll.u32 (!%p3886_p8), %s3624_s29, 4 }
 0x14f   : > { %s490_s30 = scalar_lea.sflag (!%p3886_p8), [#allocation3], %s3624_s29  ;;  %s493_s25 = scalar_lea.vmem (!%p3886_p8), [#allocation2], %s2148_s18 }
 0x155   : > { %3132 = dma.done.wait (%p3564_p7), %s490_s30, 256  }
 0x156   : > { %3134 = vsyncadd (%p3564_p7), %s490_s30, 4294967040  ;;  %p3887_p6 = scmp.eq.s32.totalorder %s3292_s27, 0 }
 0x158   : > { %3136 = dma.done.wait (%p3887_p6), [#allocation6], 32   ;;  %p3888_p11 = pmov %p3887_p6 }
 0x159   : > { %p3889_p12 = pmov %p3887_p6 }
 0x15a   : > { %3138 = vsyncadd (%p3888_p11), [#allocation6], 4294967264 }
 0x15b   : > { %3140 = dma.done.wait (%p3889_p12), [#allocation9], 4096   ;;  %p3890_p0 = pmov %p3887_p6 }
 0x15d   : > { %3142 = vsyncadd (%p3890_p0), [#allocation9], 4294963200  ;;  %p3891_p5 = pmov %p3890_p0 }
 0x15e   : > { %p3892_p9 = pmov %p3890_p0 }
 0x15f   : > { %3144 = dma.done.wait (%p3891_p5), [#allocation12], 32  }
 0x160   : > { %3146 = vsyncadd (%p3892_p9), [#allocation12], 4294967264  ;;  %p3893_p7 = pmov %p3890_p0 }
 0x161   : > { %p3894_p10 = pmov %p3890_p0 }
 0x162   : > { %3148 = dma.done.wait (%p3893_p7), [#allocation15], 2064  }
 0x163   : > { %3150 = vsyncadd (%p3894_p10), [#allocation15], 4294965232  ;;  %p3895_p4 = pmov %p3890_p0 }
 0x164   : > { %p3896_p13 = pmov %p3890_p0 }
 0x165   : > { %3152 = dma.done.wait (%p3895_p4), [#allocation18], 2080  }
 0x166   : > { %3154 = vsyncadd (%p3896_p13), [#allocation18], 4294965216  ;;  %p3897_p1 = pmov %p3890_p0 }
 0x167   : > { %p3898_p3 = pmov %p3890_p0 }
 0x168   : > { %3156 = dma.done.wait (%p3897_p1), [#allocation21], 16  }
 0x169   : > { %3158 = vsyncadd (%p3898_p3), [#allocation21], 4294967280  ;;  %v3658_v0 = vld [vmem:[%s493_s25] sm:$0xff]  ;;  %v3660_v1 = vld [vmem:[%s493_s25 + $0x8] sm:$0xff]  ;;  %v3197_v4 = vmov 0.0   ;;  %v3198_v30 = vmov 0  }
 0x16a   : > { %581 = vadd.xlane.f32.xlu0 %v3658_v0  ;;  %v2621_v2 = vld [vmem:[#allocation8 + $0x4] ss:$12 sps:$4 sm:$0xff]   ;;  %v2623_v3 = vld [vmem:[#allocation8] ss:$12 sps:$4 sm:$0xff]   ;;  %2302 = vmatprep.subr.bf16.mxu1 %v3197_v4  ;;  %v2624_v5 = vld [vmem:[#allocation8 + $0x8] ss:$12 sps:$4 sm:$0xff]  }
 0x16b   : > { %v2625_v6 = vld [vmem:[#allocation8 + $0x1c] ss:$12 sps:$4 sm:$0xff]   ;;  %783 = vmatprep.subr.bf16.mxu0 %v2621_v2  ;;  %2303 = vmatpush3.bf16.msra.mxu1 %v2624_v5  ;;  %v2627_v15 = vld [vmem:[#allocation8 + $0x18] ss:$12 sps:$4 sm:$0xff]   ;;  %v2628_v16 = vld [vmem:[#allocation8 + $0x20] ss:$12 sps:$4 sm:$0xff]  }
 0x16c   : > { %784 = vmatpush1.bf16.msra.mxu0 %v2623_v3  ;;  %2304 = vmatprep.subr.bf16.mxu1 %v3197_v4  ;;  %v2629_v17 = vld [vmem:[#allocation8 + $0x34] ss:$12 sps:$4 sm:$0xff]   ;;  %v2631_v18 = vld [vmem:[#allocation8 + $0x30] ss:$12 sps:$4 sm:$0xff]   ;;  %v2632_v19 = vld [vmem:[#allocation8 + $0x38] ss:$12 sps:$4 sm:$0xff]  }
 0x16d   : > { %785 = vmatprep.subr.bf16.mxu0 %v2625_v6  ;;  %v2633_v20 = vld [vmem:[#allocation8 + $0x4c] ss:$12 sps:$4 sm:$0xff]   ;;  %v2635_v21 = vld [vmem:[#allocation8 + $0x48] ss:$12 sps:$4 sm:$0xff]   ;;  %v2636_v22 = vld [vmem:[#allocation8 + $0x50] ss:$12 sps:$4 sm:$0xff]   ;;  %815 = vmatprep.mubr.bf16.mxu0 %v3198_v30 }
 0x16e   : > { %583 = vadd.xlane.f32.xlu0 %v3660_v1  ;;  %v2637_v23 = vld [vmem:[#allocation8 + $0x64] ss:$12 sps:$4 sm:$0xff]   ;;  %v2639_v24 = vld [vmem:[#allocation8 + $0x60] ss:$12 sps:$4 sm:$0xff]   ;;  %v2640_v25 = vld [vmem:[#allocation8 + $0x68] ss:$12 sps:$4 sm:$0xff]  }
 0x16f   : > { %2305 = vmatpush3.bf16.msra.mxu1 %v2628_v16  ;;  %v2641_v26 = vld [vmem:[#allocation8 + $0x7c] ss:$12 sps:$4 sm:$0xff]   ;;  %v2643_v27 = vld [vmem:[#allocation8 + $0x78] ss:$12 sps:$4 sm:$0xff]   ;;  %v2644_v28 = vld [vmem:[#allocation8 + $0x80] ss:$12 sps:$4 sm:$0xff]  }
 0x170   : > { %786 = vmatpush1.bf16.msra.mxu0 %v2627_v15  ;;  %2306 = vmatprep.subr.bf16.mxu1 %v3197_v4  ;;  %v2645_v29 = vld [vmem:[#allocation8 + $0x94] ss:$12 sps:$4 sm:$0xff]   ;;  %vm3199_vm0 = vmmov 0   ;;  %v2647_v31 = vld [vmem:[#allocation8 + $0x90] ss:$12 sps:$4 sm:$0xff]   ;;  %vm939_vm1 = vcmask 261120  }
 0x171   : > { %787 = vmatprep.subr.bf16.mxu0 %v2629_v17  ;;  %2318 = vmatprep.mubr.msk.bf16.mxu1 %vm3199_vm0, %v3197_v4  ;;  %v2648_v32 = vld [vmem:[#allocation8 + $0x98] ss:$12 sps:$4 sm:$0xff]   ;;  %v2651_v34 = vld [vmem:[#allocation8 + $0xa8] ss:$12 sps:$4 sm:$0xff]   ;;  %v2652_v35 = vld [vmem:[#allocation8 + $0xb0] ss:$12 sps:$4 sm:$0xff]  }
 0x172   : > { %v2649_v33 = vld [vmem:[#allocation8 + $0xac] ss:$12 sps:$4 sm:$0xff]   ;;  %v2161_v44 = vld [vmem:[#allocation5] ss:$0 sm:$0xff]  ;;  %v2162_v48 = vld [vmem:[#allocation7] ss:$0 sm:$0xff] }
 0x173   : > { %2307 = vmatpush3.bf16.msra.mxu1 %v2632_v19  ;;  %s3200_s26 = smov 96   ;;  %s3201_s16 = smov 64   ;;  %vm1128_vm2 = vcmask 130048   ;;  %vm1423_vm3 = vcmask 523264   ;;  %vm1426_vm4 = vcmask 785408  }
 0x174   : > { %788 = vmatpush1.bf16.msra.mxu0 %v2631_v18  ;;  %2308 = vmatprep.subr.bf16.mxu1 %v3197_v4  ;;  %s3202_s5 = smov 32   ;;  %s577_s3 = scalar_lea.vmem [#allocation22], %s2148_s18 }
 0x175   : > { %789 = vmatprep.subr.bf16.mxu0 %v2633_v20  ;;  %s1952_s2 = sshll.u32 %s577_s3, 4  ;;  %s2245_s20 = sshll.u32 %s3292_s27, 8  ;;  %s3795_s2 = int_to_ptr.vmem [resolvable:$true] %s1952_s2 }
 0x176   : > { %s3899_s12 = sld [smem:[#allocation36_spill]]  ;;  %s1939_s18 = scalar_lea.sflag [#allocation4], %s3624_s29 }
 0x177   : > { %2309 = vmatpush3.bf16.msra.mxu1 %v2636_v22  ;;  %s3087_s30 = scalar_lea.vmem %s3795_s2, 256  ;;  %p3900_p8 = scmp.ne.s32.totalorder %s3882_s17, 0 }
 0x178   : > { %790 = vmatpush1.bf16.msra.mxu0 %v2635_v21  ;;  %2310 = vmatprep.subr.bf16.mxu1 %v3197_v4  ;;  %p3088_p2 = scmp.ne.s32.totalorder %s3795_s2, %s3087_s30  ;;  %s3203_s27 = smov [#allocation22]  }
 0x179   : > { %791 = vmatprep.subr.bf16.mxu0 %v2637_v23  ;;  %s3091_s25 = sshll.u32 %s3203_s27, 4  ;;  %s3092_s25 = int_to_ptr.vmem [resolvable:$false] %s3091_s25 }
 0x17a   : > { %p3089_p6 = pnand %p3088_p2, %p3900_p8  ;;  %p3094_p12 = scmp.lt.s32.totalorder %s3795_s2, %s3092_s25 }
 0x17b   : > { %2311 = vmatpush3.bf16.msra.mxu1 %v2640_v25 }
 0x17c   : > { %792 = vmatpush1.bf16.msra.mxu0 %v2639_v24  ;;  %2312 = vmatprep.subr.bf16.mxu1 %v3197_v4  ;;  %s3800_s28 = scalar_lea.hbm %s3899_s12, %s2245_s20  ;;  %p3090_p11 = pneg %p3089_p6 }
 0x17d   : > { %793 = vmatprep.subr.bf16.mxu0 %v2641_v26 }
 0x17f   : > { %2313 = vmatpush3.bf16.msra.mxu1 %v2644_v28 }
 0x180   : > { %794 = vmatpush1.bf16.msra.mxu0 %v2643_v27  ;;  %2314 = vmatprep.subr.bf16.mxu1 %v3197_v4 }
 0x181   : > { %795 = vmatprep.subr.bf16.mxu0 %v2645_v29 }
 0x183   : > { %2315 = vmatpush3.bf16.msra.mxu1 %v2648_v32 }
 0x184   : > { %796 = vmatpush1.bf16.msra.mxu0 %v2647_v31  ;;  %2316 = vmatprep.subr.bf16.mxu1 %v3197_v4 }
 0x185   : > { %797 = vmatprep.subr.bf16.mxu0 %v2649_v33 }
 0x187   : > { %2317 = vmatpush3.bf16.msra.mxu1 %v2652_v35 }
 0x188   : > { %798 = vmatpush1.bf16.msra.mxu0 %v2651_v34  ;;  %2322 = vmatprep.subr.bf16.mxu1 %v3197_v4 }
 0x189   : > { %2346 = vmatprep.subr.bf16.mxu0 %v3197_v4 }
 0x1f7   : > { %v582_v7 = vpop.xlane.xlu0 %581 }
 0x1f8   : > { %v586_v8 = vmul.f32 0.0078125, %v582_v7 }
 0x1fa   : > { %v3667_v9 = vsub.f32 %v3658_v0, %v586_v8 }
 0x1fb   : > { %v584_v10 = vpop.xlane.xlu0 %583 }
 0x1fc   : > { %v587_v11 = vmul.f32 0.0078125, %v584_v10  ;;  %v590_v12 = vmul.f32 %v3667_v9, %v3667_v9 }
 0x1fe   : > { %v3672_v13 = vsub.f32 %v3660_v1, %v587_v11  ;;  %592 = vadd.xlane.f32.xlu1 %v590_v12 }
 0x200   : > { %v591_v14 = vmul.f32 %v3672_v13, %v3672_v13 }
 0x202   : > { %594 = vadd.xlane.f32.xlu1 %v591_v14 }
 0x28b   : > { %v593_v36 = vpop.xlane.xlu1 %592 }
 0x28c   : > { %v596_v37 = vmul.f32 0.0078125, %v593_v36 }
 0x28e   : > { %v598_v38 = vadd.f32 1e-05, %v596_v37 }
 0x28f   : > { %v595_v39 = vpop.xlane.xlu1 %594 }
 0x290   : > { %2701 = vrsqrt.f32 %v598_v38  ;;  %v597_v40 = vmul.f32 0.0078125, %v595_v39 }
 0x292   : > { %v599_v41 = vadd.f32 1e-05, %v597_v40 }
 0x294   : > { %2703 = vrsqrt.f32 %v599_v41 }
 0x29a   : > { %v2702_v42 = vpop.eup %2701 }
 0x29b   : > { %v602_v43 = vmul.f32 %v2702_v42, %v3667_v9 }
 0x29d   : > { %v611_v47 = vmul.f32 %v2161_v44, %v602_v43 }
 0x29e   : > { %v2704_v45 = vpop.eup %2703 }
 0x29f   : > { %v603_v46 = vmul.f32 %v2704_v45, %v3672_v13  ;;  %v620_v50 = vadd.f32 %v2162_v48, %v611_v47 }
 0x2a1   : > { %v612_v49 = vmul.f32 %v2161_v44, %v603_v46 }
 0x2a3   : > { %v621_v51 = vadd.f32 %v2162_v48, %v612_v49 }
 0x2a5   : > { %v622_v52 = vpack.c.bf16 %v621_v51, %v620_v50 }
 0x2a7   : > { %816 = vmatmul.mubr.bf16.vlgmr.msra.gmra.mrb[0].mxu0 %v622_v52  ;;  %2319 = vmatmul.mubr.bf16.vlgmr.msra.gmra.mrb[0].mxu1 %v622_v52 }
 0x2a8   : > { %2324 = vmatprep.mubr.msk.bf16.mxu1 %vm3199_vm0, %v3197_v4  ;;  %2348 = vmatprep.mubr.msk.bf16.mxu0 %vm3199_vm0, %v3197_v4 }
 0x37a   : > { %v817_v53 = vpop.f32.mrb[0].mxu0  ;;  %v860_v54 = vpop.f32.mrb[0].mxu1 }
 0x37b   : > { %v819_v55 = vpop.f32.mrb[1].mxu0  ;;  %v2320_v56 = vpop.f32.mrb[1].mxu1 }
 0x37c   : > { %v821_v57 = vpop.f32.mrb[2].mxu0  ;;  %v863_v58 = vpop.f32.mrb[2].mxu1 }
 0x37d   : > { %v887_v59 = vpack.c.bf16 %v821_v57, %v817_v53  ;;  %v935_v60 = vpack.c.bf16 %v863_v58, %v860_v54  ;;  %v823_v61 = vpop.f32.mrb[3].mxu0  ;;  %v2321_v62 = vpop.f32.mrb[3].mxu1  ;;  %v2566_v63 = vpack.i.bf16 %v821_v57, %v817_v53  ;;  %v3694_v5 = vpack.i.bf16 %v863_v58, %v860_v54 }
 0x37e   : > { %v2561_v2 = vpack.i.bf16 %v823_v61, %v819_v55  ;;  %v911_v3 = vpack.c.bf16 %v823_v61, %v819_v55 }
 0x37f   : > { %2347 = vmatpush3.bf16.msra.mxu0 %v935_v60  ;;  %2567 = vrot.lane.b32.xlu1 %v2566_v63, %s3200_s26 }
 0x380   : > { %2562 = vrot.lane.b32.xlu0 %v2561_v2, %s3200_s26  ;;  %v944_v6 = vsel %vm939_vm1, %v911_v3, 0  ;;  %2358 = vmatprep.subr.bf16.mxu0 %v3197_v4 }
 0x381   : > { %2323 = vmatpush3.bf16.xpose.msra.mxu1 %v944_v6 }
 0x382   : > { %2328 = vmatprep.subr.bf16.mxu1 %v3197_v4 }
 0x383   : > { %2572 = vrot.lane.b32.xlu1 %v2561_v2, %s3201_s16 }
 0x384   : > { %2582 = vrot.lane.b32.xlu0 %v2561_v2, %s3202_s5 }
 0x387   : > { %2577 = vrot.lane.b32.xlu1 %v2566_v63, %s3201_s16 }
 0x388   : > { %2325 = vmatmul.mubr.msk.bf16.vlgmr.msra.gmra.mrb[4].mxu1 %vm939_vm1, %v887_v59 }
 0x389   : > { %2330 = vmatprep.mubr.msk.bf16.mxu1 %vm3199_vm0, %v3197_v4 }
 0x38b   : > { %2587 = vrot.lane.b32.xlu1 %v2566_v63, %s3202_s5 }
 0x3f1   : > { %v2568_v7 = vpop.permute.xlu1 %2567 }
 0x3f2   : > { %v2563_v8 = vpop.permute.xlu0 %2562  ;;  %v2570_v16 = vunpack.i.h.bf16 %v2568_v7  ;;  %v2569_v17 = vunpack.i.l.bf16 %v2568_v7 }
 0x3f3   : > { %v2565_v9 = vunpack.i.h.bf16 %v2563_v8  ;;  %v2564_v10 = vunpack.i.l.bf16 %v2563_v8 }
 0x3f4   : > { %v888_v20 = vpack.c.bf16 %v2570_v16, %v2569_v17 }
 0x3f5   : > { %v912_v11 = vpack.c.bf16 %v2565_v9, %v2564_v10  ;;  %v2573_v12 = vpop.permute.xlu1 %2572 }
 0x3f6   : > { %v2575_v13 = vunpack.i.h.bf16 %v2573_v12  ;;  %v2574_v14 = vunpack.i.l.bf16 %v2573_v12  ;;  %v2583_v19 = vpop.permute.xlu0 %2582 }
 0x3f7   : > { %v991_v15 = vsel %vm939_vm1, %v912_v11, 0  ;;  %v2585_v22 = vunpack.i.h.bf16 %v2583_v19  ;;  %v2584_v23 = vunpack.i.l.bf16 %v2583_v19 }
 0x3f8   : > { %2329 = vmatpush3.bf16.xpose.msra.mxu1 %v991_v15  ;;  %v913_v18 = vpack.c.bf16 %v2575_v13, %v2574_v14 }
 0x3f9   : > { %2334 = vmatprep.subr.bf16.mxu1 %v3197_v4  ;;  %v2578_v21 = vpop.permute.xlu1 %2577  ;;  %v914_v27 = vpack.c.bf16 %v2585_v22, %v2584_v23 }
 0x3fa   : > { %v1038_v24 = vsel %vm939_vm1, %v913_v18, 0  ;;  %v2580_v25 = vunpack.i.h.bf16 %v2578_v21  ;;  %v2579_v26 = vunpack.i.l.bf16 %v2578_v21 }
 0x3fb   : > { %v1085_v31 = vsel %vm939_vm1, %v914_v27, 0 }
 0x3fc   : > { %v889_v28 = vpack.c.bf16 %v2580_v25, %v2579_v26 }
 0x3fd   : > { %v2588_v29 = vpop.permute.xlu1 %2587 }
 0x3fe   : > { %v2590_v32 = vunpack.i.h.bf16 %v2588_v29  ;;  %v2589_v33 = vunpack.i.l.bf16 %v2588_v29 }
 0x3ff   : > { %2331 = vmatmul.mubr.msk.bf16.vlgmr.msra.gmra.mrb[8].mxu1 %vm939_vm1, %v888_v20 }
 0x400   : > { %2335 = vmatpush3.bf16.xpose.msra.mxu1 %v1038_v24  ;;  %2336 = vmatprep.mubr.msk.bf16.mxu1 %vm3199_vm0, %v3197_v4  ;;  %v890_v34 = vpack.c.bf16 %v2590_v32, %v2589_v33 }
 0x401   : > { %2340 = vmatprep.subr.bf16.mxu1 %v3197_v4 }
 0x407   : > { %2337 = vmatmul.mubr.msk.bf16.vlgmr.msra.gmra.mrb[12].mxu1 %vm939_vm1, %v889_v28 }
 0x408   : > { %2341 = vmatpush3.bf16.xpose.msra.mxu1 %v1085_v31  ;;  %2342 = vmatprep.mubr.msk.bf16.mxu1 %vm3199_vm0, %v3197_v4 }
 0x409   : > { %2352 = vmatprep.subr.bf16.mxu1 %v3197_v4 }
 0x40f   : > { %2343 = vmatmul.mubr.msk.bf16.vlgmr.msra.gmra.mrb[16].mxu1 %vm939_vm1, %v890_v34 }
 0x410   : > { %2354 = vmatprep.mubr.msk.bf16.mxu1 %vm3199_vm0, %v3197_v4 }
 0x45b   : > { %v980_v35 = vpop.f32.mrb[4].mxu1 }
 0x45c   : > { %v2326_v36 = vpop.f32.mrb[5].mxu1  ;;  %v1129_v37 = vsel %vm1128_vm2, %v980_v35, -inf }
 0x45d   : > { %1130 = vmax.xlane.f32.xlu0 %v1129_v37  ;;  %v983_v38 = vpop.f32.mrb[6].mxu1 }
 0x45e   : > { %v2327_v39 = vpop.f32.mrb[7].mxu1  ;;  %v1132_v40 = vsel %vm1128_vm2, %v983_v38, -inf }
 0x45f   : > { %1133 = vmax.xlane.f32.xlu1 %v1132_v40 }
 0x4d2   : > { %v1027_v41 = vpop.f32.mrb[8].mxu1 }
 0x4d3   : > { %v2332_v42 = vpop.f32.mrb[9].mxu1  ;;  %v1135_v43 = vsel %vm1128_vm2, %v1027_v41, -inf }
 0x4d4   : > { %1136 = vmax.xlane.f32.xlu0 %v1135_v43  ;;  %v1030_v44 = vpop.f32.mrb[10].mxu1 }
 0x4d5   : > { %v2333_v45 = vpop.f32.mrb[11].mxu1  ;;  %v1138_v46 = vsel %vm1128_vm2, %v1030_v44, -inf }
 0x4d8   : > { %1139 = vmax.xlane.f32.xlu0 %v1138_v46 }
 0x4da   : > { %v1074_v47 = vpop.f32.mrb[12].mxu1 }
 0x4db   : > { %v2338_v48 = vpop.f32.mrb[13].mxu1  ;;  %v1141_v49 = vsel %vm1128_vm2, %v1074_v47, -inf }
 0x4dc   : > { %1142 = vmax.xlane.f32.xlu0 %v1141_v49  ;;  %v1077_v50 = vpop.f32.mrb[14].mxu1 }
 0x4dd   : > { %v2339_v51 = vpop.f32.mrb[15].mxu1  ;;  %v1144_v52 = vsel %vm1128_vm2, %v1077_v50, -inf }
 0x4de   : > { %1145 = vmax.xlane.f32.xlu1 %v1144_v52 }
 0x4e2   : > { %v1121_v53 = vpop.f32.mrb[16].mxu1 }
 0x4e3   : > { %v2344_v54 = vpop.f32.mrb[17].mxu1  ;;  %v1147_v55 = vsel %vm1128_vm2, %v1121_v53, -inf }
 0x4e4   : > { %1148 = vmax.xlane.f32.xlu0 %v1147_v55  ;;  %v3729_v56 = vpop.f32.mrb[18].mxu1 }
 0x4e5   : > { %v2345_v57 = vpop.f32.mrb[19].mxu1  ;;  %v1150_v58 = vsel %vm1128_vm2, %v3729_v56, -inf }
 0x4e6   : > { %1151 = vmax.xlane.f32.xlu1 %v1150_v58 }
 0x4ea   : > { %v1131_v59 = vpop.xlane.xlu0 %1130 }
 0x4eb   : > { %v1153_v60 = vsub.f32 %v980_v35, %v1131_v59 }
 0x4ec   : > { %v1134_v61 = vpop.xlane.xlu1 %1133 }
 0x4ed   : > { %v1161_v62 = vmul.f32 1.442695, %v1153_v60  ;;  %v1154_v63 = vsub.f32 %v983_v38, %v1134_v61 }
 0x4ef   : > { %2705 = vpow2.f32 %v1161_v62  ;;  %v1163_v2 = vmul.f32 1.442695, %v1154_v63 }
 0x4f1   : > { %2707 = vpow2.f32 %v1163_v2 }
 0x4f9   : > { %v2706_v3 = vpop.eup %2705 }
 0x4fa   : > { %v1177_v6 = vsel %vm1128_vm2, %v2706_v3, 0.0 }
 0x4fb   : > { %v2708_v7 = vpop.eup %2707  ;;  %1178 = vadd.xlane.f32.xlu0 %v1177_v6 }
 0x4fc   : > { %v1180_v8 = vsel %vm1128_vm2, %v2708_v7, 0.0 }
 0x4fd   : > { %1181 = vadd.xlane.f32.xlu1 %v1180_v8 }
 0x561   : > { %v1137_v9 = vpop.xlane.xlu0 %1136 }
 0x562   : > { %v1155_v10 = vsub.f32 %v1027_v41, %v1137_v9 }
 0x564   : > { %v1165_v11 = vmul.f32 1.442695, %v1155_v10 }
 0x565   : > { %v1140_v12 = vpop.xlane.xlu0 %1139 }
 0x566   : > { %2709 = vpow2.f32 %v1165_v11  ;;  %v1156_v13 = vsub.f32 %v1030_v44, %v1140_v12 }
 0x568   : > { %v1167_v14 = vmul.f32 1.442695, %v1156_v13 }
 0x569   : > { %v1143_v15 = vpop.xlane.xlu0 %1142 }
 0x56a   : > { %2711 = vpow2.f32 %v1167_v14  ;;  %v1157_v16 = vsub.f32 %v1074_v47, %v1143_v15 }
 0x56b   : > { %v1146_v17 = vpop.xlane.xlu1 %1145 }
 0x56c   : > { %v1169_v18 = vmul.f32 1.442695, %v1157_v16  ;;  %v1158_v19 = vsub.f32 %v1077_v50, %v1146_v17 }
 0x56e   : > { %2713 = vpow2.f32 %v1169_v18  ;;  %v1171_v20 = vmul.f32 1.442695, %v1158_v19 }
 0x570   : > { %v3735_v21 = vpop.eup %2709  ;;  %2715 = vpow2.f32 %v1171_v20 }
 0x571   : > { %v1149_v22 = vpop.xlane.xlu0 %1148  ;;  %v1183_v23 = vsel %vm1128_vm2, %v3735_v21, 0.0 }
 0x572   : > { %v1159_v24 = vsub.f32 %v1121_v53, %v1149_v22  ;;  %1184 = vadd.xlane.f32.xlu0 %v1183_v23  ;;  %v2653_v23 = vld [vmem:[#allocation10] sm:$0xff]  }
 0x573   : > { %v1152_v35 = vpop.xlane.xlu1 %1151 }
 0x574   : > { %v2712_v25 = vpop.eup %2711  ;;  %v1173_v26 = vmul.f32 1.442695, %v1159_v24  ;;  %v1160_v43 = vsub.f32 %v3729_v56, %v1152_v35  ;;  %v2654_v24 = vld [vmem:[#allocation10 + $0x8] sm:$0xff]  }
 0x575   : > { %v1186_v27 = vsel %vm1128_vm2, %v2712_v25, 0.0 }
 0x576   : > { %2717 = vpow2.f32 %v1173_v26  ;;  %1187 = vadd.xlane.f32.xlu1 %v1186_v27  ;;  %v1175_v44 = vmul.f32 1.442695, %v1160_v43 }
 0x578   : > { %v2714_v28 = vpop.eup %2713 }
 0x579   : > { %v1189_v29 = vsel %vm1128_vm2, %v2714_v28, 0.0 }
 0x57a   : > { %v2716_v31 = vpop.eup %2715  ;;  %1190 = vadd.xlane.f32.xlu0 %v1189_v29  ;;  %v2655_v29 = vld [vmem:[#allocation10 + $0x10] sm:$0xff]  }
 0x57b   : > { %v1192_v32 = vsel %vm1128_vm2, %v2716_v31, 0.0 }
 0x57c   : > { %1193 = vadd.xlane.f32.xlu1 %v1192_v32 }
 0x580   : > { %v3742_v33 = vpop.eup %2717 }
 0x581   : > { %v1195_v34 = vsel %vm1128_vm2, %v3742_v33, 0.0 }
 0x582   : > { %1196 = vadd.xlane.f32.xlu0 %v1195_v34 }
 0x588   : > { %v1179_v36 = vpop.xlane.xlu0 %1178 }
 0x589   : > { %2719 = vrcp.f32 %v1179_v36  ;;  %v2656_v36 = vld [vmem:[#allocation10 + $0x18] sm:$0xff]  }
 0x58a   : > { %v1182_v37 = vpop.xlane.xlu1 %1181 }
 0x58b   : > { %2721 = vrcp.f32 %v1182_v37  ;;  %v2657_v37 = vld [vmem:[#allocation10 + $0x20] sm:$0xff]  }
 0x58c   : > { %2723 = vpow2.f32 %v1175_v44 }
 0x58d   : > { %2597 = vrot.lane.b32.xlu1 %v3694_v5, %s3201_s16 }
 0x593   : > { %v2720_v38 = vpop.eup %2719 }
 0x594   : > { %v1209_v40 = vmul.f32 %v2720_v38, %v2706_v3  ;;  %v2658_v38 = vld [vmem:[#allocation10 + $0x28] sm:$0xff]  }
 0x595   : > { %v2722_v39 = vpop.eup %2721 }
 0x596   : > { %v1210_v41 = vmul.f32 %v2722_v39, %v2708_v7  ;;  %v2724_v45 = vpop.eup %2723  ;;  %v2659_v39 = vld [vmem:[#allocation10 + $0x30] sm:$0xff]  }
 0x597   : > { %v1198_v46 = vsel %vm1128_vm2, %v2724_v45, 0.0 }
 0x598   : > { %2592 = vrot.lane.b32.xlu0 %v3694_v5, %s3200_s26  ;;  %v1217_v42 = vpack.c.bf16 %v1210_v41, %v1209_v40  ;;  %v2660_v40 = vld [vmem:[#allocation10 + $0x38] sm:$0xff]  }
 0x59a   : > { %2349 = vmatmul.mubr.msk.bf16.vlgmr.msra.gmra.mrb[4].mxu0 %vm1128_vm2, %v1217_v42 }
 0x59b   : > { %2360 = vmatprep.mubr.msk.bf16.mxu0 %vm3199_vm0, %v3197_v4 }
 0x5b1   : > { %1199 = vadd.xlane.f32.xlu1 %v1198_v46 }
 0x5c2   : > { %2602 = vrot.lane.b32.xlu1 %v3694_v5, %s3202_s5 }
 0x5ff   : > { %v1185_v47 = vpop.xlane.xlu0 %1184 }
 0x603   : > { %v1188_v48 = vpop.xlane.xlu1 %1187 }
 0x604   : > { %2725 = vrcp.f32 %v1188_v48 }
 0x607   : > { %v1191_v49 = vpop.xlane.xlu0 %1190 }
 0x608   : > { %2727 = vrcp.f32 %v1191_v49 }
 0x609   : > { %2729 = vrcp.f32 %v1185_v47  ;;  %v1194_v50 = vpop.xlane.xlu1 %1193 }
 0x60a   : > { %2731 = vrcp.f32 %v1194_v50 }
 0x60d   : > { %v2598_v51 = vpop.permute.xlu1 %2597 }
 0x60e   : > { %v2600_v52 = vunpack.i.h.bf16 %v2598_v51  ;;  %v2599_v53 = vunpack.i.l.bf16 %v2598_v51  ;;  %v2726_v56 = vpop.eup %2725 }
 0x60f   : > { %v1197_v54 = vpop.xlane.xlu0 %1196  ;;  %v1212_v62 = vmul.f32 %v2726_v56, %v2712_v25 }
 0x610   : > { %v937_v55 = vpack.c.bf16 %v2600_v52, %v2599_v53  ;;  %2733 = vrcp.f32 %v1197_v54 }
 0x612   : > { %v2728_v57 = vpop.eup %2727  ;;  %2359 = vmatpush3.bf16.msra.mxu0 %v937_v55 }
 0x613   : > { %v2730_v58 = vpop.eup %2729  ;;  %v2593_v59 = vpop.permute.xlu0 %2592  ;;  %2370 = vmatprep.subr.bf16.mxu0 %v3197_v4  ;;  %v1213_v63 = vmul.f32 %v2728_v57, %v2714_v28 }
 0x614   : > { %v2732_v5 = vpop.eup %2731  ;;  %v2595_v60 = vunpack.i.h.bf16 %v2593_v59  ;;  %v2594_v61 = vunpack.i.l.bf16 %v2593_v59  ;;  %v1211_v6 = vmul.f32 %v2730_v58, %v3735_v21 }
 0x615   : > { %v1214_v2 = vmul.f32 %v2732_v5, %v2716_v31 }
 0x616   : > { %v936_v3 = vpack.c.bf16 %v2595_v60, %v2594_v61  ;;  %v1218_v8 = vpack.c.bf16 %v1212_v62, %v1211_v6  ;;  %v2195_v60 = vld [vmem:[#allocation11] ss:$0 sm:$0xff] }
 0x617   : > { %v1219_v7 = vpack.c.bf16 %v1214_v2, %v1213_v63 }
 0x618   : > { %2353 = vmatpush3.bf16.msra.mxu1 %v936_v3 }
 0x619   : > { %2361 = vmatmul.mubr.msk.bf16.vlgmr.msra.gmra.mrb[8].mxu0 %vm1128_vm2, %v1219_v7  ;;  %2364 = vmatprep.subr.bf16.mxu1 %v3197_v4 }
 0x61a   : > { %2386 = vmatprep.mubr.msk.bf16.mxu0 %vm3199_vm0, %v3197_v4  ;;  %v2734_v14 = vpop.eup %2733  ;;  %2371 = vmatpush3.bf16.msra.mxu0 %v2653_v23  ;;  %v2675_v23 = vld [vmem:[#allocation16 + $0x44] ss:$8 sps:$4 sm:$0xff]  }
 0x61b   : > { %2355 = vmatmul.mubr.msk.bf16.vlgmr.msra.gmra.mrb[20].mxu1 %vm1128_vm2, %v1218_v8  ;;  %v1215_v16 = vmul.f32 %v2734_v14, %v3742_v33  ;;  %2372 = vmatprep.subr.bf16.mxu0 %v3197_v4 }
 0x61c   : > { %2366 = vmatprep.mubr.msk.bf16.mxu1 %vm3199_vm0, %v3197_v4 }
 0x61e   : > { %2373 = vmatpush3.bf16.msra.mxu0 %v2654_v24  ;;  %v2673_v24 = vld [vmem:[#allocation16 + $0x40] ss:$8 sps:$4 sm:$0xff]  }
 0x61f   : > { %2374 = vmatprep.subr.bf16.mxu0 %v3197_v4 }
 0x622   : > { %2375 = vmatpush3.bf16.msra.mxu0 %v2655_v29  ;;  %v2684_v29 = vld [vmem:[#allocation16 + $0x74] ss:$8 sps:$4 sm:$0xff]  }
 0x623   : > { %2376 = vmatprep.subr.bf16.mxu0 %v3197_v4 }
 0x626   : > { %2377 = vmatpush3.bf16.msra.mxu0 %v2656_v36 }
 0x627   : > { %2378 = vmatprep.subr.bf16.mxu0 %v3197_v4 }
 0x62a   : > { %2379 = vmatpush3.bf16.msra.mxu0 %v2657_v37 }
 0x62b   : > { %2380 = vmatprep.subr.bf16.mxu0 %v3197_v4 }
 0x62e   : > { %2381 = vmatpush3.bf16.msra.mxu0 %v2658_v38 }
 0x62f   : > { %2382 = vmatprep.subr.bf16.mxu0 %v3197_v4 }
 0x632   : > { %2383 = vmatpush3.bf16.msra.mxu0 %v2659_v39 }
 0x633   : > { %2384 = vmatprep.subr.bf16.mxu0 %v3197_v4 }
 0x636   : > { %2385 = vmatpush3.bf16.msra.mxu0 %v2660_v40 }
 0x63e   : > { %v1200_v9 = vpop.xlane.xlu1 %1199 }
 0x63f   : > { %2735 = vrcp.f32 %v1200_v9  ;;  %v2661_v9 = vld [vmem:[#allocation16] ss:$8 sps:$4 sm:$0xff]  }
 0x642   : > { %v2603_v10 = vpop.permute.xlu1 %2602 }
 0x643   : > { %v2605_v11 = vunpack.i.h.bf16 %v2603_v10  ;;  %v2604_v12 = vunpack.i.l.bf16 %v2603_v10  ;;  %v2663_v10 = vld [vmem:[#allocation16 + $0x4] ss:$8 sps:$4 sm:$0xff]  }
 0x645   : > { %v938_v13 = vpack.c.bf16 %v2605_v11, %v2604_v12  ;;  %v2666_v11 = vld [vmem:[#allocation16 + $0x14] ss:$8 sps:$4 sm:$0xff]   ;;  %v2664_v12 = vld [vmem:[#allocation16 + $0x10] ss:$8 sps:$4 sm:$0xff]  }
 0x647   : > { %2365 = vmatpush3.bf16.msra.mxu1 %v938_v13 }
 0x648   : > { %1693 = vmatprep.subr.bf16.mxu1 %v2663_v10 }
 0x649   : > { %v2736_v15 = vpop.eup %2735 }
 0x64a   : > { %v1216_v17 = vmul.f32 %v2736_v15, %v2724_v45 }
 0x64c   : > { %v1220_v18 = vpack.c.bf16 %v1216_v17, %v1215_v16 }
 0x64e   : > { %2367 = vmatmul.mubr.msk.bf16.vlgmr.msra.gmra.mrb[24].mxu1 %vm1128_vm2, %v1220_v18 }
 0x64f   : > { %1725 = vmatprep.mubr.bf16.mxu1 %v3198_v30  ;;  %1694 = vmatpush1.bf16.msra.mxu1 %v2661_v9 }
 0x650   : > { %1695 = vmatprep.subr.bf16.mxu1 %v2666_v11 }
 0x653   : > { %1696 = vmatpush1.bf16.msra.mxu1 %v2664_v12 }
 0x66d   : > { %v1258_v19 = vpop.f32.mrb[4].mxu0 }
 0x66e   : > { %v2350_v20 = vpop.f32.mrb[5].mxu0 }
 0x66f   : > { %v1261_v21 = vpop.f32.mrb[6].mxu0  ;;  %v2667_v20 = vld [vmem:[#allocation16 + $0x20] ss:$8 sps:$4 sm:$0xff]  }
 0x670   : > { %v2351_v22 = vpop.f32.mrb[7].mxu0 }
 0x671   : > { %v2670_v22 = vld [vmem:[#allocation16 + $0x30] ss:$8 sps:$4 sm:$0xff]  }
 0x6ec   : > { %v1346_v25 = vpop.f32.mrb[8].mxu0 }
 0x6ed   : > { %v2362_v26 = vpop.f32.mrb[9].mxu0 }
 0x6ee   : > { %v1302_v27 = vpop.f32.mrb[20].mxu1  ;;  %v1349_v28 = vpop.f32.mrb[10].mxu0  ;;  %v2676_v26 = vld [vmem:[#allocation16 + $0x50] ss:$8 sps:$4 sm:$0xff]  }
 0x6ef   : > { %v2611_v31 = vpack.i.bf16 %v1349_v28, %v1346_v25  ;;  %v2356_v32 = vpop.f32.mrb[21].mxu1  ;;  %v2363_v33 = vpop.f32.mrb[11].mxu0  ;;  %v2678_v25 = vld [vmem:[#allocation16 + $0x54] ss:$8 sps:$4 sm:$0xff]   ;;  %v2681_v28 = vld [vmem:[#allocation16 + $0x64] ss:$8 sps:$4 sm:$0xff]  }
 0x6f0   : > { %v1305_v30 = vpop.f32.mrb[22].mxu1  ;;  %v2685_v32 = vld [vmem:[#allocation19 + $0x40] sm:$0xff]  }
 0x6f1   : > { %v2606_v34 = vpack.i.bf16 %v1305_v30, %v1302_v27  ;;  %2612 = vrot.lane.b32.xlu0 %v2611_v31, %s3201_s16  ;;  %v2357_v35 = vpop.f32.mrb[23].mxu1  ;;  %v2679_v27 = vld [vmem:[#allocation16 + $0x60] ss:$8 sps:$4 sm:$0xff]   ;;  %v2682_v31 = vld [vmem:[#allocation16 + $0x70] ss:$8 sps:$4 sm:$0xff]   ;;  %2280 = vmatprep.subr.bf16.mxu0 %v2685_v32 }
 0x6f2   : > { %v2686_v33 = vld [vmem:[#allocation19] sm:$0xff]   ;;  %v2687_v30 = vld [vmem:[#allocation19 + $0x48] sm:$0xff]  }
 0x6f3   : > { %2607 = vrot.lane.b32.xlu1 %v2606_v34, %s3202_s5  ;;  %v2688_v34 = vld [vmem:[#allocation19 + $0x8] sm:$0xff]  }
 0x721   : > { %v1390_v41 = vpop.f32.mrb[24].mxu1 }
 0x722   : > { %v2368_v42 = vpop.f32.mrb[25].mxu1 }
 0x723   : > { %v1393_v43 = vpop.f32.mrb[26].mxu1 }
 0x724   : > { %v2616_v44 = vpack.i.bf16 %v1393_v43, %v1390_v41  ;;  %v2369_v45 = vpop.f32.mrb[27].mxu1  ;;  %v2204_v43 = vld [vmem:[#allocation13] ss:$0 sm:$0xff] }
 0x726   : > { %2617 = vrot.lane.b32.xlu1 %v2616_v44, %s3200_s26  ;;  %s3093_s26 = scalar_lea.vmem %s3092_s25, 512 }
 0x727   : > { %p3095_p0 = scmp.lt.s32.totalorder %s3093_s26, %s3087_s30 }
 0x729   : > { %p3096_p5 = por %p3095_p0, %p3094_p12 }
 0x72b   : > { %p3097_p9 = pnand %p3096_p5, %p3090_p11 }
 0x763   : > { %v2613_v49 = vpop.permute.xlu0 %2612 }
 0x764   : > { %v2615_v52 = vunpack.i.h.bf16 %v2613_v49  ;;  %v2614_v4 = vunpack.i.l.bf16 %v2613_v49 }
 0x765   : > { %v2608_v46 = vpop.permute.xlu1 %2607 }
 0x766   : > { %v2610_v47 = vunpack.i.h.bf16 %v2608_v46  ;;  %v2609_v48 = vunpack.i.l.bf16 %v2608_v46 }
 0x768   : > { %v1422_v50 = vsel %vm939_vm1, %v1261_v21, %v2610_v47  ;;  %v1421_v51 = vsel %vm939_vm1, %v1258_v19, %v2609_v48  ;;  %v2669_v19 = vld [vmem:[#allocation16 + $0x24] ss:$8 sps:$4 sm:$0xff]   ;;  %v2672_v21 = vld [vmem:[#allocation16 + $0x34] ss:$8 sps:$4 sm:$0xff]  }
 0x769   : > { %v1424_v56 = vsel %vm1423_vm3, %v1421_v51, %v2614_v4  ;;  %v1425_v57 = vsel %vm1423_vm3, %v1422_v50, %v2615_v52  ;;  %1697 = vmatprep.subr.bf16.mxu1 %v2669_v19  ;;  %v2205_v47 = vld [vmem:[#allocation14] ss:$0 sm:$0xff]  ;;  %v2689_v52 = vld [vmem:[#allocation19 + $0x50] sm:$0xff]  }
 0x76a   : > { %1698 = vmatpush1.bf16.msra.mxu1 %v2667_v20  ;;  %v2690_v4 = vld [vmem:[#allocation19 + $0x10] sm:$0xff]  }
 0x76b   : > { %1699 = vmatprep.subr.bf16.mxu1 %v2672_v21 }
 0x76e   : > { %1700 = vmatpush1.bf16.msra.mxu1 %v2670_v22 }
 0x76f   : > { %1701 = vmatprep.subr.bf16.mxu1 %v2675_v23 }
 0x772   : > { %1702 = vmatpush1.bf16.msra.mxu1 %v2673_v24 }
 0x773   : > { %1703 = vmatprep.subr.bf16.mxu1 %v2678_v25 }
 0x776   : > { %1704 = vmatpush1.bf16.msra.mxu1 %v2676_v26 }
 0x777   : > { %1705 = vmatprep.subr.bf16.mxu1 %v2681_v28 }
 0x77a   : > { %1706 = vmatpush1.bf16.msra.mxu1 %v2679_v27 }
 0x77b   : > { %1707 = vmatprep.subr.bf16.mxu1 %v2684_v29 }
 0x77e   : > { %1708 = vmatpush1.bf16.msra.mxu1 %v2682_v31 }
 0x798   : > { %v2618_v53 = vpop.permute.xlu1 %2617 }
 0x799   : > { %v2620_v54 = vunpack.i.h.bf16 %v2618_v53  ;;  %v2619_v55 = vunpack.i.l.bf16 %v2618_v53  ;;  %v2691_v53 = vld [vmem:[#allocation19 + $0x58] sm:$0xff]  }
 0x79b   : > { %v1428_v58 = vsel %vm1426_vm4, %v1425_v57, %v2620_v54  ;;  %v1427_v59 = vsel %vm1426_vm4, %v1424_v56, %v2619_v55  ;;  %v2692_v54 = vld [vmem:[#allocation19 + $0x18] sm:$0xff]   ;;  %v2693_v55 = vld [vmem:[#allocation19 + $0x60] sm:$0xff]   ;;  %v2695_v57 = vld [vmem:[#allocation19 + $0x68] sm:$0xff]  }
 0x79c   : > { %v1429_v5 = vpack.c.bf16 %v1428_v58, %v1427_v59  ;;  %v2694_v56 = vld [vmem:[#allocation19 + $0x20] sm:$0xff]   ;;  %v2696_v58 = vld [vmem:[#allocation19 + $0x28] sm:$0xff]   ;;  %v2697_v59 = vld [vmem:[#allocation19 + $0x70] sm:$0xff]  }
 0x79e   : > { %2387 = vmatmul.mubr.bf16.vlgmr.msra.gmra.mrb[12].mxu0 %v1429_v5  ;;  %v2698_v5 = vld [vmem:[#allocation19 + $0x30] sm:$0xff]  }
 0x79f   : > { %2281 = vmatpush3.bf16.msra.mxu0 %v2686_v33 }
 0x7a0   : > { %2282 = vmatprep.subr.bf16.mxu0 %v2687_v30 }
 0x7a3   : > { %2283 = vmatpush3.bf16.msra.mxu0 %v2688_v34 }
 0x7a4   : > { %2284 = vmatprep.subr.bf16.mxu0 %v2689_v52 }
 0x7a7   : > { %2285 = vmatpush3.bf16.msra.mxu0 %v2690_v4 }
 0x7a8   : > { %2286 = vmatprep.subr.bf16.mxu0 %v2691_v53 }
 0x7ab   : > { %2287 = vmatpush3.bf16.msra.mxu0 %v2692_v54 }
 0x7ac   : > { %2288 = vmatprep.subr.bf16.mxu0 %v2693_v55 }
 0x7af   : > { %2289 = vmatpush3.bf16.msra.mxu0 %v2694_v56 }
 0x7b0   : > { %2290 = vmatprep.subr.bf16.mxu0 %v2695_v57 }
 0x7b3   : > { %2291 = vmatpush3.bf16.msra.mxu0 %v2696_v58 }
 0x7b4   : > { %2292 = vmatprep.subr.bf16.mxu0 %v2697_v59 }
 0x7b7   : > { %2293 = vmatpush3.bf16.msra.mxu0 %v2698_v5 }
 0x871   : > { %v1535_v61 = vpop.f32.mrb[12].mxu0 }
 0x872   : > { %v1536_v62 = vadd.f32 %v2195_v60, %v1535_v61  ;;  %v2388_v63 = vpop.f32.mrb[13].mxu0  ;;  %v2700_v61 = vld [vmem:[#allocation19 + $0x38] sm:$0xff]  }
 0x873   : > { %v1538_v2 = vpop.f32.mrb[14].mxu0 }
 0x874   : > { %v3782_v3 = vadd.f32 %v1536_v62, %v3658_v0  ;;  %v1539_v6 = vadd.f32 %v2195_v60, %v1538_v2  ;;  %v2389_v7 = vpop.f32.mrb[15].mxu0  ;;  %v2699_v60 = vld [vmem:[#allocation19 + $0x78] sm:$0xff]   ;;  %v1603_v62 = vlaneseq }
 0x875   : > { %2294 = vmatprep.subr.bf16.mxu0 %v2699_v60 }
 0x876   : > { %v3785_v8 = vadd.f32 %v1539_v6, %v3660_v1  ;;  %1544 = vadd.xlane.f32.xlu0 %v3782_v3  ;;  %2295 = vmatpush3.bf16.msra.mxu0 %v2700_v61  ;;  %v1604_v63 = vshrl.u32 %v1603_v62, 7  ;;  %v1601_v6 = vld [vmem:[#allocation17] sm:$0x3] }
 0x878   : > { %1546 = vadd.xlane.f32.xlu1 %v3785_v8  ;;  %v1605_v2 = vsub.s32 0, %v1604_v63  ;;  %v1609_v7 = vsub.s32 1, %v1604_v63 }
 0x87a   : > { %v1606_v9 = vrot.slane %v1601_v6, %v1605_v2  ;;  %v1610_v10 = vrot.slane %v1601_v6, %v1609_v7 }
 0x903   : > { %v1545_v13 = vpop.xlane.xlu0 %1544 }
 0x904   : > { %v1548_v0 = vmul.f32 0.0078125, %v1545_v13 }
 0x905   : > { %v1547_v14 = vpop.xlane.xlu1 %1546 }
 0x906   : > { %v1550_v15 = vsub.f32 %v3782_v3, %v1548_v0  ;;  %v1549_v16 = vmul.f32 0.0078125, %v1547_v14 }
 0x908   : > { %v1551_v1 = vsub.f32 %v3785_v8, %v1549_v16  ;;  %v1552_v17 = vmul.f32 %v1550_v15, %v1550_v15 }
 0x90a   : > { %1554 = vadd.xlane.f32.xlu0 %v1552_v17  ;;  %v1553_v18 = vmul.f32 %v1551_v1, %v1551_v1 }
 0x90e   : > { %1556 = vadd.xlane.f32.xlu0 %v1553_v18 }
 0x997   : > { %v1555_v35 = vpop.xlane.xlu0 %1554 }
 0x998   : > { %v1558_v36 = vmul.f32 0.0078125, %v1555_v35 }
 0x99a   : > { %v1560_v37 = vadd.f32 1e-05, %v1558_v36 }
 0x99b   : > { %v1557_v38 = vpop.xlane.xlu0 %1556 }
 0x99c   : > { %2737 = vrsqrt.f32 %v1560_v37  ;;  %v1559_v39 = vmul.f32 0.0078125, %v1557_v38 }
 0x99e   : > { %v1561_v40 = vadd.f32 1e-05, %v1559_v39 }
 0x9a0   : > { %2739 = vrsqrt.f32 %v1561_v40  ;;  %v2222_v40 = vld [vmem:[#allocation20] ss:$0 sm:$0xff] }
 0x9a6   : > { %v2738_v41 = vpop.eup %2737 }
 0x9a7   : > { %v1564_v42 = vmul.f32 %v2738_v41, %v1550_v15 }
 0x9a9   : > { %v1573_v46 = vmul.f32 %v2204_v43, %v1564_v42 }
 0x9aa   : > { %v2740_v44 = vpop.eup %2739 }
 0x9ab   : > { %v1565_v45 = vmul.f32 %v2740_v44, %v1551_v1  ;;  %v1582_v49 = vadd.f32 %v2205_v47, %v1573_v46 }
 0x9ad   : > { %v1574_v48 = vmul.f32 %v2204_v43, %v1565_v45 }
 0x9af   : > { %v1583_v50 = vadd.f32 %v2205_v47, %v1574_v48 }
 0x9b1   : > { %v1584_v51 = vpack.c.bf16 %v1583_v50, %v1582_v49 }
 0x9b3   : > { %1726 = vmatmul.mubr.bf16.vlgmr.msra.gmra.mrb[28].mxu1 %v1584_v51 }
 0xa86   : > { %v1727_v11 = vpop.f32.mrb[28].mxu1 }
 0xa87   : > { %v1728_v12 = vadd.f32 %v1727_v11, %v1606_v9  ;;  %v1729_v13 = vpop.f32.mrb[29].mxu1 }
 0xa88   : > { %v1730_v0 = vadd.f32 %v1729_v13, %v1610_v10  ;;  %v1731_v14 = vpop.f32.mrb[30].mxu1 }
 0xa89   : > { %v1740_v15 = vmul.f32 0.70710677, %v1728_v12  ;;  %v1732_v16 = vadd.f32 %v1731_v14, %v1606_v9  ;;  %v1733_v1 = vpop.f32.mrb[31].mxu1  ;;  %v1736_v27 = vmul.f32 0.5, %v1728_v12 }
 0xa8a   : > { %v1741_v17 = vmul.f32 0.70710677, %v1730_v0  ;;  %v1734_v18 = vadd.f32 %v1733_v1, %v1610_v10  ;;  %v1737_v31 = vmul.f32 0.5, %v1730_v0 }
 0xa8b   : > { %2741 = verf.f32 %v1740_v15  ;;  %v1742_v19 = vmul.f32 0.70710677, %v1732_v16  ;;  %v1738_v28 = vmul.f32 0.5, %v1732_v16 }
 0xa8c   : > { %2743 = verf.f32 %v1741_v17  ;;  %v1743_v20 = vmul.f32 0.70710677, %v1734_v18  ;;  %v1739_v32 = vmul.f32 0.5, %v1734_v18 }
 0xa8d   : > { %2745 = verf.f32 %v1742_v19 }
 0xa8e   : > { %2747 = verf.f32 %v1743_v20 }
 0xa95   : > { %v2742_v21 = vpop.eup %2741 }
 0xa96   : > { %v2744_v22 = vpop.eup %2743  ;;  %v1748_v23 = vadd.f32 1.0, %v2742_v21 }
 0xa97   : > { %v2746_v24 = vpop.eup %2745  ;;  %v1749_v25 = vadd.f32 1.0, %v2744_v22 }
 0xa98   : > { %v2748_v26 = vpop.eup %2747  ;;  %v1750_v29 = vadd.f32 1.0, %v2746_v24  ;;  %v1752_v30 = vmul.f32 %v1748_v23, %v1736_v27 }
 0xa99   : > { %v1751_v33 = vadd.f32 1.0, %v2748_v26  ;;  %v1753_v35 = vmul.f32 %v1749_v25, %v1737_v31 }
 0xa9a   : > { %v1754_v34 = vmul.f32 %v1750_v29, %v1738_v28 }
 0xa9b   : > { %v1755_v36 = vmul.f32 %v1751_v33, %v1739_v32 }
 0xa9c   : > { %v1756_v37 = vpack.c.bf16 %v1754_v34, %v1752_v30 }
 0xa9d   : > { %v1757_v38 = vpack.c.bf16 %v1755_v36, %v1753_v35 }
 0xa9f   : > { %1925 = vmatprep.mubr.bf16.mxu0 %v1757_v38 }
 0xaa0   : > { %1926 = vmatmul.mubr.bf16.vlgmr.msra.gmra.mrb[16].mxu0 %v1756_v37 }
 0xb73   : > { %v2296_v39 = vpop.f32.mrb[16].mxu0 }
 0xb74   : > { %v2297_v41 = vpop.f32.mrb[17].mxu0 }
 0xb75   : > { %v2298_v42 = vadd.f32 %v2297_v41, %v2296_v39  ;;  %v2299_v43 = vpop.f32.mrb[18].mxu0 }
 0xb76   : > { %v2300_v44 = vpop.f32.mrb[19].mxu0 }
 0xb77   : > { %v1928_v45 = vadd.f32 %v2298_v42, %v2222_v40  ;;  %v2301_v46 = vadd.f32 %v2300_v44, %v2299_v43 }
 0xb79   : > { %v1934_v47 = vadd.f32 %v1928_v45, %v3782_v3  ;;  %v1931_v48 = vadd.f32 %v2301_v46, %v2222_v40 }
 0xb7b   : > { %1936 = vst [vmem:[%s577_s3] sm:$0xff] %v1934_v47  ;;  %v1935_v49 = vadd.f32 %v1931_v48, %v3785_v8 }
 0xb7d   : > { %1937 = vst [vmem:[%s577_s3 + $0x8] sm:$0xff] %v1935_v49 }
 0xb7e   : > { %3100 = shalt.err (!%p3097_p9)
}
 0xb7f   : > { %s3101_s16 = scalar_lea.hbm %s3800_s28, 256  ;;  %s3105_s20 = scalar_lea.hbm %s3899_s12, 512 }
 0xb80   : > { %p3102_p7 = scmp.ne.s32.totalorder %s3800_s28, %s3101_s16  ;;  %p3106_p13 = scmp.lt.u32.totalorder %s3800_s28, %s3899_s12 }
 0xb81   : > { %p3107_p1 = scmp.lt.u32.totalorder %s3105_s20, %s3101_s16  ;;  %p3109_p2 = scmp.lt.u32.totalorder %s3101_s16, %s3800_s28 }
 0xb82   : > { %p3103_p10 = pnand %p3102_p7, %p3900_p8 }
 0xb83   : > { %p3108_p3 = por %p3107_p1, %p3106_p13 }
 0xb84   : > { %p3104_p4 = pneg %p3103_p10 }
 0xb85   : > { %p3110_p6 = por %p3109_p2, %p3108_p3 }
 0xb87   : > { %p3111_p11 = pnand %p3110_p6, %p3104_p4 }
 0xb89   : > { %3114 = shalt.err (!%p3111_p11)
}
 0xb8a   : > { %s3204_s30 = smov 128   ;;  %s3205_s27 = smov 8  }
 0xb8b   : > { %2436 = dma.vmem_to_hbm [thread:$0]  (%p3900_p8), %s3795_s2, 256, %s3800_s28, %s1939_s18, %s3204_s30, %s3204_s30, %s3205_s27  }
 0xb8c PF: > { %s1967_s25 = sand.u32 1, %s3165_s21   ;;  %p3901_p12 = scmp.ne.s32.totalorder %s3883_s1, 0 }
 0xb8d   : > { %p3902_p0 = scmp.ge.s32.totalorder %s3177_s24, 2  ;;  %s1968_s26 = scalar_lea.sflag [#allocation4], %s1967_s25 }
 0xb8f   : > { %p2477_p5 = pnand %p3902_p0, %p3901_p12 }
 0xb91   : > { %3160 = dma.done.wait (!%p2477_p5), %s1968_s26, 256  }
 0xb92   : > { %3162 = vsyncadd (!%p2477_p5), %s1968_s26, 4294967040  ;;  %p31_p9 = scmp.ge.s32.totalorder %s3548_s13, 4   ;;  %s3903_s21 = smov %s3169_s22 }
 0xb93   : > { %s3904_s22 = smov %s3173_s23  ;;  %s3905_s23 = smov %s3560_s14 }
 0xb94   : > { %s3906_s24 = smov %s3548_s13  ;;  %33 = sbr.rel (!%p31_p9) target bundleno = 17 (0x11), region = 157 }
 0xb9b   :  { %1973 = vsyncpa [#allocation3], 1 }
 0xb9c   :  { %1975 = vsyncpa [#allocation3 + $0x1], 1 }
 0xb9d   :  { %1976 = vsyncpa [#allocation6], 1 }
 0xb9e   :  { %1977 = vsyncpa [#allocation9], 1 }
 0xb9f   :  { %1978 = vsyncpa [#allocation12], 1 }
 0xba0   :  { %1979 = vsyncpa [#allocation15], 1 }
 0xba1   :  { %1980 = vsyncpa [#allocation18], 1 }
 0xba2   :  { %1981 = vsyncpa [#allocation21], 1 }
 0xba3   :  { %1982 = vsyncpa [#allocation4], 1 }
 0xba4   :  { %1984 = vsyncpa [#allocation4 + $0x1], 1 }

</bundles_post_ra>
